<compile_context>
chip_gen: v5e
topology: v5e:2x2
jax: 0.10.0
libtpu: 0.0.40
codegen_flags: <defaults>
</compile_context>

<pallas_src>
import jax
import jax.numpy as jnp
from jax.experimental import pallas as pl
from jax.experimental.pallas import tpu as pltpu

D1 = 1024   # conv out_channels (dim1 in the PyTorch module)
K = 3       # conv kernel_size


def _round_up(x, m):
    return (x + m - 1) // m * m


def _pick_col_tile(n_pad):
    """Lane-dense column tile: multiple of 128, <=512, divides n_pad, prefer >=2 tiles
    so the parallel axis can feed both v7x TensorCores."""
    cands = [t for t in range(512, 0, -128) if n_pad % t == 0]
    multi = [t for t in cands if n_pad // t >= 2]
    return (multi or cands)[0]


def _pick_t_block(L, tn):
    """Timesteps per grid step: divisor of L (<=8), keeping the double-buffered
    FC-weight block under ~8 MiB of VMEM."""
    cap = max(1, min(8, (4 * 1024 * 1024) // (D1 * tn * 2)))
    t = min(cap, L)
    while L % t:
        t -= 1
    return t


def _vmem_limit(need_bytes):
    """Generation-aware VMEM limit: 80% of physical capacity (64 MiB fallback ~ v7x)."""
    cap = 64 * 2**20
    try:
        cap = int(pltpu.get_tpu_info().vmem_capacity_bytes)
    except Exception:
        pass
    ceiling = int(cap * 0.8)
    return max(min(2 * need_bytes, ceiling), min(32 * 2**20, ceiling))


def _net_kernel(xi_ref, wc_ref, bc_ref, wf_ref, bf_ref, out_ref, h_ref):
    """Grid step = (j: FC output-column tile [parallel], t: timestep block [reduction]).

    xi_ref  : (L, B, K*F)     f32   im2col'd input, VMEM resident
    wc_ref  : (K*F, D1)       f32   im2col'd conv weight
    bc_ref  : (1, D1)         f32   conv bias
    wf_ref  : (Tt*D1, tn)     bf16  FC weight block (contiguous in HBM)
    bf_ref  : (1, tn)         f32   FC bias tile
    out_ref : (B, tn)         f32   resident output block == accumulator
    h_ref   : (L//Tt, B, Tt*D1) bf16  cached relu(conv) activations
    """
    t = pl.program_id(1)
    L = xi_ref.shape[0]
    tt_d1 = wf_ref.shape[0]
    tt = tt_d1 // D1

    @pl.when(t == 0)
    def _conv_and_init():
        # relu(Conv1d(k=3, 'same')) for all L timesteps, cached once per column tile
        # and reused across the whole timestep reduction.
        out_ref[...] = jnp.zeros_like(out_ref)
        for l in range(L):
            h = jnp.dot(xi_ref[l], wc_ref[...], preferred_element_type=jnp.float32)
            h = jnp.maximum(h + bc_ref[...], 0.0)          # activation='relu'
            tb, i = divmod(l, tt)
            h_ref[tb, :, i * D1:(i + 1) * D1] = h.astype(h_ref.dtype)

    # FC partial product for this block of Tt timesteps: one bf16 MXU matmul, f32 acc,
    # accumulated directly into the resident output block.
    out_ref[...] += jnp.dot(h_ref[t], wf_ref[...], preferred_element_type=jnp.float32)

    @pl.when(t == pl.num_programs(1) - 1)
    def _finalize():
        out_ref[...] += bf_ref[...]


def prepare_params(conv_w, conv_b, fc_w, fc_b, encode_len, n_classes):
    """One-time weight re-layout (hoisted out of the per-call forward path).

    conv_w: (D1, F, K), conv_b: (D1,), fc_w: (L*C, D1*L), fc_b: (L*C,)
    """
    L, C = encode_len, n_classes
    F = conv_w.shape[1]
    LC = L * C
    n_pad = _round_up(LC, 128)                 # lane-dense output columns
    tn = _pick_col_tile(n_pad)
    nj = n_pad // tn
    tt = _pick_t_block(L, tn)
    Lt = L // tt

    # Conv weight im2col'd: wc[k*F + f, o] = conv_w[o, f, k]
    wc = jnp.transpose(conv_w, (2, 1, 0)).reshape(K * F, D1).astype(jnp.float32)
    bc = conv_b.reshape(1, D1).astype(jnp.float32)

    # fc_w (LC, D1*L) -> (D1*L, LC) -> (L, D1, LC), pad cols, then pre-tile so each
    # streamed (t-block, col-tile) block is contiguous in HBM: (Lt, nj, Tt*D1, tn).
    wf = fc_w.T.reshape(L, D1, LC)
    wf = jnp.pad(wf, ((0, 0), (0, 0), (0, n_pad - LC)))
    wf = wf.reshape(Lt, tt, D1, nj, tn).transpose(0, 3, 1, 2, 4)
    wf = wf.reshape(Lt, nj, tt * D1, tn).astype(jnp.bfloat16)

    bf = jnp.pad(fc_b, (0, n_pad - LC)).reshape(1, n_pad).astype(jnp.float32)
    return wc, bc, wf, bf


def net_forward(x, wc, bc, wf, bf, n_classes):
    """x: (B, L, F) float32 — same layout the PyTorch module receives."""
    B, L, F = x.shape
    C = n_classes
    LC = L * C
    Lt, nj, tt_d1, tn = wf.shape
    tt = tt_d1 // D1
    n_pad = nj * tn
    assert Lt * tt == L and tt_d1 == tt * D1

    # Pre-im2col the (tiny) input: xi[t, b, k*F + f] = xpad[b, t+k, f]
    pad = K // 2
    xp = jnp.pad(x, ((0, 0), (pad, pad), (0, 0))).astype(jnp.float32)
    xi = jnp.concatenate([xp[:, k:k + L, :] for k in range(K)], axis=-1)   # (B, L, K*F)
    xi = jnp.transpose(xi, (1, 0, 2))                                      # (L, B, K*F)

    wf_blk = tt_d1 * tn * 2
    need = (2 * xi.size * 4 + 2 * wc.size * 4 + 2 * bc.size * 4   # const inputs (dbl-buf)
            + 2 * wf_blk + 2 * tn * 4                             # streamed wf/bf blocks
            + 2 * B * tn * 4                                      # output block
            + Lt * max(B, 8) * tt_d1 * 2)                         # h scratch

    out = pl.pallas_call(
        _net_kernel,
        out_shape=jax.ShapeDtypeStruct((B, n_pad), jnp.float32),
        grid_spec=pltpu.PrefetchScalarGridSpec(
            num_scalar_prefetch=0,
            grid=(nj, Lt),
            in_specs=[
                pl.BlockSpec((L, B, K * F), lambda j, t: (0, 0, 0)),        # xi (resident)
                pl.BlockSpec((K * F, D1), lambda j, t: (0, 0)),             # conv weight
                pl.BlockSpec((1, D1), lambda j, t: (0, 0)),                 # conv bias
                pl.BlockSpec((None, None, tt_d1, tn),
                             lambda j, t: (t, j, 0, 0)),                    # FC weight block (contiguous, streamed)
                pl.BlockSpec((1, tn), lambda j, t: (0, j)),                 # FC bias tile
            ],
            out_specs=pl.BlockSpec((B, tn), lambda j, t: (0, j)),
            scratch_shapes=[pltpu.VMEM((Lt, B, tt_d1), jnp.bfloat16)],      # cached relu(conv)
        ),
        compiler_params=pltpu.CompilerParams(
            dimension_semantics=("parallel", "arbitrary"),
            vmem_limit_bytes=_vmem_limit(need),
        ),
    )(xi, wc, bc, wf, bf)

    return out[:, :LC].reshape(B, L, C)


def init_params(key, feat_dim, encode_len, n_classes, dim1=D1):
    """Deterministic PyTorch-default-style (uniform +-1/sqrt(fan_in)) init."""
    k1, k2, k3, k4 = jax.random.split(key, 4)
    conv_bound = 1.0 / jnp.sqrt(feat_dim * K)
    fc_in = dim1 * encode_len
    fc_out = encode_len * n_classes
    fc_bound = 1.0 / jnp.sqrt(fc_in)
    conv_w = jax.random.uniform(k1, (dim1, feat_dim, K), jnp.float32,
                                -conv_bound, conv_bound)
    conv_b = jax.random.uniform(k2, (dim1,), jnp.float32, -conv_bound, conv_bound)
    fc_w = jax.random.uniform(k3, (fc_out, fc_in), jnp.float32, -fc_bound, fc_bound)
    fc_b = jax.random.uniform(k4, (fc_out,), jnp.float32, -fc_bound, fc_bound)
    return conv_w, conv_b, fc_w, fc_b


def net_forward_ref(x, conv_w, conv_b, fc_w, fc_b, n_classes):
    """Plain-JAX f32 reference mirroring the PyTorch forward exactly."""
    B, L, F = x.shape
    _, _, Kk = conv_w.shape
    xpad = jnp.pad(x, ((0, 0), (Kk // 2, Kk // 2), (0, 0)))
    h = jnp.einsum("btkf,ofk->bto",
                   jnp.stack([xpad[:, k:k + L, :] for k in range(Kk)], axis=2),
                   conv_w) + conv_b
    h = jax.nn.relu(h)
    h = h.reshape(B, -1)
    y = h @ fc_w.T + fc_b
    return y.reshape(B, L, n_classes)


if __name__ == "__main__":
    # Small shapes consistent with the module's forward: x is (batch, seq, features).
    B, encode_len, feat_dim, n_classes = 2, 8, 4, 3
    key = jax.random.PRNGKey(0)
    kx, kp = jax.random.split(key)
    x = jax.random.normal(kx, (B, encode_len, feat_dim), jnp.float32)
    conv_w, conv_b, fc_w, fc_b = init_params(kp, feat_dim, encode_len, n_classes)

    # One-time weight re-layout (not part of the per-call forward path).
    wc, bc, wf, bf = prepare_params(conv_w, conv_b, fc_w, fc_b, encode_len, n_classes)

    out = net_forward(x, wc, bc, wf, bf, n_classes)
    out = jax.block_until_ready(out)

    ref = net_forward_ref(x, conv_w, conv_b, fc_w, fc_b, n_classes)
    assert out.shape == (B, encode_len, n_classes)
    # FC weights/activations are bf16 in the kernel (f32 accumulation) -> loose tol vs f32 ref.
    assert jnp.allclose(out, ref, atol=2e-2, rtol=2e-2), float(jnp.max(jnp.abs(out - ref)))

    print("KERNEL_OK")
</pallas_src>

<mosaic_0001>
module attributes {stable_mosaic.version = 11 : i64} {
  func.func @_net_kernel(%arg0: i32, %arg1: i32, %arg2: memref<8x2x12xf32, #tpu.memory_space<vmem>>, %arg3: memref<12x1024xf32, #tpu.memory_space<vmem>>, %arg4: memref<1x1024xf32, #tpu.memory_space<vmem>>, %arg5: memref<1x1x8192x128xbf16, #tpu.memory_space<vmem>>, %arg6: memref<1x128xf32, #tpu.memory_space<vmem>>, %arg7: memref<2x128xf32, #tpu.memory_space<vmem>>, %arg8: memref<1x2x8192xbf16, #tpu.memory_space<vmem>>) attributes {dimension_semantics = [#tpu.dimension_semantics<parallel>, #tpu.dimension_semantics<arbitrary>], iteration_bounds = array<i64: 1, 1>, scalar_prefetch = 0 : i64, scratch_operands = 1 : i64, tpu.core_type = #tpu.core_type<tc>, window_params = [{pipeline_mode = #tpu.pipeline_mode<synchronous>, transform_indices = @transform_0, window_bounds = array<i64: 8, 2, 12>}, {pipeline_mode = #tpu.pipeline_mode<synchronous>, transform_indices = @transform_1, window_bounds = array<i64: 12, 1024>}, {pipeline_mode = #tpu.pipeline_mode<synchronous>, transform_indices = @transform_2, window_bounds = array<i64: 1, 1024>}, {transform_indices = @transform_3, window_bounds = array<i64: 1, 1, 8192, 128>}, {transform_indices = @transform_4, window_bounds = array<i64: 1, 128>}, {transform_indices = @transform_5, window_bounds = array<i64: 2, 128>}]} {
    %c0_i32 = arith.constant 0 : i32
    %0 = arith.cmpi eq, %arg1, %c0_i32 : i32
    %1 = arith.extui %0 : i1 to i32
    %c0_i32_0 = arith.constant 0 : i32
    %2 = arith.cmpi ne, %1, %c0_i32_0 : i32
    scf.if %2 {
      %cst_12 = arith.constant 0.000000e+00 : f32
      %15 = vector.broadcast %cst_12 : f32 to vector<2x128xf32>
      %c0_13 = arith.constant 0 : index
      %c0_14 = arith.constant 0 : index
      %16 = vector.load %arg7[%c0_13, %c0_14] : memref<2x128xf32, #tpu.memory_space<vmem>>, vector<2x128xf32>
      tpu.vector_store %arg7[%c0_13, %c0_14], %15 {strides = array<i32>} : memref<2x128xf32, #tpu.memory_space<vmem>>, vector<2x128xf32>,
      %c0_15 = arith.constant 0 : index
      %c0_16 = arith.constant 0 : index
      %c0_17 = arith.constant 0 : index
      %17 = vector.load %arg2[%c0_15, %c0_16, %c0_17] : memref<8x2x12xf32, #tpu.memory_space<vmem>>, vector<1x2x12xf32>
      %18 = vector.shape_cast %17 : vector<1x2x12xf32> to vector<2x12xf32>
      %c0_18 = arith.constant 0 : index
      %c0_19 = arith.constant 0 : index
      %19 = vector.load %arg3[%c0_18, %c0_19] : memref<12x1024xf32, #tpu.memory_space<vmem>>, vector<12x1024xf32>
      %cst_20 = arith.constant dense<0.000000e+00> : vector<2x1024xf32>
      %20 = tpu.matmul %18, %19, %cst_20 {dimension_numbers = #tpu.dot_dimension_numbers<[1], [0], [0], [1], [0, 0, 1, 1], [], []>} : vector<2x12xf32>, vector<12x1024xf32>, vector<2x1024xf32> -> vector<2x1024xf32>
      %c0_21 = arith.constant 0 : index
      %c0_22 = arith.constant 0 : index
      %21 = vector.load %arg4[%c0_21, %c0_22] : memref<1x1024xf32, #tpu.memory_space<vmem>>, vector<1x1024xf32>
      %22 = vector.broadcast %21 : vector<1x1024xf32> to vector<2x1024xf32>
      %23 = arith.addf %20, %22 : vector<2x1024xf32>
      %cst_23 = arith.constant 0.000000e+00 : f32
      %24 = vector.broadcast %cst_23 : f32 to vector<2x1024xf32>
      %25 = arith.maximumf %23, %24 : vector<2x1024xf32>
      %26 = arith.truncf %25 : vector<2x1024xf32> to vector<2x1024xbf16>
      %c0_24 = arith.constant 0 : index
      %c0_25 = arith.constant 0 : index
      %c0_26 = arith.constant 0 : index
      %27 = vector.load %arg8[%c0_24, %c0_25, %c0_26] : memref<1x2x8192xbf16, #tpu.memory_space<vmem>>, vector<1x2x1024xbf16>
      %28 = vector.shape_cast %27 : vector<1x2x1024xbf16> to vector<2x1024xbf16>
      %29 = vector.shape_cast %26 : vector<2x1024xbf16> to vector<1x2x1024xbf16>
      tpu.vector_store %arg8[%c0_24, %c0_25, %c0_26], %29 {strides = array<i32>} : memref<1x2x8192xbf16, #tpu.memory_space<vmem>>, vector<1x2x1024xbf16>,
      %c1 = arith.constant 1 : index
      %c0_27 = arith.constant 0 : index
      %c0_28 = arith.constant 0 : index
      %30 = vector.load %arg2[%c1, %c0_27, %c0_28] : memref<8x2x12xf32, #tpu.memory_space<vmem>>, vector<1x2x12xf32>
      %31 = vector.shape_cast %30 : vector<1x2x12xf32> to vector<2x12xf32>
      %c0_29 = arith.constant 0 : index
      %c0_30 = arith.constant 0 : index
      %32 = vector.load %arg3[%c0_29, %c0_30] : memref<12x1024xf32, #tpu.memory_space<vmem>>, vector<12x1024xf32>
      %cst_31 = arith.constant dense<0.000000e+00> : vector<2x1024xf32>
      %33 = tpu.matmul %31, %32, %cst_31 {dimension_numbers = #tpu.dot_dimension_numbers<[1], [0], [0], [1], [0, 0, 1, 1], [], []>} : vector<2x12xf32>, vector<12x1024xf32>, vector<2x1024xf32> -> vector<2x1024xf32>
      %c0_32 = arith.constant 0 : index
      %c0_33 = arith.constant 0 : index
      %34 = vector.load %arg4[%c0_32, %c0_33] : memref<1x1024xf32, #tpu.memory_space<vmem>>, vector<1x1024xf32>
      %35 = vector.broadcast %34 : vector<1x1024xf32> to vector<2x1024xf32>
      %36 = arith.addf %33, %35 : vector<2x1024xf32>
      %cst_34 = arith.constant 0.000000e+00 : f32
      %37 = vector.broadcast %cst_34 : f32 to vector<2x1024xf32>
      %38 = arith.maximumf %36, %37 : vector<2x1024xf32>
      %39 = arith.truncf %38 : vector<2x1024xf32> to vector<2x1024xbf16>
      %c0_35 = arith.constant 0 : index
      %c0_36 = arith.constant 0 : index
      %c1024 = arith.constant 1024 : index
      %40 = vector.load %arg8[%c0_35, %c0_36, %c1024] : memref<1x2x8192xbf16, #tpu.memory_space<vmem>>, vector<1x2x1024xbf16>
      %41 = vector.shape_cast %40 : vector<1x2x1024xbf16> to vector<2x1024xbf16>
      %42 = vector.shape_cast %39 : vector<2x1024xbf16> to vector<1x2x1024xbf16>
      tpu.vector_store %arg8[%c0_35, %c0_36, %c1024], %42 {strides = array<i32>} : memref<1x2x8192xbf16, #tpu.memory_space<vmem>>, vector<1x2x1024xbf16>,
      %c2 = arith.constant 2 : index
      %c0_37 = arith.constant 0 : index
      %c0_38 = arith.constant 0 : index
      %43 = vector.load %arg2[%c2, %c0_37, %c0_38] : memref<8x2x12xf32, #tpu.memory_space<vmem>>, vector<1x2x12xf32>
      %44 = vector.shape_cast %43 : vector<1x2x12xf32> to vector<2x12xf32>
      %c0_39 = arith.constant 0 : index
      %c0_40 = arith.constant 0 : index
      %45 = vector.load %arg3[%c0_39, %c0_40] : memref<12x1024xf32, #tpu.memory_space<vmem>>, vector<12x1024xf32>
      %cst_41 = arith.constant dense<0.000000e+00> : vector<2x1024xf32>
      %46 = tpu.matmul %44, %45, %cst_41 {dimension_numbers = #tpu.dot_dimension_numbers<[1], [0], [0], [1], [0, 0, 1, 1], [], []>} : vector<2x12xf32>, vector<12x1024xf32>, vector<2x1024xf32> -> vector<2x1024xf32>
      %c0_42 = arith.constant 0 : index
      %c0_43 = arith.constant 0 : index
      %47 = vector.load %arg4[%c0_42, %c0_43] : memref<1x1024xf32, #tpu.memory_space<vmem>>, vector<1x1024xf32>
      %48 = vector.broadcast %47 : vector<1x1024xf32> to vector<2x1024xf32>
      %49 = arith.addf %46, %48 : vector<2x1024xf32>
      %cst_44 = arith.constant 0.000000e+00 : f32
      %50 = vector.broadcast %cst_44 : f32 to vector<2x1024xf32>
      %51 = arith.maximumf %49, %50 : vector<2x1024xf32>
      %52 = arith.truncf %51 : vector<2x1024xf32> to vector<2x1024xbf16>
      %c0_45 = arith.constant 0 : index
      %c0_46 = arith.constant 0 : index
      %c2048 = arith.constant 2048 : index
      %53 = vector.load %arg8[%c0_45, %c0_46, %c2048] : memref<1x2x8192xbf16, #tpu.memory_space<vmem>>, vector<1x2x1024xbf16>
      %54 = vector.shape_cast %53 : vector<1x2x1024xbf16> to vector<2x1024xbf16>
      %55 = vector.shape_cast %52 : vector<2x1024xbf16> to vector<1x2x1024xbf16>
      tpu.vector_store %arg8[%c0_45, %c0_46, %c2048], %55 {strides = array<i32>} : memref<1x2x8192xbf16, #tpu.memory_space<vmem>>, vector<1x2x1024xbf16>,
      %c3 = arith.constant 3 : index
      %c0_47 = arith.constant 0 : index
      %c0_48 = arith.constant 0 : index
      %56 = vector.load %arg2[%c3, %c0_47, %c0_48] : memref<8x2x12xf32, #tpu.memory_space<vmem>>, vector<1x2x12xf32>
      %57 = vector.shape_cast %56 : vector<1x2x12xf32> to vector<2x12xf32>
      %c0_49 = arith.constant 0 : index
      %c0_50 = arith.constant 0 : index
      %58 = vector.load %arg3[%c0_49, %c0_50] : memref<12x1024xf32, #tpu.memory_space<vmem>>, vector<12x1024xf32>
      %cst_51 = arith.constant dense<0.000000e+00> : vector<2x1024xf32>
      %59 = tpu.matmul %57, %58, %cst_51 {dimension_numbers = #tpu.dot_dimension_numbers<[1], [0], [0], [1], [0, 0, 1, 1], [], []>} : vector<2x12xf32>, vector<12x1024xf32>, vector<2x1024xf32> -> vector<2x1024xf32>
      %c0_52 = arith.constant 0 : index
      %c0_53 = arith.constant 0 : index
      %60 = vector.load %arg4[%c0_52, %c0_53] : memref<1x1024xf32, #tpu.memory_space<vmem>>, vector<1x1024xf32>
      %61 = vector.broadcast %60 : vector<1x1024xf32> to vector<2x1024xf32>
      %62 = arith.addf %59, %61 : vector<2x1024xf32>
      %cst_54 = arith.constant 0.000000e+00 : f32
      %63 = vector.broadcast %cst_54 : f32 to vector<2x1024xf32>
      %64 = arith.maximumf %62, %63 : vector<2x1024xf32>
      %65 = arith.truncf %64 : vector<2x1024xf32> to vector<2x1024xbf16>
      %c0_55 = arith.constant 0 : index
      %c0_56 = arith.constant 0 : index
      %c3072 = arith.constant 3072 : index
      %66 = vector.load %arg8[%c0_55, %c0_56, %c3072] : memref<1x2x8192xbf16, #tpu.memory_space<vmem>>, vector<1x2x1024xbf16>
      %67 = vector.shape_cast %66 : vector<1x2x1024xbf16> to vector<2x1024xbf16>
      %68 = vector.shape_cast %65 : vector<2x1024xbf16> to vector<1x2x1024xbf16>
      tpu.vector_store %arg8[%c0_55, %c0_56, %c3072], %68 {strides = array<i32>} : memref<1x2x8192xbf16, #tpu.memory_space<vmem>>, vector<1x2x1024xbf16>,
      %c4 = arith.constant 4 : index
      %c0_57 = arith.constant 0 : index
      %c0_58 = arith.constant 0 : index
      %69 = vector.load %arg2[%c4, %c0_57, %c0_58] : memref<8x2x12xf32, #tpu.memory_space<vmem>>, vector<1x2x12xf32>
      %70 = vector.shape_cast %69 : vector<1x2x12xf32> to vector<2x12xf32>
      %c0_59 = arith.constant 0 : index
      %c0_60 = arith.constant 0 : index
      %71 = vector.load %arg3[%c0_59, %c0_60] : memref<12x1024xf32, #tpu.memory_space<vmem>>, vector<12x1024xf32>
      %cst_61 = arith.constant dense<0.000000e+00> : vector<2x1024xf32>
      %72 = tpu.matmul %70, %71, %cst_61 {dimension_numbers = #tpu.dot_dimension_numbers<[1], [0], [0], [1], [0, 0, 1, 1], [], []>} : vector<2x12xf32>, vector<12x1024xf32>, vector<2x1024xf32> -> vector<2x1024xf32>
      %c0_62 = arith.constant 0 : index
      %c0_63 = arith.constant 0 : index
      %73 = vector.load %arg4[%c0_62, %c0_63] : memref<1x1024xf32, #tpu.memory_space<vmem>>, vector<1x1024xf32>
      %74 = vector.broadcast %73 : vector<1x1024xf32> to vector<2x1024xf32>
      %75 = arith.addf %72, %74 : vector<2x1024xf32>
      %cst_64 = arith.constant 0.000000e+00 : f32
      %76 = vector.broadcast %cst_64 : f32 to vector<2x1024xf32>
      %77 = arith.maximumf %75, %76 : vector<2x1024xf32>
      %78 = arith.truncf %77 : vector<2x1024xf32> to vector<2x1024xbf16>
      %c0_65 = arith.constant 0 : index
      %c0_66 = arith.constant 0 : index
      %c4096 = arith.constant 4096 : index
      %79 = vector.load %arg8[%c0_65, %c0_66, %c4096] : memref<1x2x8192xbf16, #tpu.memory_space<vmem>>, vector<1x2x1024xbf16>
      %80 = vector.shape_cast %79 : vector<1x2x1024xbf16> to vector<2x1024xbf16>
      %81 = vector.shape_cast %78 : vector<2x1024xbf16> to vector<1x2x1024xbf16>
      tpu.vector_store %arg8[%c0_65, %c0_66, %c4096], %81 {strides = array<i32>} : memref<1x2x8192xbf16, #tpu.memory_space<vmem>>, vector<1x2x1024xbf16>,
      %c5 = arith.constant 5 : index
      %c0_67 = arith.constant 0 : index
      %c0_68 = arith.constant 0 : index
      %82 = vector.load %arg2[%c5, %c0_67, %c0_68] : memref<8x2x12xf32, #tpu.memory_space<vmem>>, vector<1x2x12xf32>
      %83 = vector.shape_cast %82 : vector<1x2x12xf32> to vector<2x12xf32>
      %c0_69 = arith.constant 0 : index
      %c0_70 = arith.constant 0 : index
      %84 = vector.load %arg3[%c0_69, %c0_70] : memref<12x1024xf32, #tpu.memory_space<vmem>>, vector<12x1024xf32>
      %cst_71 = arith.constant dense<0.000000e+00> : vector<2x1024xf32>
      %85 = tpu.matmul %83, %84, %cst_71 {dimension_numbers = #tpu.dot_dimension_numbers<[1], [0], [0], [1], [0, 0, 1, 1], [], []>} : vector<2x12xf32>, vector<12x1024xf32>, vector<2x1024xf32> -> vector<2x1024xf32>
      %c0_72 = arith.constant 0 : index
      %c0_73 = arith.constant 0 : index
      %86 = vector.load %arg4[%c0_72, %c0_73] : memref<1x1024xf32, #tpu.memory_space<vmem>>, vector<1x1024xf32>
      %87 = vector.broadcast %86 : vector<1x1024xf32> to vector<2x1024xf32>
      %88 = arith.addf %85, %87 : vector<2x1024xf32>
      %cst_74 = arith.constant 0.000000e+00 : f32
      %89 = vector.broadcast %cst_74 : f32 to vector<2x1024xf32>
      %90 = arith.maximumf %88, %89 : vector<2x1024xf32>
      %91 = arith.truncf %90 : vector<2x1024xf32> to vector<2x1024xbf16>
      %c0_75 = arith.constant 0 : index
      %c0_76 = arith.constant 0 : index
      %c5120 = arith.constant 5120 : index
      %92 = vector.load %arg8[%c0_75, %c0_76, %c5120] : memref<1x2x8192xbf16, #tpu.memory_space<vmem>>, vector<1x2x1024xbf16>
      %93 = vector.shape_cast %92 : vector<1x2x1024xbf16> to vector<2x1024xbf16>
      %94 = vector.shape_cast %91 : vector<2x1024xbf16> to vector<1x2x1024xbf16>
      tpu.vector_store %arg8[%c0_75, %c0_76, %c5120], %94 {strides = array<i32>} : memref<1x2x8192xbf16, #tpu.memory_space<vmem>>, vector<1x2x1024xbf16>,
      %c6 = arith.constant 6 : index
      %c0_77 = arith.constant 0 : index
      %c0_78 = arith.constant 0 : index
      %95 = vector.load %arg2[%c6, %c0_77, %c0_78] : memref<8x2x12xf32, #tpu.memory_space<vmem>>, vector<1x2x12xf32>
      %96 = vector.shape_cast %95 : vector<1x2x12xf32> to vector<2x12xf32>
      %c0_79 = arith.constant 0 : index
      %c0_80 = arith.constant 0 : index
      %97 = vector.load %arg3[%c0_79, %c0_80] : memref<12x1024xf32, #tpu.memory_space<vmem>>, vector<12x1024xf32>
      %cst_81 = arith.constant dense<0.000000e+00> : vector<2x1024xf32>
      %98 = tpu.matmul %96, %97, %cst_81 {dimension_numbers = #tpu.dot_dimension_numbers<[1], [0], [0], [1], [0, 0, 1, 1], [], []>} : vector<2x12xf32>, vector<12x1024xf32>, vector<2x1024xf32> -> vector<2x1024xf32>
      %c0_82 = arith.constant 0 : index
      %c0_83 = arith.constant 0 : index
      %99 = vector.load %arg4[%c0_82, %c0_83] : memref<1x1024xf32, #tpu.memory_space<vmem>>, vector<1x1024xf32>
      %100 = vector.broadcast %99 : vector<1x1024xf32> to vector<2x1024xf32>
      %101 = arith.addf %98, %100 : vector<2x1024xf32>
      %cst_84 = arith.constant 0.000000e+00 : f32
      %102 = vector.broadcast %cst_84 : f32 to vector<2x1024xf32>
      %103 = arith.maximumf %101, %102 : vector<2x1024xf32>
      %104 = arith.truncf %103 : vector<2x1024xf32> to vector<2x1024xbf16>
      %c0_85 = arith.constant 0 : index
      %c0_86 = arith.constant 0 : index
      %c6144 = arith.constant 6144 : index
      %105 = vector.load %arg8[%c0_85, %c0_86, %c6144] : memref<1x2x8192xbf16, #tpu.memory_space<vmem>>, vector<1x2x1024xbf16>
      %106 = vector.shape_cast %105 : vector<1x2x1024xbf16> to vector<2x1024xbf16>
      %107 = vector.shape_cast %104 : vector<2x1024xbf16> to vector<1x2x1024xbf16>
      tpu.vector_store %arg8[%c0_85, %c0_86, %c6144], %107 {strides = array<i32>} : memref<1x2x8192xbf16, #tpu.memory_space<vmem>>, vector<1x2x1024xbf16>,
      %c7 = arith.constant 7 : index
      %c0_87 = arith.constant 0 : index
      %c0_88 = arith.constant 0 : index
      %108 = vector.load %arg2[%c7, %c0_87, %c0_88] : memref<8x2x12xf32, #tpu.memory_space<vmem>>, vector<1x2x12xf32>
      %109 = vector.shape_cast %108 : vector<1x2x12xf32> to vector<2x12xf32>
      %c0_89 = arith.constant 0 : index
      %c0_90 = arith.constant 0 : index
      %110 = vector.load %arg3[%c0_89, %c0_90] : memref<12x1024xf32, #tpu.memory_space<vmem>>, vector<12x1024xf32>
      %cst_91 = arith.constant dense<0.000000e+00> : vector<2x1024xf32>
      %111 = tpu.matmul %109, %110, %cst_91 {dimension_numbers = #tpu.dot_dimension_numbers<[1], [0], [0], [1], [0, 0, 1, 1], [], []>} : vector<2x12xf32>, vector<12x1024xf32>, vector<2x1024xf32> -> vector<2x1024xf32>
      %c0_92 = arith.constant 0 : index
      %c0_93 = arith.constant 0 : index
      %112 = vector.load %arg4[%c0_92, %c0_93] : memref<1x1024xf32, #tpu.memory_space<vmem>>, vector<1x1024xf32>
      %113 = vector.broadcast %112 : vector<1x1024xf32> to vector<2x1024xf32>
      %114 = arith.addf %111, %113 : vector<2x1024xf32>
      %cst_94 = arith.constant 0.000000e+00 : f32
      %115 = vector.broadcast %cst_94 : f32 to vector<2x1024xf32>
      %116 = arith.maximumf %114, %115 : vector<2x1024xf32>
      %117 = arith.truncf %116 : vector<2x1024xf32> to vector<2x1024xbf16>
      %c0_95 = arith.constant 0 : index
      %c0_96 = arith.constant 0 : index
      %c7168 = arith.constant 7168 : index
      %118 = vector.load %arg8[%c0_95, %c0_96, %c7168] : memref<1x2x8192xbf16, #tpu.memory_space<vmem>>, vector<1x2x1024xbf16>
      %119 = vector.shape_cast %118 : vector<1x2x1024xbf16> to vector<2x1024xbf16>
      %120 = vector.shape_cast %117 : vector<2x1024xbf16> to vector<1x2x1024xbf16>
      tpu.vector_store %arg8[%c0_95, %c0_96, %c7168], %120 {strides = array<i32>} : memref<1x2x8192xbf16, #tpu.memory_space<vmem>>, vector<1x2x1024xbf16>,
    } else {
    }
    %c0 = arith.constant 0 : index
    %c0_1 = arith.constant 0 : index
    %3 = vector.load %arg7[%c0, %c0_1] : memref<2x128xf32, #tpu.memory_space<vmem>>, vector<2x128xf32>
    %4 = arith.index_cast %arg1 : i32 to index
    %c0_2 = arith.constant 0 : index
    %c0_3 = arith.constant 0 : index
    %5 = vector.load %arg8[%4, %c0_2, %c0_3] : memref<1x2x8192xbf16, #tpu.memory_space<vmem>>, vector<1x2x8192xbf16>
    %6 = vector.shape_cast %5 : vector<1x2x8192xbf16> to vector<2x8192xbf16>
    %c0_4 = arith.constant 0 : index
    %c0_5 = arith.constant 0 : index
    %c0_6 = arith.constant 0 : index
    %c0_7 = arith.constant 0 : index
    %7 = vector.load %arg5[%c0_4, %c0_5, %c0_6, %c0_7] : memref<1x1x8192x128xbf16, #tpu.memory_space<vmem>>, vector<1x1x8192x128xbf16>
    %8 = vector.shape_cast %7 : vector<1x1x8192x128xbf16> to vector<8192x128xbf16>
    %cst = arith.constant dense<0.000000e+00> : vector<2x128xf32>
    %9 = tpu.matmul %6, %8, %cst {dimension_numbers = #tpu.dot_dimension_numbers<[1], [0], [0], [1], [0, 0, 1, 1], [], []>} : vector<2x8192xbf16>, vector<8192x128xbf16>, vector<2x128xf32> -> vector<2x128xf32>
    %10 = arith.addf %3, %9 : vector<2x128xf32>
    %c0_8 = arith.constant 0 : index
    %c0_9 = arith.constant 0 : index
    %11 = vector.load %arg7[%c0_8, %c0_9] : memref<2x128xf32, #tpu.memory_space<vmem>>, vector<2x128xf32>
    tpu.vector_store %arg7[%c0_8, %c0_9], %10 {strides = array<i32>} : memref<2x128xf32, #tpu.memory_space<vmem>>, vector<2x128xf32>,
    %c0_i32_10 = arith.constant 0 : i32
    %12 = arith.cmpi eq, %arg1, %c0_i32_10 : i32
    %13 = arith.extui %12 : i1 to i32
    %c0_i32_11 = arith.constant 0 : i32
    %14 = arith.cmpi ne, %13, %c0_i32_11 : i32
    scf.if %14 {
      %c0_12 = arith.constant 0 : index
      %c0_13 = arith.constant 0 : index
      %15 = vector.load %arg7[%c0_12, %c0_13] : memref<2x128xf32, #tpu.memory_space<vmem>>, vector<2x128xf32>
      %c0_14 = arith.constant 0 : index
      %c0_15 = arith.constant 0 : index
      %16 = vector.load %arg6[%c0_14, %c0_15] : memref<1x128xf32, #tpu.memory_space<vmem>>, vector<1x128xf32>
      %17 = vector.broadcast %16 : vector<1x128xf32> to vector<2x128xf32>
      %18 = arith.addf %15, %17 : vector<2x128xf32>
      %c0_16 = arith.constant 0 : index
      %c0_17 = arith.constant 0 : index
      %19 = vector.load %arg7[%c0_16, %c0_17] : memref<2x128xf32, #tpu.memory_space<vmem>>, vector<2x128xf32>
      tpu.vector_store %arg7[%c0_16, %c0_17], %18 {strides = array<i32>} : memref<2x128xf32, #tpu.memory_space<vmem>>, vector<2x128xf32>,
    } else {
    }
    return
  }
  func.func @transform_0(%arg0: i32, %arg1: i32) -> (i32, i32, i32) {
    %c0_i32 = arith.constant 0 : i32
    %c0_i32_0 = arith.constant 0 : i32
    %c0_i32_1 = arith.constant 0 : i32
    %c0_i32_2 = arith.constant 0 : i32
    return %c0_i32, %c0_i32_0, %c0_i32_1 : i32, i32, i32
  }
  func.func @transform_1(%arg0: i32, %arg1: i32) -> (i32, i32) {
    %c0_i32 = arith.constant 0 : i32
    %c0_i32_0 = arith.constant 0 : i32
    %c0_i32_1 = arith.constant 0 : i32
    return %c0_i32, %c0_i32_0 : i32, i32
  }
  func.func @transform_2(%arg0: i32, %arg1: i32) -> (i32, i32) {
    %c0_i32 = arith.constant 0 : i32
    %c0_i32_0 = arith.constant 0 : i32
    %c0_i32_1 = arith.constant 0 : i32
    return %c0_i32, %c0_i32_0 : i32, i32
  }
  func.func @transform_3(%arg0: i32, %arg1: i32) -> (i32, i32, i32, i32) {
    %c0_i32 = arith.constant 0 : i32
    %c0_i32_0 = arith.constant 0 : i32
    %c0_i32_1 = arith.constant 0 : i32
    return %arg1, %arg0, %c0_i32, %c0_i32_0 : i32, i32, i32, i32
  }
  func.func @transform_4(%arg0: i32, %arg1: i32) -> (i32, i32) {
    %c0_i32 = arith.constant 0 : i32
    %c0_i32_0 = arith.constant 0 : i32
    return %c0_i32, %arg0 : i32, i32
  }
  func.func @transform_5(%arg0: i32, %arg1: i32) -> (i32, i32) {
    %c0_i32 = arith.constant 0 : i32
    %c0_i32_0 = arith.constant 0 : i32
    return %c0_i32, %arg0 : i32, i32
  }
}

</mosaic_0001>

<bundles_post_ra>
// kernel: tpu_custom_call.1
= control target key start
LH: loop header
LB: loop body
LE: loop exit
PB: predicated region body
PF: predicated region fallthrough
CT: control target
= control target key end

     0   :  { %10 = vsyncpa [#allocation4], 0  ;;  %s10764_s0 = inlined_call_operand.hbm [shape: f32[8,2,12], index: 0, kind: input, shape index: {}]   ;;  %s10765_s1 = inlined_call_operand.hbm [shape: f32[12,1024], index: 1, kind: input, shape index: {}]   ;;  %s10766_s2 = inlined_call_operand.hbm [shape: f32[1,1024], index: 2, kind: input, shape index: {}]   ;;  %s10767_s3 = inlined_call_operand.hbm [shape: bf16[1,1,8192,128], index: 3, kind: input, shape index: {}]   ;;  %s10768_s4 = inlined_call_operand.hbm [shape: f32[1,128], index: 4, kind: input, shape index: {}]   ;;  %s10769_s5 = inlined_call_operand.hbm [shape: f32[2,128], index: 5, kind: output, shape index: {}]  }
   0x1   :  { %11 = vsyncpa [#allocation7], 0 }
   0x2   :  { %12 = vsyncpa [#allocation10], 0  ;;  %s31_s20 = sshll.u32 %s10765_s1, 4  ;;  %s32_s20 = int_to_ptr.hbm [resolvable:$true] %s31_s20 }
   0x3   :  { %13 = vsyncpa [#allocation5], 0  ;;  %s10178_s21 = smov [#allocation6]   ;;  %s55_s25 = sshll.u32 %s10767_s3, 4  ;;  %s56_s25 = int_to_ptr.hbm [resolvable:$true] %s55_s25 }
   0x4   :  { %s33_s22 = sshll.u32 %s10178_s21, 4  ;;  %s10179_s26 = smov 1024   ;;  %s34_s22 = int_to_ptr.vmem [resolvable:$true] %s33_s22 }
   0x5   :  { %s10180_s27 = smov 64   ;;  %s10181_s28 = smov [#allocation9]  }
   0x6   :  { %39 = dma.hbm_to_vmem [thread:$0]  %s32_s20, 2048, %s34_s22, [#allocation7], %s10179_s26, %s10179_s26, %s10180_s27  }
   0x7   :  { %s57_s29 = sshll.u32 %s10181_s28, 4  ;;  %s18_s1 = sshll.u32 %s10764_s0, 4  ;;  %s58_s29 = int_to_ptr.vmem [resolvable:$true] %s57_s29  ;;  %s19_s1 = int_to_ptr.hbm [resolvable:$true] %s18_s1 }
   0x8   :  { %s10182_s7 = smov 4   ;;  %s10183_s8 = smov [#allocation3]  }
   0x9   :  { %63 = dma.hbm_to_vmem [thread:$0]  %s56_s25, 65536, %s58_s29, [#allocation10], %s10180_s27, %s10180_s27, %s10182_s7  }
   0xa   :  { %s20_s9 = sshll.u32 %s10183_s8, 4  ;;  %s10184_s10 = smov 32   ;;  %s21_s9 = int_to_ptr.vmem [resolvable:$true] %s20_s9 }
   0xb   :  { %s10185_s11 = smov 2   ;;  %s45_s13 = sshll.u32 %s10766_s2, 4  ;;  %s46_s13 = int_to_ptr.hbm [resolvable:$true] %s45_s13 }
   0xc   :  { %26 = dma.hbm_to_vmem [thread:$0]  %s19_s1, 256, %s21_s9, [#allocation4], %s10184_s10, %s10184_s10, %s10185_s11  }
   0xd   :  { %s10186_s14 = smov [#allocation8]   ;;  %s69_s0 = sshll.u32 %s10768_s4, 4  ;;  %s70_s0 = int_to_ptr.hbm [resolvable:$true] %s69_s0 }
   0xe   :  { %s47_s15 = sshll.u32 %s10186_s14, 4  ;;  %s10187_s18 = smov [#allocation11]   ;;  %s48_s15 = int_to_ptr.vmem [resolvable:$true] %s47_s15 }
   0xf   :  { %50 = dma.hbm_to_vmem [thread:$0]  %s46_s13, 128, %s48_s15, [#allocation7]  }
  0x10   :  { %s71_s19 = sshll.u32 %s10187_s18, 4  ;;  %s72_s19 = int_to_ptr.vmem [resolvable:$true] %s71_s19 }
  0x11   :  { %74 = dma.hbm_to_vmem [thread:$0]  %s70_s0, 16, %s72_s19, [#allocation10]  }
  0x12   :  { %10170 = dma.done.wait [#allocation4], 256  }
  0x13   :  { %10171 = vsyncadd [#allocation4], 4294967040 }
  0x14   :  { %10172 = dma.done.wait [#allocation7], 2176  }
  0x15   :  { %10173 = vsyncadd [#allocation7], 4294965120 }
  0x16   :  { %10174 = dma.done.wait [#allocation10], 65552  }
  0x17   :  { %10175 = vsyncadd [#allocation10], 4294901744  ;;  %vm139_vm0 = vcmask 1043456   ;;  %v109_v0 = vld [vmem:[#allocation6 + $0x40] sm:$0xf]  ;;  %v10239_v5 = vld [vmem:[#allocation6 + $0x8] sm:$0xff] }
  0x18   :  { %v110_v1 = vld [vmem:[#allocation6 + $0x48] sm:$0xf]  ;;  %v111_v2 = vld [vmem:[#allocation6 + $0x50] sm:$0xf]  ;;  %7325 = vmatpush.msk.msra.mxu0 %vm139_vm0, %v109_v0  ;;  %v112_v3 = vld [vmem:[#allocation6 + $0x58] sm:$0xf] }
  0x19   :  { %7327 = vmatpush.msk.msra.mxu1 %vm139_vm0, %v110_v1  ;;  %v10237_v4 = vld [vmem:[#allocation6] sm:$0xff]  ;;  %7329 = vmatpush.msk.msra.mxu2 %vm139_vm0, %v111_v2  ;;  %v10243_v6 = vld [vmem:[#allocation6 + $0x10] sm:$0xff]  ;;  %v10245_v7 = vld [vmem:[#allocation6 + $0x18] sm:$0xff]  ;;  %vm135_vm1 = vcmask 97280   ;;  %vm351_vm2 = vcmask 1042434   ;;  %vm347_vm3 = vcmask 1040384  }
  0x1a   :  { %7331 = vmatpush.msk.msra.mxu3 %vm139_vm0, %v112_v3  ;;  %v100_v8 = vld [vmem:[#allocation3] sm:$0x3]  ;;  %179 = vmatpush.msra.mxu0 %v10237_v4  ;;  %v113_v9 = vld [vmem:[#allocation6 + $0x60] sm:$0xf]  ;;  %v114_v10 = vld [vmem:[#allocation6 + $0x68] sm:$0xf] }
  0x1b   :  { %199 = vmatpush.msra.mxu1 %v10239_v5  ;;  %219 = vmatpush.msra.mxu2 %v10243_v6  ;;  %v115_v11 = vld [vmem:[#allocation6 + $0x70] sm:$0xf]  ;;  %v116_v12 = vld [vmem:[#allocation6 + $0x78] sm:$0xf]  ;;  %v10255_v13 = vld [vmem:[#allocation6 + $0x20] sm:$0xff]  ;;  %vm355_vm4 = vcmask 1041408  }
  0x1c   :  { %239 = vmatpush.msra.mxu3 %v10245_v7  ;;  %7326 = vmatmul.msk.f32.vlgmr.msra.gmra.mxu0 %vm135_vm1, %v100_v8  ;;  %v10257_v14 = vld [vmem:[#allocation6 + $0x28] sm:$0xff]  ;;  %v10261_v15 = vld [vmem:[#allocation6 + $0x30] sm:$0xff]  ;;  %v10263_v16 = vld [vmem:[#allocation6 + $0x38] sm:$0xff]  ;;  %vm357_vm5 = vcmask 1044484   ;;  %vm361_vm6 = vcmask 1046534   ;;  %vm365_vm7 = vcmask 1045508  }
  0x1d   :  { %7328 = vmatmul.msk.f32.vlgmr.msra.gmra.mxu1 %vm135_vm1, %v100_v8  ;;  %7330 = vmatmul.msk.f32.vlgmr.msra.gmra.mxu2 %vm135_vm1, %v100_v8  ;;  %v380_v17 = vld [vmem:[#allocation6 + $0x40] sm:$0xf]  ;;  %v381_v18 = vld [vmem:[#allocation6 + $0x48] sm:$0xf]  ;;  %v382_v19 = vld [vmem:[#allocation6 + $0x50] sm:$0xf] }
  0x1e   :  { %7332 = vmatmul.msk.f32.vlgmr.msra.gmra.mxu3 %vm135_vm1, %v100_v8  ;;  %7333 = vmatpush.msk.msrb.mxu0 %vm139_vm0, %v113_v9  ;;  %v383_v20 = vld [vmem:[#allocation6 + $0x58] sm:$0xf]  ;;  %v384_v21 = vld [vmem:[#allocation6 + $0x60] sm:$0xf]  ;;  %v385_v22 = vld [vmem:[#allocation6 + $0x68] sm:$0xf] }
  0x1f   :  { %7335 = vmatpush.msk.msrb.mxu1 %vm139_vm0, %v114_v10  ;;  %7337 = vmatpush.msk.msrb.mxu2 %vm139_vm0, %v115_v11  ;;  %v386_v23 = vld [vmem:[#allocation6 + $0x70] sm:$0xf]  ;;  %v387_v24 = vld [vmem:[#allocation6 + $0x78] sm:$0xf]  ;;  %v643_v26 = vld [vmem:[#allocation6 + $0x40] sm:$0xf] }
  0x20   :  { %7339 = vmatpush.msk.msrb.mxu3 %vm139_vm0, %v116_v12  ;;  %259 = vmatpush.msrb.mxu0 %v10255_v13  ;;  %v371_v25 = vld [vmem:[#allocation3 + $0x2] sm:$0x3]  ;;  %v644_v27 = vld [vmem:[#allocation6 + $0x48] sm:$0xf]  ;;  %v646_v29 = vld [vmem:[#allocation6 + $0x58] sm:$0xf] }
  0x21   :  { %279 = vmatpush.msrb.mxu1 %v10257_v14  ;;  %299 = vmatpush.msrb.mxu2 %v10261_v15  ;;  %v645_v28 = vld [vmem:[#allocation6 + $0x50] sm:$0xf]  ;;  %v647_v30 = vld [vmem:[#allocation6 + $0x60] sm:$0xf]  ;;  %v648_v31 = vld [vmem:[#allocation6 + $0x68] sm:$0xf] }
  0x22   :  { %319 = vmatpush.msrb.mxu3 %v10263_v16  ;;  %7341 = vmatpush.msk.msra.mxu0 %vm139_vm0, %v380_v17  ;;  %v649_v32 = vld [vmem:[#allocation6 + $0x70] sm:$0xf]  ;;  %v650_v33 = vld [vmem:[#allocation6 + $0x78] sm:$0xf]  ;;  %v634_v34 = vld [vmem:[#allocation3 + $0x4] sm:$0x3] }
  0x23   :  { %7343 = vmatpush.msk.msra.mxu1 %vm139_vm0, %v381_v18  ;;  %7345 = vmatpush.msk.msra.mxu2 %vm139_vm0, %v382_v19  ;;  %v906_v35 = vld [vmem:[#allocation6 + $0x40] sm:$0xf]  ;;  %v907_v36 = vld [vmem:[#allocation6 + $0x48] sm:$0xf]  ;;  %v908_v37 = vld [vmem:[#allocation6 + $0x50] sm:$0xf] }
  0x24   :  { %7347 = vmatpush.msk.msra.mxu3 %vm139_vm0, %v383_v20  ;;  %7334 = vmatmul.msk.f32.vlgmr.msrb.gmra.mxu0 %vm135_vm1, %v100_v8  ;;  %v909_v38 = vld [vmem:[#allocation6 + $0x58] sm:$0xf]  ;;  %v910_v39 = vld [vmem:[#allocation6 + $0x60] sm:$0xf]  ;;  %v911_v40 = vld [vmem:[#allocation6 + $0x68] sm:$0xf] }
  0x25   :  { %7336 = vmatmul.msk.f32.vlgmr.msrb.gmra.mxu1 %vm135_vm1, %v100_v8  ;;  %7338 = vmatmul.msk.f32.vlgmr.msrb.gmra.mxu2 %vm135_vm1, %v100_v8  ;;  %v912_v41 = vld [vmem:[#allocation6 + $0x70] sm:$0xf]  ;;  %v913_v42 = vld [vmem:[#allocation6 + $0x78] sm:$0xf]  ;;  %v897_v43 = vld [vmem:[#allocation3 + $0x6] sm:$0x3] }
  0x26   :  { %7340 = vmatmul.msk.f32.vlgmr.msrb.gmra.mxu3 %vm135_vm1, %v100_v8  ;;  %448 = vmatpush.msra.mxu0 %v10237_v4  ;;  %v1169_v44 = vld [vmem:[#allocation6 + $0x40] sm:$0xf]  ;;  %v1170_v45 = vld [vmem:[#allocation6 + $0x48] sm:$0xf]  ;;  %v1171_v46 = vld [vmem:[#allocation6 + $0x50] sm:$0xf] }
  0x27   :  { %468 = vmatpush.msra.mxu1 %v10239_v5  ;;  %488 = vmatpush.msra.mxu2 %v10243_v6  ;;  %v1172_v47 = vld [vmem:[#allocation6 + $0x58] sm:$0xf]  ;;  %v1173_v48 = vld [vmem:[#allocation6 + $0x60] sm:$0xf]  ;;  %v1174_v49 = vld [vmem:[#allocation6 + $0x68] sm:$0xf] }
  0x28   :  { %508 = vmatpush.msra.mxu3 %v10245_v7  ;;  %7349 = vmatpush.msk.msrb.mxu0 %vm139_vm0, %v384_v21  ;;  %v1175_v50 = vld [vmem:[#allocation6 + $0x70] sm:$0xf]  ;;  %v1176_v51 = vld [vmem:[#allocation6 + $0x78] sm:$0xf]  ;;  %v1432_v53 = vld [vmem:[#allocation6 + $0x40] sm:$0xf] }
  0x29   :  { %7351 = vmatpush.msk.msrb.mxu1 %vm139_vm0, %v385_v22  ;;  %7353 = vmatpush.msk.msrb.mxu2 %vm139_vm0, %v386_v23  ;;  %v1160_v52 = vld [vmem:[#allocation3 + $0x8] sm:$0x3]  ;;  %v1433_v54 = vld [vmem:[#allocation6 + $0x48] sm:$0xf]  ;;  %v1434_v55 = vld [vmem:[#allocation6 + $0x50] sm:$0xf] }
  0x2a   :  { %7355 = vmatpush.msk.msrb.mxu3 %vm139_vm0, %v387_v24  ;;  %528 = vmatpush.msrb.mxu0 %v10255_v13  ;;  %v1435_v56 = vld [vmem:[#allocation6 + $0x58] sm:$0xf]  ;;  %v1436_v57 = vld [vmem:[#allocation6 + $0x60] sm:$0xf]  ;;  %v1437_v58 = vld [vmem:[#allocation6 + $0x68] sm:$0xf] }
  0x2b   :  { %548 = vmatpush.msrb.mxu1 %v10257_v14  ;;  %568 = vmatpush.msrb.mxu2 %v10261_v15  ;;  %v1438_v59 = vld [vmem:[#allocation6 + $0x70] sm:$0xf]  ;;  %v1439_v60 = vld [vmem:[#allocation6 + $0x78] sm:$0xf]  ;;  %v1695_v62 = vld [vmem:[#allocation6 + $0x40] sm:$0xf] }
  0x2c   :  { %588 = vmatpush.msrb.mxu3 %v10263_v16  ;;  %7342 = vmatmul.msk.f32.vlgmr.msra.gmra.mxu0 %vm135_vm1, %v371_v25  ;;  %v1423_v61 = vld [vmem:[#allocation3 + $0xa] sm:$0x3]  ;;  %v1696_v63 = vld [vmem:[#allocation6 + $0x48] sm:$0xf]  ;;  %v1697_v0 = vld [vmem:[#allocation6 + $0x50] sm:$0xf] }
  0x2d   :  { %7344 = vmatmul.msk.f32.vlgmr.msra.gmra.mxu1 %vm135_vm1, %v371_v25  ;;  %7346 = vmatmul.msk.f32.vlgmr.msra.gmra.mxu2 %vm135_vm1, %v371_v25  ;;  %v1698_v1 = vld [vmem:[#allocation6 + $0x58] sm:$0xf]  ;;  %v1699_v2 = vld [vmem:[#allocation6 + $0x60] sm:$0xf]  ;;  %v1700_v3 = vld [vmem:[#allocation6 + $0x68] sm:$0xf] }
  0x2e   :  { %7348 = vmatmul.msk.f32.vlgmr.msra.gmra.mxu3 %vm135_vm1, %v371_v25  ;;  %7357 = vmatpush.msk.msra.mxu0 %vm139_vm0, %v643_v26  ;;  %v1701_v8 = vld [vmem:[#allocation6 + $0x70] sm:$0xf]  ;;  %v1702_v9 = vld [vmem:[#allocation6 + $0x78] sm:$0xf]  ;;  %v1686_v10 = vld [vmem:[#allocation3 + $0xc] sm:$0x3] }
  0x2f   :  { %7359 = vmatpush.msk.msra.mxu1 %vm139_vm0, %v644_v27  ;;  %7361 = vmatpush.msk.msra.mxu2 %vm139_vm0, %v645_v28  ;;  %v1958_v11 = vld [vmem:[#allocation6 + $0x40] sm:$0xf]  ;;  %v1959_v12 = vld [vmem:[#allocation6 + $0x48] sm:$0xf]  ;;  %v1960_v17 = vld [vmem:[#allocation6 + $0x50] sm:$0xf] }
  0x30   :  { %7363 = vmatpush.msk.msra.mxu3 %vm139_vm0, %v646_v29  ;;  %711 = vmatpush.msra.mxu0 %v10237_v4  ;;  %v1961_v18 = vld [vmem:[#allocation6 + $0x58] sm:$0xf]  ;;  %v1962_v19 = vld [vmem:[#allocation6 + $0x60] sm:$0xf]  ;;  %v1963_v20 = vld [vmem:[#allocation6 + $0x68] sm:$0xf] }
  0x31   :  { %731 = vmatpush.msra.mxu1 %v10239_v5  ;;  %751 = vmatpush.msra.mxu2 %v10243_v6  ;;  %v1964_v21 = vld [vmem:[#allocation6 + $0x70] sm:$0xf]  ;;  %v1965_v22 = vld [vmem:[#allocation6 + $0x78] sm:$0xf]  ;;  %v9532_v23 = vld [vmem:[#allocation9 + $0xf8] sm:$0xff]  ;;  %s10189_s2 = smov [#allocation12]  }
  0x32   :  { %771 = vmatpush.msra.mxu3 %v10245_v7  ;;  %v9506_v24 = vld [vmem:[#allocation9 + $0x28] sm:$0xff]  ;;  %v9505_v28 = vld [vmem:[#allocation9 + $0x20] sm:$0xff]  ;;  %s7311_s4 = sshll.u32 %s10189_s2, 4  ;;  %s7313_s22 = sshll.u32 %s10769_s5, 4  ;;  %s7312_s4 = int_to_ptr.vmem [resolvable:$true] %s7311_s4  ;;  %s7314_s22 = int_to_ptr.hbm [resolvable:$true] %s7313_s22 }
  0x33   :  { %v9522_v26 = vld [vmem:[#allocation9 + $0xa8] sm:$0xff]  ;;  %v9513_v29 = vld [vmem:[#allocation9 + $0x60] sm:$0xff] }
  0x34   :  { %7350 = vmatmul.msk.f32.vlgmr.msrb.gmra.mxu0 %vm135_vm1, %v371_v25  ;;  %v9530_v27 = vld [vmem:[#allocation9 + $0xe8] sm:$0xff] }
  0x35   :  { %7352 = vmatmul.msk.f32.vlgmr.msrb.gmra.mxu1 %vm135_vm1, %v371_v25  ;;  %7354 = vmatmul.msk.f32.vlgmr.msrb.gmra.mxu2 %vm135_vm1, %v371_v25 }
  0x36   :  { %7356 = vmatmul.msk.f32.vlgmr.msrb.gmra.mxu3 %vm135_vm1, %v371_v25  ;;  %7365 = vmatpush.msk.msrb.mxu0 %vm139_vm0, %v647_v30  ;;  %v9514_v25 = vld [vmem:[#allocation9 + $0x68] sm:$0xff]  ;;  %v9521_v30 = vld [vmem:[#allocation9 + $0xa0] sm:$0xff] }
  0x37   :  { %7367 = vmatpush.msk.msrb.mxu1 %vm139_vm0, %v648_v31  ;;  %7369 = vmatpush.msk.msrb.mxu2 %vm139_vm0, %v649_v32  ;;  %v9529_v31 = vld [vmem:[#allocation9 + $0xe0] sm:$0xff]  ;;  %v117_v32 = vld [vmem:[#allocation8] sm:$0xff] }
  0x38   :  { %7371 = vmatpush.msk.msrb.mxu3 %vm139_vm0, %v650_v33  ;;  %791 = vmatpush.msrb.mxu0 %v10255_v13 }
  0x39   :  { %811 = vmatpush.msrb.mxu1 %v10257_v14  ;;  %831 = vmatpush.msrb.mxu2 %v10261_v15 }
  0x3a   :  { %851 = vmatpush.msrb.mxu3 %v10263_v16 }
  0x3c   :  { %7358 = vmatmul.msk.f32.vlgmr.msra.gmra.mxu0 %vm135_vm1, %v634_v34 }
  0x3d   :  { %7360 = vmatmul.msk.f32.vlgmr.msra.gmra.mxu1 %vm135_vm1, %v634_v34  ;;  %7362 = vmatmul.msk.f32.vlgmr.msra.gmra.mxu2 %vm135_vm1, %v634_v34 }
  0x3e   :  { %7364 = vmatmul.msk.f32.vlgmr.msra.gmra.mxu3 %vm135_vm1, %v634_v34  ;;  %7373 = vmatpush.msk.msra.mxu0 %vm139_vm0, %v906_v35  ;;  %v9504_v35 = vld [vmem:[#allocation9 + $0x18] sm:$0xff] }
  0x3f   :  { %7375 = vmatpush.msk.msra.mxu1 %vm139_vm0, %v907_v36  ;;  %7377 = vmatpush.msk.msra.mxu2 %vm139_vm0, %v908_v37  ;;  %v9512_v36 = vld [vmem:[#allocation9 + $0x58] sm:$0xff]  ;;  %v10443_v37 = vperm.slane %v117_v32, 0 }
  0x40   :  { %7379 = vmatpush.msk.msra.mxu3 %vm139_vm0, %v909_v38  ;;  %974 = vmatpush.msra.mxu0 %v10237_v4  ;;  %v10445_v38 = vperm.slane %v117_v32, 1 }
  0x41   :  { %994 = vmatpush.msra.mxu1 %v10239_v5  ;;  %1014 = vmatpush.msra.mxu2 %v10243_v6 }
  0x42   :  { %1034 = vmatpush.msra.mxu3 %v10245_v7 }
  0x44   :  { %7366 = vmatmul.msk.f32.vlgmr.msrb.gmra.mxu0 %vm135_vm1, %v634_v34 }
  0x45   :  { %7368 = vmatmul.msk.f32.vlgmr.msrb.gmra.mxu1 %vm135_vm1, %v634_v34  ;;  %7370 = vmatmul.msk.f32.vlgmr.msrb.gmra.mxu2 %vm135_vm1, %v634_v34 }
  0x46   :  { %7372 = vmatmul.msk.f32.vlgmr.msrb.gmra.mxu3 %vm135_vm1, %v634_v34  ;;  %7381 = vmatpush.msk.msrb.mxu0 %vm139_vm0, %v910_v39  ;;  %v9520_v39 = vld [vmem:[#allocation9 + $0x98] sm:$0xff] }
  0x47   :  { %7383 = vmatpush.msk.msrb.mxu1 %vm139_vm0, %v911_v40  ;;  %7385 = vmatpush.msk.msrb.mxu2 %vm139_vm0, %v912_v41  ;;  %v9528_v40 = vld [vmem:[#allocation9 + $0xd8] sm:$0xff]  ;;  %v10447_v41 = vperm.slane %v117_v32, 2 }
  0x48   :  { %7387 = vmatpush.msk.msrb.mxu3 %vm139_vm0, %v913_v42  ;;  %1054 = vmatpush.msrb.mxu0 %v10255_v13  ;;  %v10449_v42 = vperm.slane %v117_v32, 3 }
  0x49   :  { %1074 = vmatpush.msrb.mxu1 %v10257_v14  ;;  %1094 = vmatpush.msrb.mxu2 %v10261_v15 }
  0x4a   :  { %1114 = vmatpush.msrb.mxu3 %v10263_v16 }
  0x4c   :  { %7374 = vmatmul.msk.f32.vlgmr.msra.gmra.mxu0 %vm135_vm1, %v897_v43 }
  0x4d   :  { %7376 = vmatmul.msk.f32.vlgmr.msra.gmra.mxu1 %vm135_vm1, %v897_v43  ;;  %7378 = vmatmul.msk.f32.vlgmr.msra.gmra.mxu2 %vm135_vm1, %v897_v43 }
  0x4e   :  { %7380 = vmatmul.msk.f32.vlgmr.msra.gmra.mxu3 %vm135_vm1, %v897_v43  ;;  %7389 = vmatpush.msk.msra.mxu0 %vm139_vm0, %v1169_v44  ;;  %v9511_v44 = vld [vmem:[#allocation9 + $0x50] sm:$0xff] }
  0x4f   :  { %7391 = vmatpush.msk.msra.mxu1 %vm139_vm0, %v1170_v45  ;;  %7393 = vmatpush.msk.msra.mxu2 %vm139_vm0, %v1171_v46  ;;  %v10451_v45 = vperm.slane %v117_v32, 4  ;;  %v10453_v46 = vperm.slane %v117_v32, 5 }
  0x50   :  { %7395 = vmatpush.msk.msra.mxu3 %vm139_vm0, %v1172_v47  ;;  %1237 = vmatpush.msra.mxu0 %v10237_v4 }
  0x51   :  { %1257 = vmatpush.msra.mxu1 %v10239_v5  ;;  %1277 = vmatpush.msra.mxu2 %v10243_v6 }
  0x52   :  { %1297 = vmatpush.msra.mxu3 %v10245_v7 }
  0x54   :  { %7382 = vmatmul.msk.f32.vlgmr.msrb.gmra.mxu0 %vm135_vm1, %v897_v43 }
  0x55   :  { %7384 = vmatmul.msk.f32.vlgmr.msrb.gmra.mxu1 %vm135_vm1, %v897_v43  ;;  %7386 = vmatmul.msk.f32.vlgmr.msrb.gmra.mxu2 %vm135_vm1, %v897_v43 }
  0x56   :  { %7388 = vmatmul.msk.f32.vlgmr.msrb.gmra.mxu3 %vm135_vm1, %v897_v43  ;;  %7397 = vmatpush.msk.msrb.mxu0 %vm139_vm0, %v1173_v48  ;;  %v9503_v43 = vld [vmem:[#allocation9 + $0x10] sm:$0xff] }
  0x57   :  { %7399 = vmatpush.msk.msrb.mxu1 %vm139_vm0, %v1174_v49  ;;  %7401 = vmatpush.msk.msrb.mxu2 %vm139_vm0, %v1175_v50  ;;  %v9519_v49 = vld [vmem:[#allocation9 + $0x90] sm:$0xff] }
  0x58   :  { %7403 = vmatpush.msk.msrb.mxu3 %vm139_vm0, %v1176_v51  ;;  %1317 = vmatpush.msrb.mxu0 %v10255_v13  ;;  %v9527_v50 = vld [vmem:[#allocation9 + $0xd0] sm:$0xff] }
  0x59   :  { %1337 = vmatpush.msrb.mxu1 %v10257_v14  ;;  %1357 = vmatpush.msrb.mxu2 %v10261_v15 }
  0x5a   :  { %1377 = vmatpush.msrb.mxu3 %v10263_v16 }
  0x5c   :  { %7390 = vmatmul.msk.f32.vlgmr.msra.gmra.mxu0 %vm135_vm1, %v1160_v52 }
  0x5d   :  { %7392 = vmatmul.msk.f32.vlgmr.msra.gmra.mxu1 %vm135_vm1, %v1160_v52  ;;  %7394 = vmatmul.msk.f32.vlgmr.msra.gmra.mxu2 %vm135_vm1, %v1160_v52 }
  0x5e   :  { %7396 = vmatmul.msk.f32.vlgmr.msra.gmra.mxu3 %vm135_vm1, %v1160_v52  ;;  %7405 = vmatpush.msk.msra.mxu0 %vm139_vm0, %v1432_v53 }
  0x5f   :  { %7407 = vmatpush.msk.msra.mxu1 %vm139_vm0, %v1433_v54  ;;  %7409 = vmatpush.msk.msra.mxu2 %vm139_vm0, %v1434_v55 }
  0x60   :  { %7411 = vmatpush.msk.msra.mxu3 %vm139_vm0, %v1435_v56  ;;  %1500 = vmatpush.msra.mxu0 %v10237_v4 }
  0x61   :  { %1520 = vmatpush.msra.mxu1 %v10239_v5  ;;  %1540 = vmatpush.msra.mxu2 %v10243_v6 }
  0x62   :  { %1560 = vmatpush.msra.mxu3 %v10245_v7 }
  0x64   :  { %7398 = vmatmul.msk.f32.vlgmr.msrb.gmra.mxu0 %vm135_vm1, %v1160_v52 }
  0x65   :  { %7400 = vmatmul.msk.f32.vlgmr.msrb.gmra.mxu1 %vm135_vm1, %v1160_v52  ;;  %7402 = vmatmul.msk.f32.vlgmr.msrb.gmra.mxu2 %vm135_vm1, %v1160_v52 }
  0x66   :  { %7404 = vmatmul.msk.f32.vlgmr.msrb.gmra.mxu3 %vm135_vm1, %v1160_v52  ;;  %7413 = vmatpush.msk.msrb.mxu0 %vm139_vm0, %v1436_v57 }
  0x67   :  { %7415 = vmatpush.msk.msrb.mxu1 %vm139_vm0, %v1437_v58  ;;  %7417 = vmatpush.msk.msrb.mxu2 %vm139_vm0, %v1438_v59  ;;  %v9502_v59 = vld [vmem:[#allocation9 + $0x8] sm:$0xff] }
  0x68   :  { %7419 = vmatpush.msk.msrb.mxu3 %vm139_vm0, %v1439_v60  ;;  %1580 = vmatpush.msrb.mxu0 %v10255_v13  ;;  %v9510_v60 = vld [vmem:[#allocation9 + $0x48] sm:$0xff] }
  0x69   :  { %1600 = vmatpush.msrb.mxu1 %v10257_v14  ;;  %1620 = vmatpush.msrb.mxu2 %v10261_v15 }
  0x6a   :  { %1640 = vmatpush.msrb.mxu3 %v10263_v16 }
  0x6c   :  { %7406 = vmatmul.msk.f32.vlgmr.msra.gmra.mxu0 %vm135_vm1, %v1423_v61 }
  0x6d   :  { %7408 = vmatmul.msk.f32.vlgmr.msra.gmra.mxu1 %vm135_vm1, %v1423_v61  ;;  %7410 = vmatmul.msk.f32.vlgmr.msra.gmra.mxu2 %vm135_vm1, %v1423_v61 }
  0x6e   :  { %7412 = vmatmul.msk.f32.vlgmr.msra.gmra.mxu3 %vm135_vm1, %v1423_v61  ;;  %7421 = vmatpush.msk.msra.mxu0 %vm139_vm0, %v1695_v62 }
  0x6f   :  { %7423 = vmatpush.msk.msra.mxu1 %vm139_vm0, %v1696_v63  ;;  %7425 = vmatpush.msk.msra.mxu2 %vm139_vm0, %v1697_v0 }
  0x70   :  { %7427 = vmatpush.msk.msra.mxu3 %vm139_vm0, %v1698_v1  ;;  %1763 = vmatpush.msra.mxu0 %v10237_v4  ;;  %v9518_v1 = vld [vmem:[#allocation9 + $0x88] sm:$0xff] }
  0x71   :  { %1783 = vmatpush.msra.mxu1 %v10239_v5  ;;  %1803 = vmatpush.msra.mxu2 %v10243_v6 }
  0x72   :  { %1823 = vmatpush.msra.mxu3 %v10245_v7 }
  0x74   :  { %7414 = vmatmul.msk.f32.vlgmr.msrb.gmra.mxu0 %vm135_vm1, %v1423_v61 }
  0x75   :  { %7416 = vmatmul.msk.f32.vlgmr.msrb.gmra.mxu1 %vm135_vm1, %v1423_v61  ;;  %7418 = vmatmul.msk.f32.vlgmr.msrb.gmra.mxu2 %vm135_vm1, %v1423_v61 }
  0x76   :  { %7420 = vmatmul.msk.f32.vlgmr.msrb.gmra.mxu3 %vm135_vm1, %v1423_v61  ;;  %7429 = vmatpush.msk.msrb.mxu0 %vm139_vm0, %v1699_v2  ;;  %v9526_v2 = vld [vmem:[#allocation9 + $0xc8] sm:$0xff] }
  0x77   :  { %7431 = vmatpush.msk.msrb.mxu1 %vm139_vm0, %v1700_v3  ;;  %7433 = vmatpush.msk.msrb.mxu2 %vm139_vm0, %v1701_v8 }
  0x78   :  { %7435 = vmatpush.msk.msrb.mxu3 %vm139_vm0, %v1702_v9  ;;  %1843 = vmatpush.msrb.mxu0 %v10255_v13 }
  0x79   :  { %1863 = vmatpush.msrb.mxu1 %v10257_v14  ;;  %1883 = vmatpush.msrb.mxu2 %v10261_v15 }
  0x7a   :  { %1903 = vmatpush.msrb.mxu3 %v10263_v16 }
  0x7c   :  { %7422 = vmatmul.msk.f32.vlgmr.msra.gmra.mxu0 %vm135_vm1, %v1686_v10 }
  0x7d   :  { %7424 = vmatmul.msk.f32.vlgmr.msra.gmra.mxu1 %vm135_vm1, %v1686_v10  ;;  %7426 = vmatmul.msk.f32.vlgmr.msra.gmra.mxu2 %vm135_vm1, %v1686_v10 }
  0x7e   :  { %7428 = vmatmul.msk.f32.vlgmr.msra.gmra.mxu3 %vm135_vm1, %v1686_v10  ;;  %7437 = vmatpush.msk.msra.mxu0 %vm139_vm0, %v1958_v11  ;;  %v10463_v11 = vperm.slane %v117_v32, 7 }
  0x7f   :  { %7439 = vmatpush.msk.msra.mxu1 %vm139_vm0, %v1959_v12  ;;  %7441 = vmatpush.msk.msra.mxu2 %vm139_vm0, %v1960_v17  ;;  %v9501_v12 = vld [vmem:[#allocation9] sm:$0xff] }
  0x80   :  { %7443 = vmatpush.msk.msra.mxu3 %vm139_vm0, %v1961_v18  ;;  %2026 = vmatpush.msra.mxu0 %v10237_v4  ;;  %v1949_v4 = vld [vmem:[#allocation3 + $0xe] sm:$0x3]  ;;  %v9509_v17 = vld [vmem:[#allocation9 + $0x40] sm:$0xff] }
  0x81   :  { %2046 = vmatpush.msra.mxu1 %v10239_v5  ;;  %2066 = vmatpush.msra.mxu2 %v10243_v6  ;;  %v9508_v5 = vld [vmem:[#allocation9 + $0x38] sm:$0xff] }
  0x82   :  { %2086 = vmatpush.msra.mxu3 %v10245_v7  ;;  %v9516_v6 = vld [vmem:[#allocation9 + $0x78] sm:$0xff] }
  0x83   :  { %v9524_v7 = vld [vmem:[#allocation9 + $0xb8] sm:$0xff] }
  0x84   :  { %7430 = vmatmul.msk.f32.vlgmr.msrb.gmra.mxu0 %vm135_vm1, %v1686_v10 }
  0x85   :  { %7432 = vmatmul.msk.f32.vlgmr.msrb.gmra.mxu1 %vm135_vm1, %v1686_v10  ;;  %7434 = vmatmul.msk.f32.vlgmr.msrb.gmra.mxu2 %vm135_vm1, %v1686_v10 }
  0x86   :  { %7436 = vmatmul.msk.f32.vlgmr.msrb.gmra.mxu3 %vm135_vm1, %v1686_v10  ;;  %7445 = vmatpush.msk.msrb.mxu0 %vm139_vm0, %v1962_v19  ;;  %v10461_v10 = vperm.slane %v117_v32, 6  ;;  %v9517_v19 = vld [vmem:[#allocation9 + $0x80] sm:$0xff]  ;;  %v9547_v32 = vld [vmem:[#allocation9 + $0x170] sm:$0xff] }
  0x87   :  { %7447 = vmatpush.msk.msrb.mxu1 %vm139_vm0, %v1963_v20  ;;  %7449 = vmatpush.msk.msrb.mxu2 %vm139_vm0, %v1964_v21  ;;  %v9525_v20 = vld [vmem:[#allocation9 + $0xc0] sm:$0xff] }
  0x88   :  { %7451 = vmatpush.msk.msrb.mxu3 %vm139_vm0, %v1965_v22  ;;  %2106 = vmatpush.msrb.mxu0 %v10255_v13  ;;  %v9507_v13 = vld [vmem:[#allocation9 + $0x30] sm:$0xff] }
  0x89   :  { %2126 = vmatpush.msrb.mxu1 %v10257_v14  ;;  %2146 = vmatpush.msrb.mxu2 %v10261_v15  ;;  %v9515_v14 = vld [vmem:[#allocation9 + $0x70] sm:$0xff] }
  0x8a   :  { %2166 = vmatpush.msrb.mxu3 %v10263_v16  ;;  %v9523_v15 = vld [vmem:[#allocation9 + $0xb0] sm:$0xff] }
  0x8b   :  { %v9531_v16 = vld [vmem:[#allocation9 + $0xf0] sm:$0xff] }
  0x8c   :  { %7438 = vmatmul.msk.f32.vlgmr.msra.gmra.mxu0 %vm135_vm1, %v1949_v4 }
  0x8d   :  { %7440 = vmatmul.msk.f32.vlgmr.msra.gmra.mxu1 %vm135_vm1, %v1949_v4  ;;  %7442 = vmatmul.msk.f32.vlgmr.msra.gmra.mxu2 %vm135_vm1, %v1949_v4 }
  0x8e   :  { %7444 = vmatmul.msk.f32.vlgmr.msra.gmra.mxu3 %vm135_vm1, %v1949_v4  ;;  %6462 = vmatpush.bf16.msra.mxu0 %v9508_v5  ;;  %v9540_v5 = vld [vmem:[#allocation9 + $0x138] sm:$0xff] }
  0x8f   :  { %6475 = vmatpush.bf16.msra.mxu1 %v9516_v6  ;;  %6488 = vmatpush.bf16.msra.mxu2 %v9524_v7  ;;  %v9548_v6 = vld [vmem:[#allocation9 + $0x178] sm:$0xff] }
  0x90   :  { %6501 = vmatpush.bf16.msra.mxu3 %v9532_v23 }
  0x92   :  { %6463 = vmatpush.bf16.msra.mxu0 %v9507_v13 }
  0x93   :  { %6476 = vmatpush.bf16.msra.mxu1 %v9515_v14  ;;  %6489 = vmatpush.bf16.msra.mxu2 %v9523_v15 }
  0x94   :  { %6502 = vmatpush.bf16.msra.mxu3 %v9531_v16  ;;  %7446 = vmatmul.msk.f32.vlgmr.msrb.gmra.mxu0 %vm135_vm1, %v1949_v4 }
  0x95   :  { %7448 = vmatmul.msk.f32.vlgmr.msrb.gmra.mxu1 %vm135_vm1, %v1949_v4  ;;  %7450 = vmatmul.msk.f32.vlgmr.msrb.gmra.mxu2 %vm135_vm1, %v1949_v4 }
  0x96   :  { %7452 = vmatmul.msk.f32.vlgmr.msrb.gmra.mxu3 %vm135_vm1, %v1949_v4  ;;  %6464 = vmatpush.bf16.msra.mxu0 %v9506_v24  ;;  %v9556_v24 = vld [vmem:[#allocation9 + $0x1b8] sm:$0xff] }
  0x97   :  { %6477 = vmatpush.bf16.msra.mxu1 %v9514_v25  ;;  %6490 = vmatpush.bf16.msra.mxu2 %v9522_v26  ;;  %v9564_v25 = vld [vmem:[#allocation9 + $0x1f8] sm:$0xff] }
  0x98   :  { %6503 = vmatpush.bf16.msra.mxu3 %v9530_v27 }
  0x99   :  { %v181_v33 = vpop.f32.mrf.mxu0 }
  0x9a   :  { %v201_v34 = vpop.f32.mrf.mxu1  ;;  %6465 = vmatpush.bf16.msra.mxu0 %v9505_v28  ;;  %v182_v47 = vadd.f32 %v181_v33, %v10443_v37 }
  0x9b   :  { %6478 = vmatpush.bf16.msra.mxu1 %v9513_v29  ;;  %6491 = vmatpush.bf16.msra.mxu2 %v9521_v30  ;;  %v202_v48 = vadd.f32 %v201_v34, %v10445_v38 }
  0x9c   :  { %6504 = vmatpush.bf16.msra.mxu3 %v9529_v31  ;;  %v324_v61 = vmax.f32 %v182_v47, 0.0  ;;  %v9539_v31 = vld [vmem:[#allocation9 + $0x130] sm:$0xff] }
  0x9d   :  { %v325_v62 = vmax.f32 %v202_v48, 0.0 }
  0x9e   :  { %6466 = vmatpush.bf16.msra.mxu0 %v9504_v35  ;;  %v9555_v35 = vld [vmem:[#allocation9 + $0x1b0] sm:$0xff] }
  0x9f   :  { %6479 = vmatpush.bf16.msra.mxu1 %v9512_v36  ;;  %6492 = vmatpush.bf16.msra.mxu2 %v9520_v39  ;;  %v332_v18 = vpack.c.bf16 %v325_v62, %v324_v61  ;;  %v9563_v36 = vld [vmem:[#allocation9 + $0x1f0] sm:$0xff] }
  0xa0   :  { %6505 = vmatpush.bf16.msra.mxu3 %v9528_v40  ;;  %v221_v51 = vpop.f32.mrf.mxu2 }
  0xa1   :  { %v241_v52 = vpop.f32.mrf.mxu3  ;;  %v222_v53 = vadd.f32 %v221_v51, %v10447_v41  ;;  %v261_v55 = vpop.f32.mrf.mxu0  ;;  %v340_v26 = vrot.slane %v332_v18, 3 }
  0xa2   :  { %v242_v54 = vadd.f32 %v241_v52, %v10449_v42  ;;  %v281_v56 = vpop.f32.mrf.mxu1  ;;  %6467 = vmatpush.bf16.msra.mxu0 %v9503_v43  ;;  %v262_v57 = vadd.f32 %v261_v55, %v10451_v45  ;;  %v9538_v52 = vld [vmem:[#allocation9 + $0x128] sm:$0xff] }
  0xa3   :  { %6480 = vmatpush.bf16.msra.mxu1 %v9511_v44  ;;  %v282_v58 = vadd.f32 %v281_v56, %v10453_v46  ;;  %v326_v63 = vmax.f32 %v222_v53, 0.0  ;;  %6493 = vmatpush.bf16.msra.mxu2 %v9519_v49  ;;  %v350_v40 = vsel %vm347_vm3, %v332_v18, %v340_v26  ;;  %v9546_v53 = vld [vmem:[#allocation9 + $0x168] sm:$0xff]  ;;  %v9545_v18 = vld [vmem:[#allocation9 + $0x160] sm:$0xff]  ;;  %v9552_v26 = vld [vmem:[#allocation9 + $0x198] sm:$0xff] }
  0xa4   :  { %v327_v0 = vmax.f32 %v242_v54, 0.0  ;;  %6506 = vmatpush.bf16.msra.mxu3 %v9527_v50  ;;  %v328_v3 = vmax.f32 %v262_v57, 0.0 }
  0xa5   :  { %v329_v8 = vmax.f32 %v282_v58, 0.0 }
  0xa6   :  { %v333_v9 = vpack.c.bf16 %v327_v0, %v326_v63  ;;  %6468 = vmatpush.bf16.msra.mxu0 %v9502_v59  ;;  %v9554_v59 = vld [vmem:[#allocation9 + $0x1a8] sm:$0xff] }
  0xa7   :  { %6481 = vmatpush.bf16.msra.mxu1 %v9510_v60  ;;  %6494 = vmatpush.bf16.msra.mxu2 %v9518_v1  ;;  %v334_v21 = vpack.c.bf16 %v329_v8, %v328_v3  ;;  %v9562_v60 = vld [vmem:[#allocation9 + $0x1e8] sm:$0xff] }
  0xa8   :  { %6507 = vmatpush.bf16.msra.mxu3 %v9526_v2  ;;  %v301_v22 = vpop.f32.mrf.mxu2  ;;  %v341_v7 = vrot.slane %v333_v9, 6  ;;  %v342_v23 = vrot.slane %v333_v9, 1 }
  0xa9   :  { %v321_v4 = vpop.f32.mrf.mxu3  ;;  %v302_v13 = vadd.f32 %v301_v22, %v10461_v10  ;;  %v450_v15 = vpop.f32.mrf.mxu0  ;;  %v343_v29 = vrot.slane %v334_v21, 4  ;;  %v344_v30 = vrot.slane %v334_v21, 7  ;;  %v9561_v21 = vld [vmem:[#allocation9 + $0x1e0] sm:$0xff] }
  0xaa   :  { %v322_v14 = vadd.f32 %v321_v4, %v10463_v11  ;;  %v470_v16 = vpop.f32.mrf.mxu1  ;;  %6469 = vmatpush.bf16.msra.mxu0 %v9501_v12  ;;  %v354_v33 = vsel %vm351_vm2, %v341_v7, %v342_v23  ;;  %v451_v39 = vadd.f32 %v450_v15, %v10443_v37  ;;  %v9536_v7 = vld [vmem:[#allocation9 + $0x118] sm:$0xff] }
  0xab   :  { %6482 = vmatpush.bf16.msra.mxu1 %v9509_v17  ;;  %v330_v27 = vmax.f32 %v302_v13, 0.0  ;;  %6495 = vmatpush.bf16.msra.mxu2 %v9517_v19  ;;  %v471_v47 = vadd.f32 %v470_v16, %v10445_v38  ;;  %v356_v48 = vsel %vm355_vm4, %v350_v40, %v354_v33  ;;  %v360_v49 = vsel %vm357_vm5, %v343_v29, %v344_v30  ;;  %v9537_v17 = vld [vmem:[#allocation9 + $0x120] sm:$0xff]  ;;  %v9544_v23 = vld [vmem:[#allocation9 + $0x158] sm:$0xff]  ;;  %v9535_v33 = vld [vmem:[#allocation9 + $0x110] sm:$0xff] }
  0xac   :  { %v331_v28 = vmax.f32 %v322_v14, 0.0  ;;  %6508 = vmatpush.bf16.msra.mxu3 %v9525_v20  ;;  %v593_v62 = vmax.f32 %v451_v39, 0.0  ;;  %v9553_v20 = vld [vmem:[#allocation9 + $0x1a0] sm:$0xff]  ;;  %v9543_v40 = vld [vmem:[#allocation9 + $0x150] sm:$0xff] }
  0xad   :  { %v594_v2 = vmax.f32 %v471_v47, 0.0  ;;  %v9551_v47 = vld [vmem:[#allocation9 + $0x190] sm:$0xff] }
  0xae   :  { %6514 = vmatpush.bf16.msrb.mxu0 %v9540_v5  ;;  %v335_v34 = vpack.c.bf16 %v331_v28, %v330_v27  ;;  %v9560_v27 = vld [vmem:[#allocation9 + $0x1d8] sm:$0xff] }
  0xaf   :  { %6527 = vmatpush.bf16.msrb.mxu1 %v9548_v6  ;;  %6540 = vmatpush.bf16.msrb.mxu2 %v9556_v24  ;;  %v601_v22 = vpack.c.bf16 %v594_v2, %v593_v62  ;;  %v9558_v2 = vld [vmem:[#allocation9 + $0x1c8] sm:$0xff] }
  0xb0   :  { %6553 = vmatpush.bf16.msrb.mxu3 %v9564_v25  ;;  %v345_v43 = vrot.slane %v335_v34, 2  ;;  %v346_v44 = vrot.slane %v335_v34, 5  ;;  %v490_v50 = vpop.f32.mrf.mxu2 }
  0xb1   :  { %v510_v51 = vpop.f32.mrf.mxu3  ;;  %v491_v55 = vadd.f32 %v490_v50, %v10447_v41  ;;  %v530_v57 = vpop.f32.mrf.mxu0  ;;  %v609_v28 = vrot.slane %v601_v22, 3 }
  0xb2   :  { %6515 = vmatpush.bf16.msrb.mxu0 %v9539_v31  ;;  %v364_v54 = vsel %vm361_vm6, %v345_v43, %v346_v44  ;;  %v511_v56 = vadd.f32 %v510_v51, %v10449_v42  ;;  %v550_v58 = vpop.f32.mrf.mxu1  ;;  %v531_v63 = vadd.f32 %v530_v57, %v10451_v45 }
  0xb3   :  { %6528 = vmatpush.bf16.msrb.mxu1 %v9547_v32  ;;  %6541 = vmatpush.bf16.msrb.mxu2 %v9555_v35  ;;  %v366_v61 = vsel %vm365_vm7, %v360_v49, %v364_v54  ;;  %v551_v0 = vadd.f32 %v550_v58, %v10453_v46  ;;  %v595_v3 = vmax.f32 %v491_v55, 0.0  ;;  %v618_v50 = vsel %vm347_vm3, %v601_v22, %v609_v28  ;;  %v9534_v58 = vld [vmem:[#allocation9 + $0x108] sm:$0xff]  ;;  %v9596_v28 = vld [vmem:[#allocation9 + $0x2f8] sm:$0xff] }
  0xb4   :  { %6554 = vmatpush.bf16.msrb.mxu3 %v9563_v36  ;;  %v367_v1 = vsel %vm139_vm0, %v356_v48, %v366_v61  ;;  %v596_v8 = vmax.f32 %v511_v56, 0.0  ;;  %v597_v9 = vmax.f32 %v531_v63, 0.0  ;;  %v9559_v48 = vld [vmem:[#allocation9 + $0x1d0] sm:$0xff] }
  0xb5   :  { %3247 = vst [vmem:[#allocation1] ss:$9 sm:$0xff] %v367_v1  ;;  %v598_v12 = vmax.f32 %v551_v0, 0.0  ;;  %v9550_v1 = vld [vmem:[#allocation9 + $0x188] sm:$0xff] }
  0xb6   :  { %6516 = vmatpush.bf16.msrb.mxu0 %v9538_v52  ;;  %v602_v19 = vpack.c.bf16 %v596_v8, %v595_v3 }
  0xb7   :  { %6529 = vmatpush.bf16.msrb.mxu1 %v9546_v53  ;;  %6542 = vmatpush.bf16.msrb.mxu2 %v9554_v59  ;;  %v603_v4 = vpack.c.bf16 %v598_v12, %v597_v9  ;;  %v9542_v59 = vld [vmem:[#allocation9 + $0x148] sm:$0xff] }
  0xb8   :  { %6555 = vmatpush.bf16.msrb.mxu3 %v9562_v60  ;;  %v570_v5 = vpop.f32.mrf.mxu2  ;;  %v610_v13 = vrot.slane %v602_v19, 6  ;;  %v611_v14 = vrot.slane %v602_v19, 1 }
  0xb9   :  { %v590_v6 = vpop.f32.mrf.mxu3  ;;  %v571_v15 = vadd.f32 %v570_v5, %v10461_v10  ;;  %v713_v24 = vpop.f32.mrf.mxu0  ;;  %v612_v34 = vrot.slane %v603_v4, 4  ;;  %v613_v35 = vrot.slane %v603_v4, 7 }
  0xba   :  { %6517 = vmatpush.bf16.msrb.mxu0 %v9537_v17  ;;  %v591_v16 = vadd.f32 %v590_v6, %v10463_v11  ;;  %v733_v25 = vpop.f32.mrf.mxu1  ;;  %v621_v43 = vsel %vm351_vm2, %v610_v13, %v611_v14  ;;  %v714_v49 = vadd.f32 %v713_v24, %v10443_v37  ;;  %v9541_v13 = vld [vmem:[#allocation9 + $0x140] sm:$0xff]  ;;  %v9572_v24 = vld [vmem:[#allocation9 + $0x238] sm:$0xff] }
  0xbb   :  { %6530 = vmatpush.bf16.msrb.mxu1 %v9545_v18  ;;  %6543 = vmatpush.bf16.msrb.mxu2 %v9553_v20  ;;  %v599_v29 = vmax.f32 %v571_v15, 0.0  ;;  %v734_v53 = vadd.f32 %v733_v25, %v10445_v38  ;;  %v622_v54 = vsel %vm355_vm4, %v618_v50, %v621_v43  ;;  %v625_v55 = vsel %vm357_vm5, %v612_v34, %v613_v35  ;;  %v9549_v15 = vld [vmem:[#allocation9 + $0x180] sm:$0xff]  ;;  %v9580_v25 = vld [vmem:[#allocation9 + $0x278] sm:$0xff]  ;;  %v9579_v43 = vld [vmem:[#allocation9 + $0x270] sm:$0xff] }
  0xbc   :  { %6556 = vmatpush.bf16.msrb.mxu3 %v9561_v21  ;;  %v600_v30 = vmax.f32 %v591_v16, 0.0  ;;  %v3248_v31 = vld [vmem:[#allocation1] sm:$0xff]  ;;  %v3249_v32 = vld [vmem:[#allocation1 + $0x9] sm:$0xff]  ;;  %v3250_v36 = vld [vmem:[#allocation1 + $0x12] sm:$0xff]  ;;  %v856_v8 = vmax.f32 %v714_v49, 0.0 }
  0xbd   :  { %v3251_v39 = vld [vmem:[#allocation1 + $0x1b] sm:$0xff]  ;;  %6470 = vmatmul.bf16.vlgmr.msra.gmra.mxu0 %v3248_v31  ;;  %6483 = vmatmul.bf16.vlgmr.msra.gmra.mxu1 %v3249_v32  ;;  %v10494_v17 = vld [vmem:[#allocation1 + $0x24] sm:$0xff]  ;;  %v857_v19 = vmax.f32 %v734_v53, 0.0  ;;  %v10497_v22 = vld [vmem:[#allocation1 + $0x2d] sm:$0xff] }
  0xbe   :  { %6518 = vmatpush.bf16.msrb.mxu0 %v9536_v7  ;;  %v604_v44 = vpack.c.bf16 %v600_v30, %v599_v29  ;;  %6496 = vmatmul.bf16.vlgmr.msra.gmra.mxu2 %v3250_v36  ;;  %v10499_v4 = vld [vmem:[#allocation1 + $0x36] sm:$0xff]  ;;  %v10501_v5 = vld [vmem:[#allocation1 + $0x3f] sm:$0xff] }
  0xbf   :  { %6531 = vmatpush.bf16.msrb.mxu1 %v9544_v23  ;;  %6544 = vmatpush.bf16.msrb.mxu2 %v9552_v26  ;;  %v9533_v23 = vld [vmem:[#allocation9 + $0x100] sm:$0xff]  ;;  %v864_v26 = vpack.c.bf16 %v857_v19, %v856_v8  ;;  %v9587_v49 = vld [vmem:[#allocation9 + $0x2b0] sm:$0xff] }
  0xc0   :  { %6557 = vmatpush.bf16.msrb.mxu3 %v9560_v27  ;;  %v614_v51 = vrot.slane %v604_v44, 2  ;;  %v615_v52 = vrot.slane %v604_v44, 5  ;;  %v753_v56 = vpop.f32.mrf.mxu2  ;;  %v9557_v16 = vld [vmem:[#allocation9 + $0x1c0] sm:$0xff]  ;;  %v9588_v27 = vld [vmem:[#allocation9 + $0x2b8] sm:$0xff]  ;;  %v9595_v50 = vld [vmem:[#allocation9 + $0x2f0] sm:$0xff] }
  0xc1   :  { %6509 = vmatmul.bf16.vlgmr.msra.gmra.mxu3 %v3251_v39  ;;  %v773_v57 = vpop.f32.mrf.mxu3  ;;  %v754_v61 = vadd.f32 %v753_v56, %v10447_v41  ;;  %v793_v63 = vpop.f32.mrf.mxu0  ;;  %v872_v44 = vrot.slane %v864_v26, 3  ;;  %v9570_v56 = vld [vmem:[#allocation9 + $0x228] sm:$0xff] }
  0xc2   :  { %6519 = vmatpush.bf16.msrb.mxu0 %v9535_v33  ;;  %v628_v60 = vsel %vm361_vm6, %v614_v51, %v615_v52  ;;  %v774_v62 = vadd.f32 %v773_v57, %v10449_v42  ;;  %v813_v0 = vpop.f32.mrf.mxu1  ;;  %v794_v9 = vadd.f32 %v793_v63, %v10451_v45  ;;  %v9578_v57 = vld [vmem:[#allocation9 + $0x268] sm:$0xff] }
  0xc3   :  { %6532 = vmatpush.bf16.msrb.mxu1 %v9543_v40  ;;  %6545 = vmatpush.bf16.msrb.mxu2 %v9551_v47  ;;  %v629_v3 = vsel %vm365_vm7, %v625_v55, %v628_v60  ;;  %v814_v12 = vadd.f32 %v813_v0, %v10453_v46  ;;  %v858_v20 = vmax.f32 %v754_v61, 0.0  ;;  %v9571_v40 = vld [vmem:[#allocation9 + $0x230] sm:$0xff]  ;;  %v9594_v63 = vld [vmem:[#allocation9 + $0x2e8] sm:$0xff] }
  0xc4   :  { %6558 = vmatpush.bf16.msrb.mxu3 %v9559_v48  ;;  %v630_v18 = vsel %vm139_vm0, %v622_v54, %v629_v3  ;;  %v859_v21 = vmax.f32 %v774_v62, 0.0  ;;  %v860_v6 = vmax.f32 %v794_v9, 0.0  ;;  %v9586_v62 = vld [vmem:[#allocation9 + $0x2a8] sm:$0xff] }
  0xc5   :  { %v861_v7 = vmax.f32 %v814_v12, 0.0  ;;  %3257 = vst [vmem:[#allocation1] ss:$9 sm:$0xff] %v630_v18 }
  0xc6   :  { %6520 = vmatpush.bf16.msrb.mxu0 %v9534_v58  ;;  %v865_v14 = vpack.c.bf16 %v859_v21, %v858_v20  ;;  %v881_v58 = vsel %vm347_vm3, %v864_v26, %v872_v44  ;;  %v9569_v20 = vld [vmem:[#allocation9 + $0x220] sm:$0xff] }
  0xc7   :  { %6533 = vmatpush.bf16.msrb.mxu1 %v9542_v59  ;;  %6546 = vmatpush.bf16.msrb.mxu2 %v9550_v1  ;;  %v866_v29 = vpack.c.bf16 %v861_v7, %v860_v6  ;;  %v9577_v21 = vld [vmem:[#allocation9 + $0x260] sm:$0xff] }
  0xc8   :  { %6559 = vmatpush.bf16.msrb.mxu3 %v9558_v2  ;;  %v833_v30 = vpop.f32.mrf.mxu2  ;;  %v873_v32 = vrot.slane %v865_v14, 6  ;;  %v874_v33 = vrot.slane %v865_v14, 1  ;;  %v9585_v6 = vld [vmem:[#allocation9 + $0x2a0] sm:$0xff] }
  0xc9   :  { %v853_v31 = vpop.f32.mrf.mxu3  ;;  %v834_v34 = vadd.f32 %v833_v30, %v10461_v10  ;;  %v976_v36 = vpop.f32.mrf.mxu0  ;;  %v875_v51 = vrot.slane %v866_v29, 4  ;;  %v876_v52 = vrot.slane %v866_v29, 7 }
  0xca   :  { %6521 = vmatpush.bf16.msrb.mxu0 %v9533_v23  ;;  %v854_v35 = vadd.f32 %v853_v31, %v10463_v11  ;;  %v996_v39 = vpop.f32.mrf.mxu1  ;;  %v884_v53 = vsel %vm351_vm2, %v873_v32, %v874_v33  ;;  %v977_v55 = vadd.f32 %v976_v36, %v10443_v37  ;;  %v9593_v23 = vld [vmem:[#allocation9 + $0x2e0] sm:$0xff] }
  0xcb   :  { %6534 = vmatpush.bf16.msrb.mxu1 %v9541_v13  ;;  %6547 = vmatpush.bf16.msrb.mxu2 %v9549_v15  ;;  %v862_v47 = vmax.f32 %v834_v34, 0.0  ;;  %v997_v61 = vadd.f32 %v996_v39, %v10445_v38  ;;  %v885_v0 = vsel %vm355_vm4, %v881_v58, %v884_v53  ;;  %v888_v1 = vsel %vm357_vm5, %v875_v51, %v876_v52  ;;  %v9568_v34 = vld [vmem:[#allocation9 + $0x218] sm:$0xff] }
  0xcc   :  { %6560 = vmatpush.bf16.msrb.mxu3 %v9557_v16  ;;  %v863_v48 = vmax.f32 %v854_v35, 0.0  ;;  %v10523_v13 = vld [vmem:[#allocation1 + $0x9] sm:$0xff]  ;;  %v10528_v26 = vld [vmem:[#allocation1 + $0x1b] sm:$0xff] }
  0xcd   :  { %6522 = vmatmul.bf16.vlgmr.msrb.gmra.mxu0 %v10494_v17  ;;  %v1120_v15 = vmax.f32 %v997_v61, 0.0  ;;  %v10532_v30 = vld [vmem:[#allocation1 + $0x2d] sm:$0xff]  ;;  %v10534_v31 = vld [vmem:[#allocation1 + $0x36] sm:$0xff]  ;;  %v10536_v32 = vld [vmem:[#allocation1 + $0x3f] sm:$0xff] }
  0xce   :  { %6566 = vmatpush.bf16.msra.mxu0 %v9572_v24  ;;  %v867_v54 = vpack.c.bf16 %v863_v48, %v862_v47  ;;  %6535 = vmatmul.bf16.vlgmr.msrb.gmra.mxu1 %v10497_v22  ;;  %v1119_v22 = vmax.f32 %v977_v55, 0.0  ;;  %v9576_v35 = vld [vmem:[#allocation9 + $0x258] sm:$0xff]  ;;  %v9567_v55 = vld [vmem:[#allocation9 + $0x210] sm:$0xff] }
  0xcf   :  { %6579 = vmatpush.bf16.msra.mxu1 %v9580_v25  ;;  %6592 = vmatpush.bf16.msra.mxu2 %v9588_v27  ;;  %v10526_v25 = vld [vmem:[#allocation1 + $0x12] sm:$0xff]  ;;  %v10530_v27 = vld [vmem:[#allocation1 + $0x24] sm:$0xff] }
  0xd0   :  { %6605 = vmatpush.bf16.msra.mxu3 %v9596_v28  ;;  %v877_v59 = vrot.slane %v867_v54, 2  ;;  %v878_v60 = vrot.slane %v867_v54, 5  ;;  %v1016_v2 = vpop.f32.mrf.mxu2  ;;  %6548 = vmatmul.bf16.vlgmr.msrb.gmra.mxu2 %v10499_v4  ;;  %v1127_v36 = vpack.c.bf16 %v1120_v15, %v1119_v22  ;;  %v9584_v39 = vld [vmem:[#allocation9 + $0x298] sm:$0xff]  ;;  %v9583_v61 = vld [vmem:[#allocation9 + $0x290] sm:$0xff] }
  0xd1   :  { %v1036_v3 = vpop.f32.mrf.mxu3  ;;  %6561 = vmatmul.bf16.vlgmr.msrb.gmra.mxu3 %v10501_v5  ;;  %v1017_v9 = vadd.f32 %v1016_v2, %v10447_v41  ;;  %v1056_v18 = vpop.f32.mrf.mxu0  ;;  %v10521_v5 = vld [vmem:[#allocation1] sm:$0xff] }
  0xd2   :  { %6567 = vmatpush.bf16.msra.mxu0 %v9571_v40  ;;  %v891_v8 = vsel %vm361_vm6, %v877_v59, %v878_v60  ;;  %v1037_v12 = vadd.f32 %v1036_v3, %v10449_v42  ;;  %v1076_v19 = vpop.f32.mrf.mxu1  ;;  %v1057_v7 = vadd.f32 %v1056_v18, %v10451_v45  ;;  %v9592_v40 = vld [vmem:[#allocation9 + $0x2d8] sm:$0xff] }
  0xd3   :  { %6580 = vmatpush.bf16.msra.mxu1 %v9579_v43  ;;  %6593 = vmatpush.bf16.msra.mxu2 %v9587_v49  ;;  %v892_v17 = vsel %vm365_vm7, %v888_v1, %v891_v8  ;;  %v1077_v4 = vadd.f32 %v1076_v19, %v10453_v46  ;;  %v1121_v16 = vmax.f32 %v1017_v9, 0.0  ;;  %v9574_v9 = vld [vmem:[#allocation9 + $0x248] sm:$0xff] }
  0xd4   :  { %6606 = vmatpush.bf16.msra.mxu3 %v9595_v50  ;;  %v893_v14 = vsel %vm139_vm0, %v885_v0, %v892_v17  ;;  %v1122_v24 = vmax.f32 %v1037_v12, 0.0  ;;  %v1123_v28 = vmax.f32 %v1057_v7, 0.0  ;;  %v9565_v7 = vld [vmem:[#allocation9 + $0x200] sm:$0xff] }
  0xd5   :  { %v1124_v29 = vmax.f32 %v1077_v4, 0.0  ;;  %3267 = vst [vmem:[#allocation1] ss:$9 sm:$0xff] %v893_v14 }
  0xd6   :  { %6568 = vmatpush.bf16.msra.mxu0 %v9570_v56  ;;  %v1128_v33 = vpack.c.bf16 %v1122_v24, %v1121_v16  ;;  %v9575_v56 = vld [vmem:[#allocation9 + $0x250] sm:$0xff] }
  0xd7   :  { %6581 = vmatpush.bf16.msra.mxu1 %v9578_v57  ;;  %6594 = vmatpush.bf16.msra.mxu2 %v9586_v62  ;;  %v1129_v43 = vpack.c.bf16 %v1124_v29, %v1123_v28  ;;  %v1135_v57 = vrot.slane %v1127_v36, 3  ;;  %v9591_v62 = vld [vmem:[#allocation9 + $0x2d0] sm:$0xff]  ;;  %v9573_v28 = vld [vmem:[#allocation9 + $0x240] sm:$0xff] }
  0xd8   :  { %6607 = vmatpush.bf16.msra.mxu3 %v9594_v63  ;;  %v1096_v44 = vpop.f32.mrf.mxu2  ;;  %v1136_v48 = vrot.slane %v1128_v33, 6  ;;  %v1137_v49 = vrot.slane %v1128_v33, 1  ;;  %v9581_v29 = vld [vmem:[#allocation9 + $0x280] sm:$0xff] }
  0xd9   :  { %v1116_v47 = vpop.f32.mrf.mxu3  ;;  %v1097_v50 = vadd.f32 %v1096_v44, %v10461_v10  ;;  %v1239_v52 = vpop.f32.mrf.mxu0  ;;  %v1138_v63 = vrot.slane %v1129_v43, 4  ;;  %v1139_v2 = vrot.slane %v1129_v43, 7  ;;  %v1144_v12 = vsel %vm347_vm3, %v1127_v36, %v1135_v57  ;;  %v9589_v33 = vld [vmem:[#allocation9 + $0x2c0] sm:$0xff]  ;;  %v9628_v57 = vld [vmem:[#allocation9 + $0x3f8] sm:$0xff] }
  0xda   :  { %6569 = vmatpush.bf16.msra.mxu0 %v9569_v20  ;;  %v1117_v51 = vadd.f32 %v1116_v47, %v10463_v11  ;;  %v1259_v53 = vpop.f32.mrf.mxu1  ;;  %v1240_v54 = vadd.f32 %v1239_v52, %v10443_v37  ;;  %v1147_v1 = vsel %vm351_vm2, %v1136_v48, %v1137_v49  ;;  %v9566_v37 = vld [vmem:[#allocation9 + $0x208] sm:$0xff] }
  0xdb   :  { %6582 = vmatpush.bf16.msra.mxu1 %v9577_v21  ;;  %6595 = vmatpush.bf16.msra.mxu2 %v9585_v6  ;;  %v1125_v58 = vmax.f32 %v1097_v50, 0.0  ;;  %v1260_v60 = vadd.f32 %v1259_v53, %v10445_v38  ;;  %v9582_v38 = vld [vmem:[#allocation9 + $0x288] sm:$0xff]  ;;  %v1148_v6 = vsel %vm355_vm4, %v1144_v12, %v1147_v1  ;;  %v1151_v4 = vsel %vm357_vm5, %v1138_v63, %v1139_v2  ;;  %v9603_v1 = vld [vmem:[#allocation9 + $0x330] sm:$0xff] }
  0xdc   :  { %6608 = vmatpush.bf16.msra.mxu3 %v9593_v23  ;;  %v1126_v59 = vmax.f32 %v1117_v51, 0.0  ;;  %v1382_v0 = vmax.f32 %v1240_v54, 0.0  ;;  %v9590_v21 = vld [vmem:[#allocation9 + $0x2c8] sm:$0xff]  ;;  %v10552_v43 = vld [vmem:[#allocation1] sm:$0xff]  ;;  %v10557_v48 = vld [vmem:[#allocation1 + $0x12] sm:$0xff] }
  0xdd   :  { %v1383_v8 = vmax.f32 %v1260_v60, 0.0  ;;  %v10559_v49 = vld [vmem:[#allocation1 + $0x1b] sm:$0xff]  ;;  %v10561_v50 = vld [vmem:[#allocation1 + $0x24] sm:$0xff]  ;;  %v10563_v52 = vld [vmem:[#allocation1 + $0x2d] sm:$0xff] }
  0xde   :  { %6570 = vmatpush.bf16.msra.mxu0 %v9568_v34  ;;  %v1130_v3 = vpack.c.bf16 %v1126_v59, %v1125_v58  ;;  %v10565_v53 = vld [vmem:[#allocation1 + $0x36] sm:$0xff]  ;;  %v10567_v54 = vld [vmem:[#allocation1 + $0x3f] sm:$0xff] }
  0xdf   :  { %6583 = vmatpush.bf16.msra.mxu1 %v9576_v35  ;;  %6596 = vmatpush.bf16.msra.mxu2 %v9584_v39  ;;  %v1390_v20 = vpack.c.bf16 %v1383_v8, %v1382_v0  ;;  %v9604_v39 = vld [vmem:[#allocation9 + $0x338] sm:$0xff]  ;;  %v9611_v2 = vld [vmem:[#allocation9 + $0x370] sm:$0xff] }
  0xe0   :  { %6609 = vmatpush.bf16.msra.mxu3 %v9592_v40  ;;  %v1140_v18 = vrot.slane %v1130_v3, 2  ;;  %v1141_v19 = vrot.slane %v1130_v3, 5  ;;  %v1279_v17 = vpop.f32.mrf.mxu2  ;;  %v9612_v40 = vld [vmem:[#allocation9 + $0x378] sm:$0xff]  ;;  %v9627_v12 = vld [vmem:[#allocation9 + $0x3f0] sm:$0xff] }
  0xe1   :  { %v1299_v22 = vpop.f32.mrf.mxu3  ;;  %v1280_v14 = vadd.f32 %v1279_v17, %v10447_v41  ;;  %v1319_v16 = vpop.f32.mrf.mxu0  ;;  %v10554_v41 = vld [vmem:[#allocation1 + $0x9] sm:$0xff] }
  0xe2   :  { %6571 = vmatpush.bf16.msra.mxu0 %v9567_v55  ;;  %v1154_v23 = vsel %vm361_vm6, %v1140_v18, %v1141_v19  ;;  %v1300_v15 = vadd.f32 %v1299_v22, %v10449_v42  ;;  %v1339_v24 = vpop.f32.mrf.mxu1  ;;  %v1320_v35 = vadd.f32 %v1319_v16, %v10451_v45  ;;  %v1398_v45 = vrot.slane %v1390_v20, 3  ;;  %v9602_v22 = vld [vmem:[#allocation9 + $0x328] sm:$0xff] }
  0xe3   :  { %6584 = vmatpush.bf16.msra.mxu1 %v9575_v56  ;;  %6597 = vmatpush.bf16.msra.mxu2 %v9583_v61  ;;  %v1155_v34 = vsel %vm365_vm7, %v1151_v4, %v1154_v23  ;;  %v1340_v36 = vadd.f32 %v1339_v24, %v10453_v46  ;;  %v1384_v44 = vmax.f32 %v1280_v14, 0.0  ;;  %v9620_v56 = vld [vmem:[#allocation9 + $0x3b8] sm:$0xff]  ;;  %v9626_v4 = vld [vmem:[#allocation9 + $0x3e8] sm:$0xff] }
  0xe4   :  { %6610 = vmatpush.bf16.msra.mxu3 %v9591_v62  ;;  %v1156_v42 = vsel %vm139_vm0, %v1148_v6, %v1155_v34  ;;  %v1385_v47 = vmax.f32 %v1300_v15, 0.0  ;;  %v1386_v46 = vmax.f32 %v1320_v35, 0.0  ;;  %v10569_v61 = vld [vmem:[#allocation8] sm:$0xff]  ;;  %v1407_v62 = vsel %vm347_vm3, %v1390_v20, %v1398_v45  ;;  %v9601_v35 = vld [vmem:[#allocation9 + $0x320] sm:$0xff] }
  0xe5   :  { %v1387_v51 = vmax.f32 %v1340_v36, 0.0  ;;  %3277 = vst [vmem:[#allocation1] ss:$9 sm:$0xff] %v1156_v42  ;;  %v10594_v14 = vperm.slane %v10569_v61, 4  ;;  %v10597_v15 = vperm.slane %v10569_v61, 5  ;;  %v9609_v36 = vld [vmem:[#allocation9 + $0x360] sm:$0xff] }
  0xe6   :  { %6572 = vmatpush.bf16.msra.mxu0 %v9566_v37  ;;  %v1391_v55 = vpack.c.bf16 %v1385_v47, %v1384_v44  ;;  %v9625_v47 = vld [vmem:[#allocation9 + $0x3e0] sm:$0xff] }
  0xe7   :  { %6585 = vmatpush.bf16.msra.mxu1 %v9574_v9  ;;  %6598 = vmatpush.bf16.msra.mxu2 %v9582_v38  ;;  %v1392_v58 = vpack.c.bf16 %v1387_v51, %v1386_v46  ;;  %v9619_v9 = vld [vmem:[#allocation9 + $0x3b0] sm:$0xff]  ;;  %v10579_v38 = vperm.slane %v10569_v61, 0 }
  0xe8   :  { %6611 = vmatpush.bf16.msra.mxu3 %v9590_v21  ;;  %v1399_v59 = vrot.slane %v1391_v55, 6  ;;  %v1400_v60 = vrot.slane %v1391_v55, 1  ;;  %v1359_v63 = vpop.f32.mrf.mxu2 }
  0xe9   :  { %v1379_v0 = vpop.f32.mrf.mxu3  ;;  %v1360_v8 = vadd.f32 %v1359_v63, %v10461_v10  ;;  %v1502_v18 = vpop.f32.mrf.mxu0  ;;  %v1401_v6 = vrot.slane %v1392_v58, 4  ;;  %v1402_v17 = vrot.slane %v1392_v58, 7 }
  0xea   :  { %6573 = vmatpush.bf16.msra.mxu0 %v9565_v7  ;;  %v1410_v3 = vsel %vm351_vm2, %v1399_v59, %v1400_v60  ;;  %v1380_v37 = vadd.f32 %v1379_v0, %v10463_v11  ;;  %v1522_v19 = vpop.f32.mrf.mxu1  ;;  %v10584_v11 = vperm.slane %v10569_v61, 1  ;;  %v1503_v23 = vadd.f32 %v1502_v18, %v10579_v38 }
  0xeb   :  { %6586 = vmatpush.bf16.msra.mxu1 %v9573_v28  ;;  %6599 = vmatpush.bf16.msra.mxu2 %v9581_v29  ;;  %v1411_v20 = vsel %vm355_vm4, %v1407_v62, %v1410_v3  ;;  %v1388_v10 = vmax.f32 %v1360_v8, 0.0  ;;  %v1414_v29 = vsel %vm357_vm5, %v1401_v6, %v1402_v17  ;;  %v9624_v6 = vld [vmem:[#allocation9 + $0x3d8] sm:$0xff]  ;;  %v10625_v17 = vperm.slane %v10569_v61, 6 }
  0xec   :  { %6612 = vmatpush.bf16.msra.mxu3 %v9589_v33  ;;  %v1389_v21 = vmax.f32 %v1380_v37, 0.0  ;;  %v1523_v28 = vadd.f32 %v1522_v19, %v10584_v11  ;;  %v10604_v51 = vld [vmem:[#allocation1] sm:$0xff]  ;;  %v10606_v55 = vld [vmem:[#allocation1 + $0x9] sm:$0xff]  ;;  %v10611_v60 = vld [vmem:[#allocation1 + $0x12] sm:$0xff] }
  0xed   :  { %6574 = vmatmul.bf16.vlgmr.msra.gmra.mxu0 %v10521_v5  ;;  %v9610_v5 = vld [vmem:[#allocation9 + $0x368] sm:$0xff]  ;;  %v10613_v62 = vld [vmem:[#allocation1 + $0x1b] sm:$0xff] }
  0xee   :  { %6618 = vmatpush.bf16.msrb.mxu0 %v9604_v39  ;;  %6587 = vmatmul.bf16.vlgmr.msra.gmra.mxu1 %v10523_v13  ;;  %v1393_v7 = vpack.c.bf16 %v1389_v21, %v1388_v10  ;;  %v9618_v13 = vld [vmem:[#allocation9 + $0x3a8] sm:$0xff]  ;;  %v9617_v39 = vld [vmem:[#allocation9 + $0x3a0] sm:$0xff]  ;;  %v10620_v37 = vld [vmem:[#allocation1 + $0x36] sm:$0xff] }
  0xef   :  { %6631 = vmatpush.bf16.msrb.mxu1 %v9612_v40  ;;  %6644 = vmatpush.bf16.msrb.mxu2 %v9620_v56  ;;  %v10615_v63 = vld [vmem:[#allocation1 + $0x24] sm:$0xff]  ;;  %v10618_v8 = vld [vmem:[#allocation1 + $0x2d] sm:$0xff]  ;;  %v9600_v19 = vld [vmem:[#allocation9 + $0x318] sm:$0xff] }
  0xf0   :  { %6657 = vmatpush.bf16.msrb.mxu3 %v9628_v57  ;;  %6600 = vmatmul.bf16.vlgmr.msra.gmra.mxu2 %v10526_v25  ;;  %v10587_v25 = vperm.slane %v10569_v61, 2  ;;  %v1403_v16 = vrot.slane %v1393_v7, 2  ;;  %v1404_v24 = vrot.slane %v1393_v7, 5  ;;  %v1542_v33 = vpop.f32.mrf.mxu2  ;;  %v1645_v57 = vmax.f32 %v1503_v23, 0.0  ;;  %v9608_v10 = vld [vmem:[#allocation9 + $0x358] sm:$0xff]  ;;  %v9599_v23 = vld [vmem:[#allocation9 + $0x310] sm:$0xff] }
  0xf1   :  { %6613 = vmatmul.bf16.vlgmr.msra.gmra.mxu3 %v10528_v26  ;;  %v10590_v26 = vperm.slane %v10569_v61, 3  ;;  %v1562_v34 = vpop.f32.mrf.mxu3  ;;  %v1582_v45 = vpop.f32.mrf.mxu0 }
  0xf2   :  { %6619 = vmatpush.bf16.msrb.mxu0 %v9603_v1  ;;  %v1417_v40 = vsel %vm361_vm6, %v1403_v16, %v1404_v24  ;;  %v1543_v42 = vadd.f32 %v1542_v33, %v10587_v25  ;;  %v1602_v46 = vpop.f32.mrf.mxu1  ;;  %v1583_v58 = vadd.f32 %v1582_v45, %v10594_v14  ;;  %v1646_v1 = vmax.f32 %v1523_v28, 0.0  ;;  %v9607_v16 = vld [vmem:[#allocation9 + $0x350] sm:$0xff]  ;;  %v9598_v45 = vld [vmem:[#allocation9 + $0x308] sm:$0xff] }
  0xf3   :  { %6632 = vmatpush.bf16.msrb.mxu1 %v9611_v2  ;;  %6645 = vmatpush.bf16.msrb.mxu2 %v9619_v9  ;;  %v1563_v44 = vadd.f32 %v1562_v34, %v10590_v26  ;;  %v1418_v56 = vsel %vm365_vm7, %v1414_v29, %v1417_v40  ;;  %v1603_v59 = vadd.f32 %v1602_v46, %v10597_v15  ;;  %v10622_v9 = vld [vmem:[#allocation1 + $0x3f] sm:$0xff]  ;;  %v9615_v34 = vld [vmem:[#allocation9 + $0x390] sm:$0xff]  ;;  %v9606_v46 = vld [vmem:[#allocation9 + $0x348] sm:$0xff] }
  0xf4   :  { %6658 = vmatpush.bf16.msrb.mxu3 %v9627_v12  ;;  %v1419_v0 = vsel %vm139_vm0, %v1411_v20, %v1418_v56  ;;  %v1647_v2 = vmax.f32 %v1543_v42, 0.0  ;;  %v1649_v12 = vmax.f32 %v1583_v58, 0.0  ;;  %v9616_v20 = vld [vmem:[#allocation9 + $0x398] sm:$0xff]  ;;  %v9614_v58 = vld [vmem:[#allocation9 + $0x388] sm:$0xff] }
  0xf5   :  { %v1648_v3 = vmax.f32 %v1563_v44, 0.0  ;;  %v1650_v18 = vmax.f32 %v1603_v59, 0.0  ;;  %3287 = vst [vmem:[#allocation1] ss:$9 sm:$0xff] %v1419_v0  ;;  %v9622_v59 = vld [vmem:[#allocation9 + $0x3c8] sm:$0xff] }
  0xf6   :  { %6620 = vmatpush.bf16.msrb.mxu0 %v9602_v22  ;;  %v10628_v22 = vperm.slane %v10569_v61, 7 }
  0xf7   :  { %6633 = vmatpush.bf16.msrb.mxu1 %v9610_v5  ;;  %6646 = vmatpush.bf16.msrb.mxu2 %v9618_v13  ;;  %v1654_v21 = vpack.c.bf16 %v1648_v3, %v1647_v2  ;;  %v1653_v5 = vpack.c.bf16 %v1646_v1, %v1645_v57  ;;  %v1655_v7 = vpack.c.bf16 %v1650_v18, %v1649_v12  ;;  %v9597_v18 = vld [vmem:[#allocation9 + $0x300] sm:$0xff] }
  0xf8   :  { %6659 = vmatpush.bf16.msrb.mxu3 %v9626_v4  ;;  %v1622_v13 = vpop.f32.mrf.mxu2 }
  0xf9   :  { %v1642_v4 = vpop.f32.mrf.mxu3  ;;  %v1662_v24 = vrot.slane %v1654_v21, 6  ;;  %v1663_v28 = vrot.slane %v1654_v21, 1  ;;  %v1623_v29 = vadd.f32 %v1622_v13, %v10625_v17  ;;  %v1765_v61 = vpop.f32.mrf.mxu0  ;;  %v1664_v44 = vrot.slane %v1655_v7, 4  ;;  %v9621_v13 = vld [vmem:[#allocation9 + $0x3c0] sm:$0xff] }
  0xfa   :  { %6621 = vmatpush.bf16.msrb.mxu0 %v9601_v35  ;;  %v1643_v33 = vadd.f32 %v1642_v4, %v10628_v22  ;;  %v9623_v35 = vld [vmem:[#allocation9 + $0x3d0] sm:$0xff]  ;;  %v1766_v0 = vadd.f32 %v1765_v61, %v10579_v38  ;;  %v9636_v4 = vld [vmem:[#allocation9 + $0x438] sm:$0xff] }
  0xfb   :  { %6634 = vmatpush.bf16.msrb.mxu1 %v9609_v36  ;;  %6647 = vmatpush.bf16.msrb.mxu2 %v9617_v39  ;;  %v1785_v36 = vpop.f32.mrf.mxu1  ;;  %v1661_v39 = vrot.slane %v1653_v5, 3  ;;  %v1651_v40 = vmax.f32 %v1623_v29, 0.0  ;;  %v1673_v56 = vsel %vm351_vm2, %v1662_v24, %v1663_v28  ;;  %v9652_v28 = vld [vmem:[#allocation9 + $0x4b8] sm:$0xff] }
  0xfc   :  { %6660 = vmatpush.bf16.msrb.mxu3 %v9625_v47  ;;  %v1652_v42 = vmax.f32 %v1643_v33, 0.0  ;;  %v1665_v47 = vrot.slane %v1655_v7, 7  ;;  %v1786_v12 = vadd.f32 %v1785_v36, %v10584_v11  ;;  %v9660_v29 = vld [vmem:[#allocation9 + $0x4f8] sm:$0xff]  ;;  %v10643_v61 = vld [vmem:[#allocation1 + $0x9] sm:$0xff] }
  0xfd   :  { %v1670_v1 = vsel %vm347_vm3, %v1653_v5, %v1661_v39  ;;  %v1908_v39 = vmax.f32 %v1766_v0, 0.0  ;;  %v10659_v0 = vld [vmem:[#allocation1 + $0x3f] sm:$0xff] }
  0xfe   :  { %6622 = vmatpush.bf16.msrb.mxu0 %v9600_v19  ;;  %v1656_v57 = vpack.c.bf16 %v1652_v42, %v1651_v40  ;;  %v9605_v19 = vld [vmem:[#allocation9 + $0x340] sm:$0xff]  ;;  %v1674_v21 = vsel %vm355_vm4, %v1670_v1, %v1673_v56  ;;  %v1909_v56 = vmax.f32 %v1786_v12, 0.0  ;;  %v10657_v1 = vld [vmem:[#allocation1 + $0x36] sm:$0xff] }
  0xff   :  { %6635 = vmatpush.bf16.msrb.mxu1 %v9608_v10  ;;  %6648 = vmatpush.bf16.msrb.mxu2 %v9616_v20  ;;  %v9613_v10 = vld [vmem:[#allocation9 + $0x380] sm:$0xff]  ;;  %v1677_v20 = vsel %vm357_vm5, %v1664_v44, %v1665_v47  ;;  %v10648_v44 = vld [vmem:[#allocation1 + $0x12] sm:$0xff] }
 0x100   :  { %6661 = vmatpush.bf16.msrb.mxu3 %v9624_v6  ;;  %v1666_v2 = vrot.slane %v1656_v57, 2  ;;  %v1667_v3 = vrot.slane %v1656_v57, 5  ;;  %v1805_v6 = vpop.f32.mrf.mxu2  ;;  %v10650_v47 = vld [vmem:[#allocation1 + $0x1b] sm:$0xff]  ;;  %v9643_v12 = vld [vmem:[#allocation9 + $0x470] sm:$0xff] }
 0x101   :  { %v1825_v7 = vpop.f32.mrf.mxu3  ;;  %v1845_v33 = vpop.f32.mrf.mxu0 }
 0x102   :  { %6623 = vmatpush.bf16.msrb.mxu0 %v9599_v23  ;;  %v9644_v23 = vld [vmem:[#allocation9 + $0x478] sm:$0xff]  ;;  %v1680_v5 = vsel %vm361_vm6, %v1666_v2, %v1667_v3  ;;  %v1826_v24 = vadd.f32 %v1825_v7, %v10590_v26  ;;  %v1846_v40 = vadd.f32 %v1845_v33, %v10594_v14  ;;  %v9651_v7 = vld [vmem:[#allocation9 + $0x4b0] sm:$0xff] }
 0x103   :  { %6636 = vmatpush.bf16.msrb.mxu1 %v9607_v16  ;;  %6649 = vmatpush.bf16.msrb.mxu2 %v9615_v34  ;;  %v1806_v16 = vadd.f32 %v1805_v6, %v10587_v25  ;;  %v1865_v34 = vpop.f32.mrf.mxu1  ;;  %v1681_v36 = vsel %vm365_vm7, %v1677_v20, %v1680_v5  ;;  %v1916_v6 = vpack.c.bf16 %v1909_v56, %v1908_v39  ;;  %v9659_v5 = vld [vmem:[#allocation9 + $0x4f0] sm:$0xff]  ;;  %v9658_v39 = vld [vmem:[#allocation9 + $0x4e8] sm:$0xff]  ;;  %v9641_v56 = vld [vmem:[#allocation9 + $0x460] sm:$0xff] }
 0x104   :  { %6662 = vmatpush.bf16.msrb.mxu3 %v9623_v35  ;;  %v10641_v35 = vld [vmem:[#allocation1] sm:$0xff]  ;;  %v1866_v42 = vadd.f32 %v1865_v34, %v10597_v15  ;;  %v1912_v2 = vmax.f32 %v1846_v40, 0.0 }
 0x105   :  { %v1910_v57 = vmax.f32 %v1806_v16, 0.0 }
 0x106   :  { %6624 = vmatpush.bf16.msrb.mxu0 %v9598_v45  ;;  %v10652_v45 = vld [vmem:[#allocation1 + $0x24] sm:$0xff]  ;;  %v1913_v3 = vmax.f32 %v1866_v42, 0.0 }
 0x107   :  { %6637 = vmatpush.bf16.msrb.mxu1 %v9606_v46  ;;  %6650 = vmatpush.bf16.msrb.mxu2 %v9614_v58  ;;  %v1682_v46 = vsel %vm139_vm0, %v1674_v21, %v1681_v36  ;;  %v1911_v58 = vmax.f32 %v1826_v24, 0.0  ;;  %v9635_v21 = vld [vmem:[#allocation9 + $0x430] sm:$0xff]  ;;  %v9650_v36 = vld [vmem:[#allocation9 + $0x4a8] sm:$0xff] }
 0x108   :  { %6663 = vmatpush.bf16.msrb.mxu3 %v9622_v59  ;;  %v10655_v59 = vld [vmem:[#allocation1 + $0x2d] sm:$0xff]  ;;  %v1918_v16 = vpack.c.bf16 %v1913_v3, %v1912_v2  ;;  %v9649_v3 = vld [vmem:[#allocation9 + $0x4a0] sm:$0xff] }
 0x109   :  { %3297 = vst [vmem:[#allocation1] ss:$9 sm:$0xff] %v1682_v46  ;;  %v1917_v20 = vpack.c.bf16 %v1911_v58, %v1910_v57  ;;  %v9633_v46 = vld [vmem:[#allocation9 + $0x420] sm:$0xff] }
 0x10a   :  { %6625 = vmatpush.bf16.msrb.mxu0 %v9597_v18  ;;  %v1885_v18 = vpop.f32.mrf.mxu2  ;;  %v1928_v40 = vrot.slane %v1918_v16, 7 }
 0x10b   :  { %6638 = vmatpush.bf16.msrb.mxu1 %v9605_v19  ;;  %6651 = vmatpush.bf16.msrb.mxu2 %v9613_v10  ;;  %v1905_v19 = vpop.f32.mrf.mxu3  ;;  %v1925_v24 = vrot.slane %v1917_v20, 6  ;;  %v1926_v33 = vrot.slane %v1917_v20, 1  ;;  %v1886_v10 = vadd.f32 %v1885_v18, %v10625_v17  ;;  %v9657_v20 = vld [vmem:[#allocation9 + $0x4e0] sm:$0xff]  ;;  %v9632_v18 = vld [vmem:[#allocation9 + $0x418] sm:$0xff] }
 0x10c   :  { %6664 = vmatpush.bf16.msrb.mxu3 %v9621_v13  ;;  %v1906_v13 = vadd.f32 %v1905_v19, %v10628_v22  ;;  %v9640_v19 = vld [vmem:[#allocation9 + $0x458] sm:$0xff] }
 0x10d   :  { %6626 = vmatmul.bf16.vlgmr.msrb.gmra.mxu0 %v10530_v27  ;;  %v9642_v27 = vld [vmem:[#allocation9 + $0x468] sm:$0xff] }
 0x10e   :  { %6670 = vmatpush.bf16.msra.mxu0 %v9636_v4  ;;  %6639 = vmatmul.bf16.vlgmr.msrb.gmra.mxu1 %v10532_v30  ;;  %v2028_v4 = vpop.f32.mrf.mxu0  ;;  %v1914_v30 = vmax.f32 %v1886_v10, 0.0  ;;  %v1915_v34 = vmax.f32 %v1906_v13, 0.0  ;;  %v9648_v13 = vld [vmem:[#allocation9 + $0x498] sm:$0xff] }
 0x10f   :  { %6683 = vmatpush.bf16.msra.mxu1 %v9644_v23  ;;  %6696 = vmatpush.bf16.msra.mxu2 %v9652_v28  ;;  %v2048_v23 = vpop.f32.mrf.mxu1  ;;  %v9634_v28 = vld [vmem:[#allocation9 + $0x428] sm:$0xff] }
 0x110   :  { %6709 = vmatpush.bf16.msra.mxu3 %v9660_v29  ;;  %6652 = vmatmul.bf16.vlgmr.msrb.gmra.mxu2 %v10534_v31  ;;  %v1924_v29 = vrot.slane %v1916_v6, 3  ;;  %v1927_v31 = vrot.slane %v1918_v16, 4  ;;  %v1919_v42 = vpack.c.bf16 %v1915_v34, %v1914_v30  ;;  %v10676_v30 = vld [vmem:[#allocation1] sm:$0xff]  ;;  %v10678_v34 = vld [vmem:[#allocation1 + $0x9] sm:$0xff] }
 0x111   :  { %6665 = vmatmul.bf16.vlgmr.msrb.gmra.mxu3 %v10536_v32  ;;  %v1936_v32 = vsel %vm351_vm2, %v1925_v24, %v1926_v33 }
 0x112   :  { %6671 = vmatpush.bf16.msra.mxu0 %v9635_v21  ;;  %v1933_v57 = vsel %vm347_vm3, %v1916_v6, %v1924_v29  ;;  %v1929_v58 = vrot.slane %v1919_v42, 2  ;;  %v1930_v2 = vrot.slane %v1919_v42, 5  ;;  %v2049_v6 = vadd.f32 %v2048_v23, %v10584_v11  ;;  %v10683_v23 = vld [vmem:[#allocation1 + $0x12] sm:$0xff]  ;;  %v10694_v42 = vld [vmem:[#allocation1 + $0x3f] sm:$0xff] }
 0x113   :  { %6684 = vmatpush.bf16.msra.mxu1 %v9643_v12  ;;  %6697 = vmatpush.bf16.msra.mxu2 %v9651_v7  ;;  %v1937_v21 = vsel %vm355_vm4, %v1933_v57, %v1936_v32  ;;  %v1940_v12 = vsel %vm357_vm5, %v1927_v31, %v1928_v40  ;;  %v2029_v7 = vadd.f32 %v2028_v4, %v10579_v38  ;;  %v2088_v16 = vpop.f32.mrf.mxu3  ;;  %v10690_v40 = vld [vmem:[#allocation1 + $0x2d] sm:$0xff]  ;;  %v10692_v32 = vld [vmem:[#allocation1 + $0x36] sm:$0xff] }
 0x114   :  { %6710 = vmatpush.bf16.msra.mxu3 %v9659_v5  ;;  %v2068_v5 = vpop.f32.mrf.mxu2  ;;  %v1943_v24 = vsel %vm361_vm6, %v1929_v58, %v1930_v2  ;;  %v2089_v10 = vadd.f32 %v2088_v16, %v10590_v26  ;;  %v10687_v26 = vld [vmem:[#allocation1 + $0x24] sm:$0xff]  ;;  %v9631_v58 = vld [vmem:[#allocation9 + $0x410] sm:$0xff] }
 0x115   :  { %v2069_v33 = vadd.f32 %v2068_v5, %v10587_v25  ;;  %v1944_v38 = vsel %vm365_vm7, %v1940_v12, %v1943_v24  ;;  %v10685_v25 = vld [vmem:[#allocation1 + $0x1b] sm:$0xff]  ;;  %v9639_v2 = vld [vmem:[#allocation9 + $0x450] sm:$0xff] }
 0x116   :  { %6672 = vmatpush.bf16.msra.mxu0 %v9634_v28  ;;  %v9656_v28 = vld [vmem:[#allocation9 + $0x4d8] sm:$0xff]  ;;  %v2174_v31 = vmax.f32 %v2089_v10, 0.0 }
 0x117   :  { %6685 = vmatpush.bf16.msra.mxu1 %v9642_v27  ;;  %6698 = vmatpush.bf16.msra.mxu2 %v9650_v36  ;;  %v2108_v27 = vpop.f32.mrf.mxu0  ;;  %v2128_v29 = vpop.f32.mrf.mxu1  ;;  %v1945_v36 = vsel %vm139_vm0, %v1937_v21, %v1944_v38  ;;  %v9654_v38 = vld [vmem:[#allocation9 + $0x4c8] sm:$0xff] }
 0x118   :  { %6711 = vmatpush.bf16.msra.mxu3 %v9658_v39  ;;  %v2109_v4 = vadd.f32 %v2108_v27, %v10594_v14  ;;  %v2129_v11 = vadd.f32 %v2128_v29, %v10597_v15  ;;  %v2173_v39 = vmax.f32 %v2069_v33, 0.0  ;;  %3307 = vst [vmem:[#allocation1] ss:$9 sm:$0xff] %v1945_v36  ;;  %v9646_v29 = vld [vmem:[#allocation9 + $0x488] sm:$0xff] }
 0x11a   :  { %6673 = vmatpush.bf16.msra.mxu0 %v9633_v46  ;;  %v2175_v14 = vmax.f32 %v2109_v4, 0.0  ;;  %v2176_v15 = vmax.f32 %v2129_v11, 0.0  ;;  %v2171_v46 = vmax.f32 %v2029_v7, 0.0  ;;  %v2180_v57 = vpack.c.bf16 %v2174_v31, %v2173_v39 }
 0x11b   :  { %6686 = vmatpush.bf16.msra.mxu1 %v9641_v56  ;;  %6699 = vmatpush.bf16.msra.mxu2 %v9649_v3  ;;  %v2172_v56 = vmax.f32 %v2049_v6, 0.0  ;;  %v9647_v3 = vld [vmem:[#allocation9 + $0x490] sm:$0xff]  ;;  %v2168_v5 = vpop.f32.mrf.mxu3 }
 0x11c   :  { %6712 = vmatpush.bf16.msra.mxu3 %v9657_v20  ;;  %v9655_v20 = vld [vmem:[#allocation9 + $0x4d0] sm:$0xff]  ;;  %v2181_v21 = vpack.c.bf16 %v2176_v15, %v2175_v14  ;;  %v2148_v12 = vpop.f32.mrf.mxu2  ;;  %v2169_v33 = vadd.f32 %v2168_v5, %v10628_v22  ;;  %v2188_v10 = vrot.slane %v2180_v57, 6  ;;  %v2189_v7 = vrot.slane %v2180_v57, 1  ;;  %v9637_v22 = vld [vmem:[#allocation9 + $0x440] sm:$0xff]  ;;  %v9676_v57 = vld [vmem:[#allocation9 + $0x578] sm:$0xff] }
 0x11d   :  { %v2179_v16 = vpack.c.bf16 %v2172_v56, %v2171_v46  ;;  %v2149_v24 = vadd.f32 %v2148_v12, %v10625_v17  ;;  %v9629_v17 = vld [vmem:[#allocation9 + $0x400] sm:$0xff]  ;;  %v9668_v56 = vld [vmem:[#allocation9 + $0x538] sm:$0xff] }
 0x11e   :  { %6674 = vmatpush.bf16.msra.mxu0 %v9632_v18  ;;  %v9630_v18 = vld [vmem:[#allocation9 + $0x408] sm:$0xff]  ;;  %v2190_v6 = vrot.slane %v2181_v21, 4  ;;  %v2178_v27 = vmax.f32 %v2169_v33, 0.0  ;;  %v2199_v36 = vsel %vm351_vm2, %v2188_v10, %v2189_v7  ;;  %v9645_v15 = vld [vmem:[#allocation9 + $0x480] sm:$0xff] }
 0x11f   :  { %6687 = vmatpush.bf16.msra.mxu1 %v9640_v19  ;;  %6700 = vmatpush.bf16.msra.mxu2 %v9648_v13  ;;  %v9638_v19 = vld [vmem:[#allocation9 + $0x448] sm:$0xff]  ;;  %v2191_v13 = vrot.slane %v2181_v21, 7  ;;  %v2187_v4 = vrot.slane %v2179_v16, 3  ;;  %v9653_v46 = vld [vmem:[#allocation9 + $0x4c0] sm:$0xff]  ;;  %v10708_v33 = vld [vmem:[#allocation1 + $0x12] sm:$0xff] }
 0x120   :  { %6713 = vmatpush.bf16.msra.mxu3 %v9656_v28  ;;  %v2177_v28 = vmax.f32 %v2149_v24, 0.0  ;;  %v10702_v21 = vld [vmem:[#allocation1] sm:$0xff]  ;;  %v10704_v12 = vld [vmem:[#allocation1 + $0x9] sm:$0xff] }
 0x121   :  { %v2203_v39 = vsel %vm357_vm5, %v2190_v6, %v2191_v13  ;;  %v10710_v10 = vld [vmem:[#allocation1 + $0x1b] sm:$0xff]  ;;  %v10712_v7 = vld [vmem:[#allocation1 + $0x24] sm:$0xff]  ;;  %v9667_v13 = vld [vmem:[#allocation9 + $0x530] sm:$0xff] }
 0x122   :  { %6675 = vmatpush.bf16.msra.mxu0 %v9631_v58  ;;  %v2182_v11 = vpack.c.bf16 %v2178_v27, %v2177_v28  ;;  %v9684_v58 = vld [vmem:[#allocation9 + $0x5b8] sm:$0xff]  ;;  %v9675_v28 = vld [vmem:[#allocation9 + $0x570] sm:$0xff] }
 0x123   :  { %6688 = vmatpush.bf16.msra.mxu1 %v9639_v2  ;;  %6701 = vmatpush.bf16.msra.mxu2 %v9647_v3  ;;  %v2196_v2 = vsel %vm347_vm3, %v2179_v16, %v2187_v4  ;;  %v10719_v6 = vld [vmem:[#allocation1 + $0x3f] sm:$0xff]  ;;  %v9683_v27 = vld [vmem:[#allocation9 + $0x5b0] sm:$0xff]  ;;  %v9674_v4 = vld [vmem:[#allocation9 + $0x568] sm:$0xff] }
 0x124   :  { %6714 = vmatpush.bf16.msra.mxu3 %v9655_v20  ;;  %v2192_v31 = vrot.slane %v2182_v11, 2  ;;  %v2193_v14 = vrot.slane %v2182_v11, 5  ;;  %v9692_v20 = vld [vmem:[#allocation9 + $0x5f8] sm:$0xff]  ;;  %v2200_v5 = vsel %vm355_vm4, %v2196_v2, %v2199_v36  ;;  %v9682_v11 = vld [vmem:[#allocation9 + $0x5a8] sm:$0xff]  ;;  %v9673_v36 = vld [vmem:[#allocation9 + $0x560] sm:$0xff] }
 0x125   :  { %v9678_v2 = vld [vmem:[#allocation9 + $0x588] sm:$0xff] }
 0x126   :  { %6676 = vmatpush.bf16.msra.mxu0 %v9630_v18  ;;  %v2206_v3 = vsel %vm361_vm6, %v2192_v31, %v2193_v14  ;;  %v10715_v18 = vld [vmem:[#allocation1 + $0x2d] sm:$0xff]  ;;  %v9688_v31 = vld [vmem:[#allocation9 + $0x5d8] sm:$0xff] }
 0x127   :  { %6689 = vmatpush.bf16.msra.mxu1 %v9638_v19  ;;  %6702 = vmatpush.bf16.msra.mxu2 %v9646_v29  ;;  %v2207_v24 = vsel %vm365_vm7, %v2203_v39, %v2206_v3  ;;  %v10717_v19 = vld [vmem:[#allocation1 + $0x36] sm:$0xff]  ;;  %v9686_v3 = vld [vmem:[#allocation9 + $0x5c8] sm:$0xff] }
 0x128   :  { %6715 = vmatpush.bf16.msra.mxu3 %v9654_v38  ;;  %v2208_v16 = vsel %vm139_vm0, %v2200_v5, %v2207_v24  ;;  %v9691_v29 = vld [vmem:[#allocation9 + $0x5f0] sm:$0xff]  ;;  %v9666_v38 = vld [vmem:[#allocation9 + $0x528] sm:$0xff]  ;;  %v9680_v39 = vld [vmem:[#allocation9 + $0x598] sm:$0xff] }
 0x129   :  { %3317 = vst [vmem:[#allocation1] ss:$9 sm:$0xff] %v2208_v16  ;;  %v9663_v14 = vld [vmem:[#allocation9 + $0x510] sm:$0xff]  ;;  %v9661_v16 = vld [vmem:[#allocation9 + $0x500] sm:$0xff] }
 0x12a   :  { %6677 = vmatpush.bf16.msra.mxu0 %v9629_v17  ;;  %v9690_v17 = vld [vmem:[#allocation9 + $0x5e8] sm:$0xff] }
 0x12b   :  { %6690 = vmatpush.bf16.msra.mxu1 %v9637_v22  ;;  %6703 = vmatpush.bf16.msra.mxu2 %v9645_v15  ;;  %v9665_v22 = vld [vmem:[#allocation9 + $0x520] sm:$0xff]  ;;  %v9671_v15 = vld [vmem:[#allocation9 + $0x550] sm:$0xff] }
 0x12c   :  { %6716 = vmatpush.bf16.msra.mxu3 %v9653_v46  ;;  %v9679_v46 = vld [vmem:[#allocation9 + $0x590] sm:$0xff] }
 0x12d   :  { %6678 = vmatmul.bf16.vlgmr.msra.gmra.mxu0 %v10552_v43  ;;  %v9681_v43 = vld [vmem:[#allocation9 + $0x5a0] sm:$0xff] }
 0x12e   :  { %6722 = vmatpush.bf16.msrb.mxu0 %v9668_v56  ;;  %6691 = vmatmul.bf16.vlgmr.msra.gmra.mxu1 %v10554_v41  ;;  %v9689_v41 = vld [vmem:[#allocation9 + $0x5e0] sm:$0xff]  ;;  %v9687_v56 = vld [vmem:[#allocation9 + $0x5d0] sm:$0xff] }
 0x12f   :  { %6735 = vmatpush.bf16.msrb.mxu1 %v9676_v57  ;;  %6748 = vmatpush.bf16.msrb.mxu2 %v9684_v58  ;;  %v9662_v57 = vld [vmem:[#allocation9 + $0x508] sm:$0xff] }
 0x130   :  { %6761 = vmatpush.bf16.msrb.mxu3 %v9692_v20  ;;  %6704 = vmatmul.bf16.vlgmr.msra.gmra.mxu2 %v10557_v48  ;;  %v9664_v48 = vld [vmem:[#allocation9 + $0x518] sm:$0xff]  ;;  %v9670_v58 = vld [vmem:[#allocation9 + $0x548] sm:$0xff] }
 0x131   :  { %6717 = vmatmul.bf16.vlgmr.msra.gmra.mxu3 %v10559_v49  ;;  %v9672_v49 = vld [vmem:[#allocation9 + $0x558] sm:$0xff] }
 0x132   :  { %6723 = vmatpush.bf16.msrb.mxu0 %v9667_v13  ;;  %v9669_v13 = vld [vmem:[#allocation9 + $0x540] sm:$0xff] }
 0x133   :  { %6736 = vmatpush.bf16.msrb.mxu1 %v9675_v28  ;;  %6749 = vmatpush.bf16.msrb.mxu2 %v9683_v27  ;;  %v9677_v28 = vld [vmem:[#allocation9 + $0x580] sm:$0xff] }
 0x134   :  { %6762 = vmatpush.bf16.msrb.mxu3 %v9691_v29  ;;  %v9685_v27 = vld [vmem:[#allocation9 + $0x5c0] sm:$0xff]  ;;  %v9700_v29 = vld [vmem:[#allocation9 + $0x638] sm:$0xff] }
 0x136   :  { %6724 = vmatpush.bf16.msrb.mxu0 %v9666_v38  ;;  %v9708_v38 = vld [vmem:[#allocation9 + $0x678] sm:$0xff] }
 0x137   :  { %6737 = vmatpush.bf16.msrb.mxu1 %v9674_v4  ;;  %6750 = vmatpush.bf16.msrb.mxu2 %v9682_v11  ;;  %v9716_v4 = vld [vmem:[#allocation9 + $0x6b8] sm:$0xff] }
 0x138   :  { %6763 = vmatpush.bf16.msrb.mxu3 %v9690_v17  ;;  %v9724_v11 = vld [vmem:[#allocation9 + $0x6f8] sm:$0xff] }
 0x13a   :  { %6725 = vmatpush.bf16.msrb.mxu0 %v9665_v22  ;;  %v6471_v20 = vpop.f32.mrf.mxu0  ;;  %v6484_v5 = vpop.f32.mrf.mxu1 }
 0x13b   :  { %6738 = vmatpush.bf16.msrb.mxu1 %v9673_v36  ;;  %6751 = vmatpush.bf16.msrb.mxu2 %v9681_v43  ;;  %v6485_v24 = vadd.f32 %v6484_v5, %v6471_v20  ;;  %v9699_v36 = vld [vmem:[#allocation9 + $0x630] sm:$0xff] }
 0x13c   :  { %6764 = vmatpush.bf16.msrb.mxu3 %v9689_v41  ;;  %v9707_v43 = vld [vmem:[#allocation9 + $0x670] sm:$0xff] }
 0x13e   :  { %6726 = vmatpush.bf16.msrb.mxu0 %v9664_v48  ;;  %v9715_v48 = vld [vmem:[#allocation9 + $0x6b0] sm:$0xff] }
 0x13f   :  { %6739 = vmatpush.bf16.msrb.mxu1 %v9672_v49  ;;  %6752 = vmatpush.bf16.msrb.mxu2 %v9680_v39  ;;  %v9723_v49 = vld [vmem:[#allocation9 + $0x6f0] sm:$0xff] }
 0x140   :  { %6765 = vmatpush.bf16.msrb.mxu3 %v9688_v31 }
 0x141   :  { %v6497_v17 = vpop.f32.mrf.mxu2 }
 0x142   :  { %6727 = vmatpush.bf16.msrb.mxu0 %v9663_v14  ;;  %v6498_v41 = vadd.f32 %v6497_v17, %v6485_v24  ;;  %v6473_v39 = vpop.f32.mrf.mxu0  ;;  %v6486_v31 = vpop.f32.mrf.mxu1  ;;  %v9696_v24 = vld [vmem:[#allocation9 + $0x618] sm:$0xff] }
 0x143   :  { %6740 = vmatpush.bf16.msrb.mxu1 %v9671_v15  ;;  %6753 = vmatpush.bf16.msrb.mxu2 %v9679_v46  ;;  %v9698_v15 = vld [vmem:[#allocation9 + $0x628] sm:$0xff] }
 0x144   :  { %6766 = vmatpush.bf16.msrb.mxu3 %v9687_v56  ;;  %v6510_v22 = vpop.f32.mrf.mxu3  ;;  %v9706_v46 = vld [vmem:[#allocation9 + $0x668] sm:$0xff] }
 0x145   :  { %v6511_v14 = vadd.f32 %v6510_v22, %v6498_v41  ;;  %v9714_v56 = vld [vmem:[#allocation9 + $0x6a8] sm:$0xff] }
 0x146   :  { %6728 = vmatpush.bf16.msrb.mxu0 %v9662_v57  ;;  %v9722_v57 = vld [vmem:[#allocation9 + $0x6e8] sm:$0xff] }
 0x147   :  { %6741 = vmatpush.bf16.msrb.mxu1 %v9670_v58  ;;  %6754 = vmatpush.bf16.msrb.mxu2 %v9678_v2  ;;  %v9710_v31 = vld [vmem:[#allocation9 + $0x688] sm:$0xff] }
 0x148   :  { %6767 = vmatpush.bf16.msrb.mxu3 %v9686_v3  ;;  %v9705_v3 = vld [vmem:[#allocation9 + $0x660] sm:$0xff] }
 0x149   :  { %v6499_v58 = vpop.f32.mrf.mxu2 }
 0x14a   :  { %6729 = vmatpush.bf16.msrb.mxu0 %v9661_v16  ;;  %v9704_v16 = vld [vmem:[#allocation9 + $0x658] sm:$0xff] }
 0x14b   :  { %6742 = vmatpush.bf16.msrb.mxu1 %v9669_v13  ;;  %6755 = vmatpush.bf16.msrb.mxu2 %v9677_v28  ;;  %v6536_v20 = vpop.f32.mrf.mxu1  ;;  %v9712_v13 = vld [vmem:[#allocation9 + $0x698] sm:$0xff] }
 0x14c   :  { %6768 = vmatpush.bf16.msrb.mxu3 %v9685_v27  ;;  %v6512_v2 = vpop.f32.mrf.mxu3  ;;  %v9720_v28 = vld [vmem:[#allocation9 + $0x6d8] sm:$0xff] }
 0x14d   :  { %6730 = vmatmul.bf16.vlgmr.msrb.gmra.mxu0 %v10561_v50  ;;  %v9697_v50 = vld [vmem:[#allocation9 + $0x620] sm:$0xff] }
 0x14e   :  { %6774 = vmatpush.bf16.msra.mxu0 %v9700_v29  ;;  %6743 = vmatmul.bf16.vlgmr.msrb.gmra.mxu1 %v10563_v52  ;;  %v9713_v52 = vld [vmem:[#allocation9 + $0x6a0] sm:$0xff]  ;;  %v9695_v29 = vld [vmem:[#allocation9 + $0x610] sm:$0xff] }
 0x14f   :  { %6787 = vmatpush.bf16.msra.mxu1 %v9708_v38  ;;  %6800 = vmatpush.bf16.msra.mxu2 %v9716_v4  ;;  %v9703_v38 = vld [vmem:[#allocation9 + $0x650] sm:$0xff] }
 0x150   :  { %6813 = vmatpush.bf16.msra.mxu3 %v9724_v11  ;;  %6756 = vmatmul.bf16.vlgmr.msrb.gmra.mxu2 %v10565_v53  ;;  %v9721_v53 = vld [vmem:[#allocation9 + $0x6e0] sm:$0xff]  ;;  %v9711_v4 = vld [vmem:[#allocation9 + $0x690] sm:$0xff] }
 0x151   :  { %6769 = vmatmul.bf16.vlgmr.msrb.gmra.mxu3 %v10567_v54  ;;  %v6523_v54 = vpop.f32.mrf.mxu0  ;;  %v9719_v11 = vld [vmem:[#allocation9 + $0x6d0] sm:$0xff] }
 0x152   :  { %6775 = vmatpush.bf16.msra.mxu0 %v9699_v36  ;;  %v6524_v5 = vadd.f32 %v6523_v54, %v6511_v14  ;;  %v9718_v14 = vld [vmem:[#allocation9 + $0x6c8] sm:$0xff]  ;;  %v9731_v54 = vld [vmem:[#allocation9 + $0x730] sm:$0xff] }
 0x153   :  { %6788 = vmatpush.bf16.msra.mxu1 %v9707_v43  ;;  %6801 = vmatpush.bf16.msra.mxu2 %v9715_v48  ;;  %v6549_v17 = vpop.f32.mrf.mxu2  ;;  %v6538_v41 = vpop.f32.mrf.mxu1  ;;  %v9694_v48 = vld [vmem:[#allocation9 + $0x608] sm:$0xff] }
 0x154   :  { %6814 = vmatpush.bf16.msra.mxu3 %v9723_v49  ;;  %v6537_v27 = vadd.f32 %v6536_v20, %v6524_v5  ;;  %v6562_v22 = vpop.f32.mrf.mxu3  ;;  %v9702_v49 = vld [vmem:[#allocation9 + $0x648] sm:$0xff]  ;;  %v9739_v20 = vld [vmem:[#allocation9 + $0x770] sm:$0xff] }
 0x155   :  { %v9747_v5 = vld [vmem:[#allocation9 + $0x7b0] sm:$0xff] }
 0x156   :  { %6776 = vmatpush.bf16.msra.mxu0 %v9698_v15  ;;  %v6550_v36 = vadd.f32 %v6549_v17, %v6537_v27  ;;  %v9693_v15 = vld [vmem:[#allocation9 + $0x600] sm:$0xff]  ;;  %v9754_v27 = vld [vmem:[#allocation9 + $0x7e8] sm:$0xff]  ;;  %v9728_v17 = vld [vmem:[#allocation9 + $0x718] sm:$0xff] }
 0x157   :  { %6789 = vmatpush.bf16.msra.mxu1 %v9706_v46  ;;  %6802 = vmatpush.bf16.msra.mxu2 %v9714_v56  ;;  %v9701_v46 = vld [vmem:[#allocation9 + $0x640] sm:$0xff] }
 0x158   :  { %6815 = vmatpush.bf16.msra.mxu3 %v9722_v57  ;;  %v6563_v39 = vadd.f32 %v6562_v22, %v6550_v36  ;;  %v9709_v56 = vld [vmem:[#allocation9 + $0x680] sm:$0xff]  ;;  %v9736_v22 = vld [vmem:[#allocation9 + $0x758] sm:$0xff] }
 0x159   :  { %v6525_v43 = vpop.f32.mrf.mxu0  ;;  %v9717_v57 = vld [vmem:[#allocation9 + $0x6c0] sm:$0xff]  ;;  %v9744_v36 = vld [vmem:[#allocation9 + $0x798] sm:$0xff] }
 0x15a   :  { %6777 = vmatpush.bf16.msra.mxu0 %v9697_v50  ;;  %v9732_v50 = vld [vmem:[#allocation9 + $0x738] sm:$0xff] }
 0x15b   :  { %6790 = vmatpush.bf16.msra.mxu1 %v9705_v3  ;;  %6803 = vmatpush.bf16.msra.mxu2 %v9713_v52  ;;  %v6551_v58 = vpop.f32.mrf.mxu2  ;;  %v9740_v3 = vld [vmem:[#allocation9 + $0x778] sm:$0xff] }
 0x15c   :  { %6816 = vmatpush.bf16.msra.mxu3 %v9721_v53  ;;  %v6564_v2 = vpop.f32.mrf.mxu3  ;;  %v9748_v52 = vld [vmem:[#allocation9 + $0x7b8] sm:$0xff]  ;;  %v9726_v58 = vld [vmem:[#allocation9 + $0x708] sm:$0xff] }
 0x15d   :  { %v9756_v53 = vld [vmem:[#allocation9 + $0x7f8] sm:$0xff]  ;;  %v9734_v2 = vld [vmem:[#allocation9 + $0x748] sm:$0xff] }
 0x15e   :  { %6778 = vmatpush.bf16.msra.mxu0 %v9696_v24  ;;  %v9755_v24 = vld [vmem:[#allocation9 + $0x7f0] sm:$0xff]  ;;  %v9752_v43 = vld [vmem:[#allocation9 + $0x7d8] sm:$0xff] }
 0x15f   :  { %6791 = vmatpush.bf16.msra.mxu1 %v9704_v16  ;;  %6804 = vmatpush.bf16.msra.mxu2 %v9712_v13  ;;  %v9730_v16 = vld [vmem:[#allocation9 + $0x728] sm:$0xff] }
 0x160   :  { %6817 = vmatpush.bf16.msra.mxu3 %v9720_v28  ;;  %v9738_v13 = vld [vmem:[#allocation9 + $0x768] sm:$0xff] }
 0x161   :  { %v9746_v28 = vld [vmem:[#allocation9 + $0x7a8] sm:$0xff] }
 0x162   :  { %6779 = vmatpush.bf16.msra.mxu0 %v9695_v29 }
 0x163   :  { %6792 = vmatpush.bf16.msra.mxu1 %v9703_v38  ;;  %6805 = vmatpush.bf16.msra.mxu2 %v9711_v4 }
 0x164   :  { %6818 = vmatpush.bf16.msra.mxu3 %v9719_v11  ;;  %v9737_v11 = vld [vmem:[#allocation9 + $0x760] sm:$0xff] }
 0x166   :  { %6780 = vmatpush.bf16.msra.mxu0 %v9694_v48 }
 0x167   :  { %6793 = vmatpush.bf16.msra.mxu1 %v9702_v49  ;;  %6806 = vmatpush.bf16.msra.mxu2 %v9710_v31 }
 0x168   :  { %6819 = vmatpush.bf16.msra.mxu3 %v9718_v14  ;;  %v9727_v14 = vld [vmem:[#allocation9 + $0x710] sm:$0xff] }
 0x16a   :  { %6781 = vmatpush.bf16.msra.mxu0 %v9693_v15  ;;  %v6575_v29 = vpop.f32.mrf.mxu0  ;;  %v9735_v15 = vld [vmem:[#allocation9 + $0x750] sm:$0xff] }
 0x16b   :  { %6794 = vmatpush.bf16.msra.mxu1 %v9701_v46  ;;  %6807 = vmatpush.bf16.msra.mxu2 %v9709_v56  ;;  %v6588_v38 = vpop.f32.mrf.mxu1  ;;  %v6576_v4 = vadd.f32 %v6575_v29, %v6563_v39  ;;  %v9743_v56 = vld [vmem:[#allocation9 + $0x790] sm:$0xff] }
 0x16c   :  { %6820 = vmatpush.bf16.msra.mxu3 %v9717_v57  ;;  %v9751_v57 = vld [vmem:[#allocation9 + $0x7d0] sm:$0xff] }
 0x16d   :  { %6782 = vmatmul.bf16.vlgmr.msra.gmra.mxu0 %v10604_v51  ;;  %v9729_v51 = vld [vmem:[#allocation9 + $0x720] sm:$0xff]  ;;  %v9763_v29 = vld [vmem:[#allocation9 + $0x830] sm:$0xff] }
 0x16e   :  { %6826 = vmatpush.bf16.msrb.mxu0 %v9732_v50  ;;  %6795 = vmatmul.bf16.vlgmr.msra.gmra.mxu1 %v10606_v55  ;;  %v9745_v55 = vld [vmem:[#allocation9 + $0x7a0] sm:$0xff]  ;;  %v9742_v50 = vld [vmem:[#allocation9 + $0x788] sm:$0xff] }
 0x16f   :  { %6839 = vmatpush.bf16.msrb.mxu1 %v9740_v3  ;;  %6852 = vmatpush.bf16.msrb.mxu2 %v9748_v52  ;;  %v9750_v3 = vld [vmem:[#allocation9 + $0x7c8] sm:$0xff] }
 0x170   :  { %6865 = vmatpush.bf16.msrb.mxu3 %v9756_v53  ;;  %6808 = vmatmul.bf16.vlgmr.msra.gmra.mxu2 %v10611_v60  ;;  %v9753_v60 = vld [vmem:[#allocation9 + $0x7e0] sm:$0xff] }
 0x171   :  { %6821 = vmatmul.bf16.vlgmr.msra.gmra.mxu3 %v10613_v62  ;;  %v6589_v62 = vadd.f32 %v6588_v38, %v6576_v4  ;;  %v9771_v38 = vld [vmem:[#allocation9 + $0x870] sm:$0xff] }
 0x172   :  { %6827 = vmatpush.bf16.msrb.mxu0 %v9731_v54  ;;  %v6577_v31 = vpop.f32.mrf.mxu0  ;;  %v9725_v54 = vld [vmem:[#allocation9 + $0x700] sm:$0xff]  ;;  %v9779_v4 = vld [vmem:[#allocation9 + $0x8b0] sm:$0xff] }
 0x173   :  { %6840 = vmatpush.bf16.msrb.mxu1 %v9739_v20  ;;  %6853 = vmatpush.bf16.msrb.mxu2 %v9747_v5  ;;  %v6601_v41 = vpop.f32.mrf.mxu2  ;;  %v6590_v39 = vpop.f32.mrf.mxu1  ;;  %v9733_v20 = vld [vmem:[#allocation9 + $0x740] sm:$0xff]  ;;  %v9784_v31 = vld [vmem:[#allocation9 + $0x8d8] sm:$0xff] }
 0x174   :  { %6866 = vmatpush.bf16.msrb.mxu3 %v9755_v24  ;;  %v6614_v48 = vpop.f32.mrf.mxu3  ;;  %v6602_v49 = vadd.f32 %v6601_v41, %v6589_v62  ;;  %v9741_v5 = vld [vmem:[#allocation9 + $0x780] sm:$0xff]  ;;  %v9786_v62 = vld [vmem:[#allocation9 + $0x8e8] sm:$0xff]  ;;  %v9760_v41 = vld [vmem:[#allocation9 + $0x818] sm:$0xff] }
 0x175   :  { %v9749_v24 = vld [vmem:[#allocation9 + $0x7c0] sm:$0xff] }
 0x176   :  { %6828 = vmatpush.bf16.msrb.mxu0 %v9730_v16  ;;  %v6615_v46 = vadd.f32 %v6614_v48, %v6602_v49  ;;  %v9764_v16 = vld [vmem:[#allocation9 + $0x838] sm:$0xff] }
 0x177   :  { %6841 = vmatpush.bf16.msrb.mxu1 %v9738_v13  ;;  %6854 = vmatpush.bf16.msrb.mxu2 %v9746_v28  ;;  %v9772_v13 = vld [vmem:[#allocation9 + $0x878] sm:$0xff] }
 0x178   :  { %6867 = vmatpush.bf16.msrb.mxu3 %v9754_v27  ;;  %v9780_v28 = vld [vmem:[#allocation9 + $0x8b8] sm:$0xff] }
 0x179   :  { %v9788_v27 = vld [vmem:[#allocation9 + $0x8f8] sm:$0xff] }
 0x17a   :  { %6829 = vmatpush.bf16.msrb.mxu0 %v9729_v51  ;;  %v9787_v51 = vld [vmem:[#allocation9 + $0x8f0] sm:$0xff]  ;;  %v9768_v48 = vld [vmem:[#allocation9 + $0x858] sm:$0xff] }
 0x17b   :  { %6842 = vmatpush.bf16.msrb.mxu1 %v9737_v11  ;;  %6855 = vmatpush.bf16.msrb.mxu2 %v9745_v55  ;;  %v6603_v52 = vpop.f32.mrf.mxu2  ;;  %v9762_v11 = vld [vmem:[#allocation9 + $0x828] sm:$0xff]  ;;  %v9776_v49 = vld [vmem:[#allocation9 + $0x898] sm:$0xff] }
 0x17c   :  { %6868 = vmatpush.bf16.msrb.mxu3 %v9753_v60  ;;  %v6616_v53 = vpop.f32.mrf.mxu3  ;;  %v9770_v55 = vld [vmem:[#allocation9 + $0x868] sm:$0xff] }
 0x17d   :  { %v9778_v60 = vld [vmem:[#allocation9 + $0x8a8] sm:$0xff] }
 0x17e   :  { %6830 = vmatpush.bf16.msrb.mxu0 %v9728_v17  ;;  %v9758_v52 = vld [vmem:[#allocation9 + $0x808] sm:$0xff] }
 0x17f   :  { %6843 = vmatpush.bf16.msrb.mxu1 %v9736_v22  ;;  %6856 = vmatpush.bf16.msrb.mxu2 %v9744_v36  ;;  %v9766_v53 = vld [vmem:[#allocation9 + $0x848] sm:$0xff] }
 0x180   :  { %6869 = vmatpush.bf16.msrb.mxu3 %v9752_v43  ;;  %v9769_v43 = vld [vmem:[#allocation9 + $0x860] sm:$0xff] }
 0x182   :  { %6831 = vmatpush.bf16.msrb.mxu0 %v9727_v14 }
 0x183   :  { %6844 = vmatpush.bf16.msrb.mxu1 %v9735_v15  ;;  %6857 = vmatpush.bf16.msrb.mxu2 %v9743_v56 }
 0x184   :  { %6870 = vmatpush.bf16.msrb.mxu3 %v9751_v57  ;;  %v9759_v57 = vld [vmem:[#allocation9 + $0x810] sm:$0xff] }
 0x186   :  { %6832 = vmatpush.bf16.msrb.mxu0 %v9726_v58  ;;  %v9767_v58 = vld [vmem:[#allocation9 + $0x850] sm:$0xff] }
 0x187   :  { %6845 = vmatpush.bf16.msrb.mxu1 %v9734_v2  ;;  %6858 = vmatpush.bf16.msrb.mxu2 %v9742_v50  ;;  %v9775_v50 = vld [vmem:[#allocation9 + $0x890] sm:$0xff] }
 0x188   :  { %6871 = vmatpush.bf16.msrb.mxu3 %v9750_v3  ;;  %v9783_v3 = vld [vmem:[#allocation9 + $0x8d0] sm:$0xff] }
 0x18a   :  { %6833 = vmatpush.bf16.msrb.mxu0 %v9725_v54  ;;  %v6627_v17 = vpop.f32.mrf.mxu0  ;;  %v9774_v54 = vld [vmem:[#allocation9 + $0x888] sm:$0xff] }
 0x18b   :  { %6846 = vmatpush.bf16.msrb.mxu1 %v9733_v20  ;;  %6859 = vmatpush.bf16.msrb.mxu2 %v9741_v5  ;;  %v6640_v22 = vpop.f32.mrf.mxu1  ;;  %v6628_v36 = vadd.f32 %v6627_v17, %v6615_v46  ;;  %v9782_v20 = vld [vmem:[#allocation9 + $0x8c8] sm:$0xff] }
 0x18c   :  { %6872 = vmatpush.bf16.msrb.mxu3 %v9749_v24  ;;  %v9794_v17 = vld [vmem:[#allocation9 + $0x928] sm:$0xff] }
 0x18d   :  { %6834 = vmatmul.bf16.vlgmr.msrb.gmra.mxu0 %v10615_v63  ;;  %v9761_v63 = vld [vmem:[#allocation9 + $0x820] sm:$0xff] }
 0x18e   :  { %6878 = vmatpush.bf16.msra.mxu0 %v9764_v16  ;;  %6847 = vmatmul.bf16.vlgmr.msrb.gmra.mxu1 %v10618_v8  ;;  %v9777_v8 = vld [vmem:[#allocation9 + $0x8a0] sm:$0xff] }
 0x18f   :  { %6891 = vmatpush.bf16.msra.mxu1 %v9772_v13  ;;  %6904 = vmatpush.bf16.msra.mxu2 %v9780_v28  ;;  %v9757_v16 = vld [vmem:[#allocation9 + $0x800] sm:$0xff] }
 0x190   :  { %6917 = vmatpush.bf16.msra.mxu3 %v9788_v27  ;;  %6860 = vmatmul.bf16.vlgmr.msrb.gmra.mxu2 %v10620_v37  ;;  %v9785_v37 = vld [vmem:[#allocation9 + $0x8e0] sm:$0xff] }
 0x191   :  { %6873 = vmatmul.bf16.vlgmr.msrb.gmra.mxu3 %v10622_v9  ;;  %v6641_v9 = vadd.f32 %v6640_v22, %v6628_v36  ;;  %v9765_v13 = vld [vmem:[#allocation9 + $0x840] sm:$0xff]  ;;  %v9802_v22 = vld [vmem:[#allocation9 + $0x968] sm:$0xff] }
 0x192   :  { %6879 = vmatpush.bf16.msra.mxu0 %v9763_v29  ;;  %v6629_v56 = vpop.f32.mrf.mxu0  ;;  %v9773_v28 = vld [vmem:[#allocation9 + $0x880] sm:$0xff]  ;;  %v9796_v29 = vld [vmem:[#allocation9 + $0x938] sm:$0xff]  ;;  %v9810_v36 = vld [vmem:[#allocation9 + $0x9a8] sm:$0xff] }
 0x193   :  { %6892 = vmatpush.bf16.msra.mxu1 %v9771_v38  ;;  %6905 = vmatpush.bf16.msra.mxu2 %v9779_v4  ;;  %v6653_v39 = vpop.f32.mrf.mxu2  ;;  %v6642_v46 = vpop.f32.mrf.mxu1  ;;  %v9781_v27 = vld [vmem:[#allocation9 + $0x8c0] sm:$0xff]  ;;  %v9804_v38 = vld [vmem:[#allocation9 + $0x978] sm:$0xff] }
 0x194   :  { %6918 = vmatpush.bf16.msra.mxu3 %v9787_v51  ;;  %v6666_v14 = vpop.f32.mrf.mxu3  ;;  %v6654_v15 = vadd.f32 %v6653_v39, %v6641_v9  ;;  %v9812_v4 = vld [vmem:[#allocation9 + $0x9b8] sm:$0xff]  ;;  %v9801_v9 = vld [vmem:[#allocation9 + $0x960] sm:$0xff] }
 0x195   :  { %v9820_v51 = vld [vmem:[#allocation9 + $0x9f8] sm:$0xff] }
 0x196   :  { %6880 = vmatpush.bf16.msra.mxu0 %v9762_v11  ;;  %v6667_v2 = vadd.f32 %v6666_v14, %v6654_v15  ;;  %v9795_v11 = vld [vmem:[#allocation9 + $0x930] sm:$0xff] }
 0x197   :  { %6893 = vmatpush.bf16.msra.mxu1 %v9770_v55  ;;  %6906 = vmatpush.bf16.msra.mxu2 %v9778_v60  ;;  %v9803_v55 = vld [vmem:[#allocation9 + $0x970] sm:$0xff] }
 0x198   :  { %6919 = vmatpush.bf16.msra.mxu3 %v9786_v62  ;;  %v9811_v60 = vld [vmem:[#allocation9 + $0x9b0] sm:$0xff] }
 0x199   :  { %v9819_v62 = vld [vmem:[#allocation9 + $0x9f0] sm:$0xff] }
 0x19a   :  { %6881 = vmatpush.bf16.msra.mxu0 %v9761_v63  ;;  %v9818_v63 = vld [vmem:[#allocation9 + $0x9e8] sm:$0xff] }
 0x19b   :  { %6894 = vmatpush.bf16.msra.mxu1 %v9769_v43  ;;  %6907 = vmatpush.bf16.msra.mxu2 %v9777_v8  ;;  %v6655_v5 = vpop.f32.mrf.mxu2 }
 0x19c   :  { %6920 = vmatpush.bf16.msra.mxu3 %v9785_v37  ;;  %v6668_v24 = vpop.f32.mrf.mxu3 }
 0x19e   :  { %6882 = vmatpush.bf16.msra.mxu0 %v9760_v41  ;;  %v9792_v41 = vld [vmem:[#allocation9 + $0x918] sm:$0xff] }
 0x19f   :  { %6895 = vmatpush.bf16.msra.mxu1 %v9768_v48  ;;  %6908 = vmatpush.bf16.msra.mxu2 %v9776_v49  ;;  %v9800_v48 = vld [vmem:[#allocation9 + $0x958] sm:$0xff] }
 0x1a0   :  { %6921 = vmatpush.bf16.msra.mxu3 %v9784_v31  ;;  %v9808_v49 = vld [vmem:[#allocation9 + $0x998] sm:$0xff] }
 0x1a1   :  { %v9816_v31 = vld [vmem:[#allocation9 + $0x9d8] sm:$0xff] }
 0x1a2   :  { %6883 = vmatpush.bf16.msra.mxu0 %v9759_v57  ;;  %v9791_v57 = vld [vmem:[#allocation9 + $0x910] sm:$0xff] }
 0x1a3   :  { %6896 = vmatpush.bf16.msra.mxu1 %v9767_v58  ;;  %6909 = vmatpush.bf16.msra.mxu2 %v9775_v50  ;;  %v9799_v58 = vld [vmem:[#allocation9 + $0x950] sm:$0xff] }
 0x1a4   :  { %6922 = vmatpush.bf16.msra.mxu3 %v9783_v3  ;;  %v9807_v50 = vld [vmem:[#allocation9 + $0x990] sm:$0xff] }
 0x1a5   :  { %v9815_v3 = vld [vmem:[#allocation9 + $0x9d0] sm:$0xff] }
 0x1a6   :  { %6884 = vmatpush.bf16.msra.mxu0 %v9758_v52  ;;  %v9790_v52 = vld [vmem:[#allocation9 + $0x908] sm:$0xff] }
 0x1a7   :  { %6897 = vmatpush.bf16.msra.mxu1 %v9766_v53  ;;  %6910 = vmatpush.bf16.msra.mxu2 %v9774_v54  ;;  %v9798_v53 = vld [vmem:[#allocation9 + $0x948] sm:$0xff] }
 0x1a8   :  { %6923 = vmatpush.bf16.msra.mxu3 %v9782_v20  ;;  %v9806_v54 = vld [vmem:[#allocation9 + $0x988] sm:$0xff] }
 0x1a9   :  { %v9814_v20 = vld [vmem:[#allocation9 + $0x9c8] sm:$0xff] }
 0x1aa   :  { %6885 = vmatpush.bf16.msra.mxu0 %v9757_v16  ;;  %v6679_v43 = vpop.f32.mrf.mxu0  ;;  %v9789_v16 = vld [vmem:[#allocation9 + $0x900] sm:$0xff] }
 0x1ab   :  { %6898 = vmatpush.bf16.msra.mxu1 %v9765_v13  ;;  %6911 = vmatpush.bf16.msra.mxu2 %v9773_v28  ;;  %v6692_v8 = vpop.f32.mrf.mxu1  ;;  %v6680_v37 = vadd.f32 %v6679_v43, %v6667_v2  ;;  %v9797_v13 = vld [vmem:[#allocation9 + $0x940] sm:$0xff] }
 0x1ac   :  { %6924 = vmatpush.bf16.msra.mxu3 %v9781_v27  ;;  %v9805_v28 = vld [vmem:[#allocation9 + $0x980] sm:$0xff] }
 0x1ad   :  { %6886 = vmatmul.bf16.vlgmr.msra.gmra.mxu0 %v10641_v35  ;;  %v9793_v35 = vld [vmem:[#allocation9 + $0x920] sm:$0xff] }
 0x1ae   :  { %6930 = vmatpush.bf16.msrb.mxu0 %v9796_v29  ;;  %6899 = vmatmul.bf16.vlgmr.msra.gmra.mxu1 %v10643_v61  ;;  %v9809_v61 = vld [vmem:[#allocation9 + $0x9a0] sm:$0xff]  ;;  %v9828_v29 = vld [vmem:[#allocation9 + $0xa38] sm:$0xff] }
 0x1af   :  { %6943 = vmatpush.bf16.msrb.mxu1 %v9804_v38  ;;  %6956 = vmatpush.bf16.msrb.mxu2 %v9812_v4  ;;  %v9813_v27 = vld [vmem:[#allocation9 + $0x9c0] sm:$0xff]  ;;  %v9836_v38 = vld [vmem:[#allocation9 + $0xa78] sm:$0xff] }
 0x1b0   :  { %6969 = vmatpush.bf16.msrb.mxu3 %v9820_v51  ;;  %6912 = vmatmul.bf16.vlgmr.msra.gmra.mxu2 %v10648_v44  ;;  %v9817_v44 = vld [vmem:[#allocation9 + $0x9e0] sm:$0xff]  ;;  %v9844_v4 = vld [vmem:[#allocation9 + $0xab8] sm:$0xff] }
 0x1b1   :  { %6925 = vmatmul.bf16.vlgmr.msra.gmra.mxu3 %v10650_v47  ;;  %v6693_v47 = vadd.f32 %v6692_v8, %v6680_v37  ;;  %v9852_v51 = vld [vmem:[#allocation9 + $0xaf8] sm:$0xff] }
 0x1b2   :  { %6931 = vmatpush.bf16.msrb.mxu0 %v9795_v11  ;;  %v6681_v56 = vpop.f32.mrf.mxu0  ;;  %v9827_v11 = vld [vmem:[#allocation9 + $0xa30] sm:$0xff] }
 0x1b3   :  { %6944 = vmatpush.bf16.msrb.mxu1 %v9803_v55  ;;  %6957 = vmatpush.bf16.msrb.mxu2 %v9811_v60  ;;  %v6705_v39 = vpop.f32.mrf.mxu2  ;;  %v6694_v46 = vpop.f32.mrf.mxu1  ;;  %v9835_v55 = vld [vmem:[#allocation9 + $0xa70] sm:$0xff] }
 0x1b4   :  { %6970 = vmatpush.bf16.msrb.mxu3 %v9819_v62  ;;  %v6718_v14 = vpop.f32.mrf.mxu3  ;;  %v6706_v15 = vadd.f32 %v6705_v39, %v6693_v47  ;;  %v9843_v60 = vld [vmem:[#allocation9 + $0xab0] sm:$0xff]  ;;  %v9848_v47 = vld [vmem:[#allocation9 + $0xad8] sm:$0xff] }
 0x1b5   :  { %v9851_v62 = vld [vmem:[#allocation9 + $0xaf0] sm:$0xff] }
 0x1b6   :  { %6932 = vmatpush.bf16.msrb.mxu0 %v9794_v17  ;;  %v6719_v2 = vadd.f32 %v6718_v14, %v6706_v15  ;;  %v9826_v17 = vld [vmem:[#allocation9 + $0xa28] sm:$0xff]  ;;  %v9823_v14 = vld [vmem:[#allocation9 + $0xa10] sm:$0xff] }
 0x1b7   :  { %6945 = vmatpush.bf16.msrb.mxu1 %v9802_v22  ;;  %6958 = vmatpush.bf16.msrb.mxu2 %v9810_v36  ;;  %v9834_v22 = vld [vmem:[#allocation9 + $0xa68] sm:$0xff]  ;;  %v9831_v15 = vld [vmem:[#allocation9 + $0xa50] sm:$0xff] }
 0x1b8   :  { %6971 = vmatpush.bf16.msrb.mxu3 %v9818_v63  ;;  %v9842_v36 = vld [vmem:[#allocation9 + $0xaa8] sm:$0xff]  ;;  %v9839_v46 = vld [vmem:[#allocation9 + $0xa90] sm:$0xff] }
 0x1b9   :  { %v9850_v63 = vld [vmem:[#allocation9 + $0xae8] sm:$0xff] }
 0x1ba   :  { %6933 = vmatpush.bf16.msrb.mxu0 %v9793_v35  ;;  %v9833_v35 = vld [vmem:[#allocation9 + $0xa60] sm:$0xff] }
 0x1bb   :  { %6946 = vmatpush.bf16.msrb.mxu1 %v9801_v9  ;;  %6959 = vmatpush.bf16.msrb.mxu2 %v9809_v61  ;;  %v6707_v5 = vpop.f32.mrf.mxu2  ;;  %v9824_v9 = vld [vmem:[#allocation9 + $0xa18] sm:$0xff] }
 0x1bc   :  { %6972 = vmatpush.bf16.msrb.mxu3 %v9817_v44  ;;  %v6720_v24 = vpop.f32.mrf.mxu3  ;;  %v9832_v61 = vld [vmem:[#allocation9 + $0xa58] sm:$0xff]  ;;  %v9837_v5 = vld [vmem:[#allocation9 + $0xa80] sm:$0xff] }
 0x1bd   :  { %v9840_v44 = vld [vmem:[#allocation9 + $0xa98] sm:$0xff]  ;;  %v9845_v24 = vld [vmem:[#allocation9 + $0xac0] sm:$0xff] }
 0x1be   :  { %6934 = vmatpush.bf16.msrb.mxu0 %v9792_v41 }
 0x1bf   :  { %6947 = vmatpush.bf16.msrb.mxu1 %v9800_v48  ;;  %6960 = vmatpush.bf16.msrb.mxu2 %v9808_v49 }
 0x1c0   :  { %6973 = vmatpush.bf16.msrb.mxu3 %v9816_v31 }
 0x1c2   :  { %6935 = vmatpush.bf16.msrb.mxu0 %v9791_v57  ;;  %v9847_v57 = vld [vmem:[#allocation9 + $0xad0] sm:$0xff] }
 0x1c3   :  { %6948 = vmatpush.bf16.msrb.mxu1 %v9799_v58  ;;  %6961 = vmatpush.bf16.msrb.mxu2 %v9807_v50  ;;  %v9822_v58 = vld [vmem:[#allocation9 + $0xa08] sm:$0xff] }
 0x1c4   :  { %6974 = vmatpush.bf16.msrb.mxu3 %v9815_v3  ;;  %v9838_v50 = vld [vmem:[#allocation9 + $0xa88] sm:$0xff] }
 0x1c5   :  { %v9846_v3 = vld [vmem:[#allocation9 + $0xac8] sm:$0xff] }
 0x1c6   :  { %6936 = vmatpush.bf16.msrb.mxu0 %v9790_v52 }
 0x1c7   :  { %6949 = vmatpush.bf16.msrb.mxu1 %v9798_v53  ;;  %6962 = vmatpush.bf16.msrb.mxu2 %v9806_v54  ;;  %v9821_v54 = vld [vmem:[#allocation9 + $0xa00] sm:$0xff] }
 0x1c8   :  { %6975 = vmatpush.bf16.msrb.mxu3 %v9814_v20  ;;  %v9829_v20 = vld [vmem:[#allocation9 + $0xa40] sm:$0xff] }
 0x1ca   :  { %6937 = vmatpush.bf16.msrb.mxu0 %v9789_v16  ;;  %v6731_v43 = vpop.f32.mrf.mxu0  ;;  %v9860_v16 = vld [vmem:[#allocation9 + $0xb38] sm:$0xff] }
 0x1cb   :  { %6950 = vmatpush.bf16.msrb.mxu1 %v9797_v13  ;;  %6963 = vmatpush.bf16.msrb.mxu2 %v9805_v28  ;;  %v6744_v8 = vpop.f32.mrf.mxu1  ;;  %v6732_v37 = vadd.f32 %v6731_v43, %v6719_v2  ;;  %v9830_v2 = vld [vmem:[#allocation9 + $0xa48] sm:$0xff]  ;;  %v9868_v13 = vld [vmem:[#allocation9 + $0xb78] sm:$0xff] }
 0x1cc   :  { %6976 = vmatpush.bf16.msrb.mxu3 %v9813_v27  ;;  %v9876_v28 = vld [vmem:[#allocation9 + $0xbb8] sm:$0xff] }
 0x1cd   :  { %6938 = vmatmul.bf16.vlgmr.msrb.gmra.mxu0 %v10652_v45  ;;  %v9825_v45 = vld [vmem:[#allocation9 + $0xa20] sm:$0xff]  ;;  %v9884_v27 = vld [vmem:[#allocation9 + $0xbf8] sm:$0xff] }
 0x1ce   :  { %6982 = vmatpush.bf16.msra.mxu0 %v9828_v29  ;;  %6951 = vmatmul.bf16.vlgmr.msrb.gmra.mxu1 %v10655_v59  ;;  %v9841_v59 = vld [vmem:[#allocation9 + $0xaa0] sm:$0xff]  ;;  %v9859_v29 = vld [vmem:[#allocation9 + $0xb30] sm:$0xff]  ;;  %v9856_v43 = vld [vmem:[#allocation9 + $0xb18] sm:$0xff] }
 0x1cf   :  { %6995 = vmatpush.bf16.msra.mxu1 %v9836_v38  ;;  %7008 = vmatpush.bf16.msra.mxu2 %v9844_v4  ;;  %v9867_v38 = vld [vmem:[#allocation9 + $0xb70] sm:$0xff] }
 0x1d0   :  { %7021 = vmatpush.bf16.msra.mxu3 %v9852_v51  ;;  %6964 = vmatmul.bf16.vlgmr.msrb.gmra.mxu2 %v10657_v1  ;;  %v9849_v1 = vld [vmem:[#allocation9 + $0xae0] sm:$0xff]  ;;  %v9875_v4 = vld [vmem:[#allocation9 + $0xbb0] sm:$0xff] }
 0x1d1   :  { %6977 = vmatmul.bf16.vlgmr.msrb.gmra.mxu3 %v10659_v0  ;;  %v6745_v0 = vadd.f32 %v6744_v8, %v6732_v37  ;;  %v9883_v51 = vld [vmem:[#allocation9 + $0xbf0] sm:$0xff]  ;;  %v9864_v8 = vld [vmem:[#allocation9 + $0xb58] sm:$0xff] }
 0x1d2   :  { %6983 = vmatpush.bf16.msra.mxu0 %v9827_v11  ;;  %v6733_v31 = vpop.f32.mrf.mxu0  ;;  %v9858_v11 = vld [vmem:[#allocation9 + $0xb28] sm:$0xff]  ;;  %v9872_v37 = vld [vmem:[#allocation9 + $0xb98] sm:$0xff] }
 0x1d3   :  { %6996 = vmatpush.bf16.msra.mxu1 %v9835_v55  ;;  %7009 = vmatpush.bf16.msra.mxu2 %v9843_v60  ;;  %v6757_v41 = vpop.f32.mrf.mxu2  ;;  %v6746_v39 = vpop.f32.mrf.mxu1  ;;  %v9866_v55 = vld [vmem:[#allocation9 + $0xb68] sm:$0xff] }
 0x1d4   :  { %7022 = vmatpush.bf16.msra.mxu3 %v9851_v62  ;;  %v6770_v48 = vpop.f32.mrf.mxu3  ;;  %v6758_v49 = vadd.f32 %v6757_v41, %v6745_v0  ;;  %v9874_v60 = vld [vmem:[#allocation9 + $0xba8] sm:$0xff]  ;;  %v9871_v41 = vld [vmem:[#allocation9 + $0xb90] sm:$0xff] }
 0x1d5   :  { %v9882_v62 = vld [vmem:[#allocation9 + $0xbe8] sm:$0xff] }
 0x1d6   :  { %6984 = vmatpush.bf16.msra.mxu0 %v9826_v17  ;;  %v6771_v56 = vadd.f32 %v6770_v48, %v6758_v49  ;;  %v9879_v48 = vld [vmem:[#allocation9 + $0xbd0] sm:$0xff]  ;;  %v9854_v49 = vld [vmem:[#allocation9 + $0xb08] sm:$0xff] }
 0x1d7   :  { %6997 = vmatpush.bf16.msra.mxu1 %v9834_v22  ;;  %7010 = vmatpush.bf16.msra.mxu2 %v9842_v36  ;;  %v9862_v31 = vld [vmem:[#allocation9 + $0xb48] sm:$0xff] }
 0x1d8   :  { %7023 = vmatpush.bf16.msra.mxu3 %v9850_v63  ;;  %v9865_v63 = vld [vmem:[#allocation9 + $0xb60] sm:$0xff]  ;;  %v9870_v39 = vld [vmem:[#allocation9 + $0xb88] sm:$0xff] }
 0x1da   :  { %6985 = vmatpush.bf16.msra.mxu0 %v9825_v45  ;;  %v9880_v45 = vld [vmem:[#allocation9 + $0xbd8] sm:$0xff] }
 0x1db   :  { %6998 = vmatpush.bf16.msra.mxu1 %v9833_v35  ;;  %7011 = vmatpush.bf16.msra.mxu2 %v9841_v59  ;;  %v6759_v52 = vpop.f32.mrf.mxu2 }
 0x1dc   :  { %7024 = vmatpush.bf16.msra.mxu3 %v9849_v1  ;;  %v6772_v53 = vpop.f32.mrf.mxu3  ;;  %v9908_v52 = vld [vmem:[#allocation9 + $0xcb8] sm:$0xff] }
 0x1dd   :  { %v9916_v53 = vld [vmem:[#allocation9 + $0xcf8] sm:$0xff] }
 0x1de   :  { %6986 = vmatpush.bf16.msra.mxu0 %v9824_v9 }
 0x1df   :  { %6999 = vmatpush.bf16.msra.mxu1 %v9832_v61  ;;  %7012 = vmatpush.bf16.msra.mxu2 %v9840_v44  ;;  %v9855_v61 = vld [vmem:[#allocation9 + $0xb10] sm:$0xff] }
 0x1e0   :  { %7025 = vmatpush.bf16.msra.mxu3 %v9848_v47  ;;  %v9863_v44 = vld [vmem:[#allocation9 + $0xb50] sm:$0xff] }
 0x1e2   :  { %6987 = vmatpush.bf16.msra.mxu0 %v9823_v14  ;;  %v9878_v14 = vld [vmem:[#allocation9 + $0xbc8] sm:$0xff] }
 0x1e3   :  { %7000 = vmatpush.bf16.msra.mxu1 %v9831_v15  ;;  %7013 = vmatpush.bf16.msra.mxu2 %v9839_v46  ;;  %v9853_v46 = vld [vmem:[#allocation9 + $0xb00] sm:$0xff] }
 0x1e4   :  { %7026 = vmatpush.bf16.msra.mxu3 %v9847_v57  ;;  %v9861_v57 = vld [vmem:[#allocation9 + $0xb40] sm:$0xff] }
 0x1e6   :  { %6988 = vmatpush.bf16.msra.mxu0 %v9822_v58  ;;  %v9869_v58 = vld [vmem:[#allocation9 + $0xb80] sm:$0xff] }
 0x1e7   :  { %7001 = vmatpush.bf16.msra.mxu1 %v9830_v2  ;;  %7014 = vmatpush.bf16.msra.mxu2 %v9838_v50  ;;  %v9877_v2 = vld [vmem:[#allocation9 + $0xbc0] sm:$0xff]  ;;  %v9892_v50 = vld [vmem:[#allocation9 + $0xc38] sm:$0xff] }
 0x1e8   :  { %7027 = vmatpush.bf16.msra.mxu3 %v9846_v3  ;;  %v9900_v3 = vld [vmem:[#allocation9 + $0xc78] sm:$0xff] }
 0x1ea   :  { %6989 = vmatpush.bf16.msra.mxu0 %v9821_v54  ;;  %v6783_v17 = vpop.f32.mrf.mxu0  ;;  %v9891_v54 = vld [vmem:[#allocation9 + $0xc30] sm:$0xff] }
 0x1eb   :  { %7002 = vmatpush.bf16.msra.mxu1 %v9829_v20  ;;  %7015 = vmatpush.bf16.msra.mxu2 %v9837_v5  ;;  %v6796_v22 = vpop.f32.mrf.mxu1  ;;  %v6784_v36 = vadd.f32 %v6783_v17, %v6771_v56  ;;  %v9899_v20 = vld [vmem:[#allocation9 + $0xc70] sm:$0xff] }
 0x1ec   :  { %7028 = vmatpush.bf16.msra.mxu3 %v9845_v24  ;;  %v9907_v5 = vld [vmem:[#allocation9 + $0xcb0] sm:$0xff] }
 0x1ed   :  { %6990 = vmatmul.bf16.vlgmr.msra.gmra.mxu0 %v10676_v30  ;;  %v9857_v30 = vld [vmem:[#allocation9 + $0xb20] sm:$0xff]  ;;  %v9915_v24 = vld [vmem:[#allocation9 + $0xcf0] sm:$0xff] }
 0x1ee   :  { %7034 = vmatpush.bf16.msrb.mxu0 %v9860_v16  ;;  %7003 = vmatmul.bf16.vlgmr.msra.gmra.mxu1 %v10678_v34  ;;  %v9873_v34 = vld [vmem:[#allocation9 + $0xba0] sm:$0xff]  ;;  %v9890_v16 = vld [vmem:[#allocation9 + $0xc28] sm:$0xff] }
 0x1ef   :  { %7047 = vmatpush.bf16.msrb.mxu1 %v9868_v13  ;;  %7060 = vmatpush.bf16.msrb.mxu2 %v9876_v28  ;;  %v9898_v13 = vld [vmem:[#allocation9 + $0xc68] sm:$0xff] }
 0x1f0   :  { %7073 = vmatpush.bf16.msrb.mxu3 %v9884_v27  ;;  %7016 = vmatmul.bf16.vlgmr.msra.gmra.mxu2 %v10683_v23  ;;  %v9881_v23 = vld [vmem:[#allocation9 + $0xbe0] sm:$0xff]  ;;  %v9906_v28 = vld [vmem:[#allocation9 + $0xca8] sm:$0xff] }
 0x1f1   :  { %7029 = vmatmul.bf16.vlgmr.msra.gmra.mxu3 %v10685_v25  ;;  %v6797_v25 = vadd.f32 %v6796_v22, %v6784_v36  ;;  %v9914_v27 = vld [vmem:[#allocation9 + $0xce8] sm:$0xff] }
 0x1f2   :  { %7035 = vmatpush.bf16.msrb.mxu0 %v9859_v29  ;;  %v6785_v0 = vpop.f32.mrf.mxu0 }
 0x1f3   :  { %7048 = vmatpush.bf16.msrb.mxu1 %v9867_v38  ;;  %7061 = vmatpush.bf16.msrb.mxu2 %v9875_v4  ;;  %v6809_v35 = vpop.f32.mrf.mxu2  ;;  %v6798_v9 = vpop.f32.mrf.mxu1 }
 0x1f4   :  { %7074 = vmatpush.bf16.msrb.mxu3 %v9883_v51  ;;  %v6822_v59 = vpop.f32.mrf.mxu3  ;;  %v6810_v1 = vadd.f32 %v6809_v35, %v6797_v25  ;;  %v9897_v51 = vld [vmem:[#allocation9 + $0xc60] sm:$0xff]  ;;  %v9902_v35 = vld [vmem:[#allocation9 + $0xc88] sm:$0xff] }
 0x1f5   :  { %v9885_v9 = vld [vmem:[#allocation9 + $0xc00] sm:$0xff] }
 0x1f6   :  { %7036 = vmatpush.bf16.msrb.mxu0 %v9858_v11  ;;  %v6823_v47 = vadd.f32 %v6822_v59, %v6810_v1  ;;  %v9888_v11 = vld [vmem:[#allocation9 + $0xc18] sm:$0xff]  ;;  %v9910_v59 = vld [vmem:[#allocation9 + $0xcc8] sm:$0xff] }
 0x1f7   :  { %7049 = vmatpush.bf16.msrb.mxu1 %v9866_v55  ;;  %7062 = vmatpush.bf16.msrb.mxu2 %v9874_v60  ;;  %v9896_v55 = vld [vmem:[#allocation9 + $0xc58] sm:$0xff] }
 0x1f8   :  { %7075 = vmatpush.bf16.msrb.mxu3 %v9882_v62  ;;  %v9904_v60 = vld [vmem:[#allocation9 + $0xc98] sm:$0xff] }
 0x1f9   :  { %v9912_v62 = vld [vmem:[#allocation9 + $0xcd8] sm:$0xff] }
 0x1fa   :  { %7037 = vmatpush.bf16.msrb.mxu0 %v9857_v30 }
 0x1fb   :  { %7050 = vmatpush.bf16.msrb.mxu1 %v9865_v63  ;;  %7063 = vmatpush.bf16.msrb.mxu2 %v9873_v34  ;;  %v6811_v15 = vpop.f32.mrf.mxu2  ;;  %v9887_v34 = vld [vmem:[#allocation9 + $0xc10] sm:$0xff] }
 0x1fc   :  { %7076 = vmatpush.bf16.msrb.mxu3 %v9881_v23  ;;  %v6824_v56 = vpop.f32.mrf.mxu3  ;;  %v9895_v23 = vld [vmem:[#allocation9 + $0xc50] sm:$0xff] }
 0x1fd   :  { %v9939_v15 = vld [vmem:[#allocation9 + $0xdb0] sm:$0xff] }
 0x1fe   :  { %7038 = vmatpush.bf16.msrb.mxu0 %v9856_v43  ;;  %v9903_v43 = vld [vmem:[#allocation9 + $0xc90] sm:$0xff] }
 0x1ff   :  { %7051 = vmatpush.bf16.msrb.mxu1 %v9864_v8  ;;  %7064 = vmatpush.bf16.msrb.mxu2 %v9872_v37  ;;  %v9911_v8 = vld [vmem:[#allocation9 + $0xcd0] sm:$0xff]  ;;  %v9886_v37 = vld [vmem:[#allocation9 + $0xc08] sm:$0xff] }
 0x200   :  { %7077 = vmatpush.bf16.msrb.mxu3 %v9880_v45  ;;  %v9894_v45 = vld [vmem:[#allocation9 + $0xc48] sm:$0xff]  ;;  %v9947_v56 = vld [vmem:[#allocation9 + $0xdf0] sm:$0xff] }
 0x202   :  { %7039 = vmatpush.bf16.msrb.mxu0 %v9855_v61  ;;  %v9893_v61 = vld [vmem:[#allocation9 + $0xc40] sm:$0xff] }
 0x203   :  { %7052 = vmatpush.bf16.msrb.mxu1 %v9863_v44  ;;  %7065 = vmatpush.bf16.msrb.mxu2 %v9871_v41  ;;  %v9901_v44 = vld [vmem:[#allocation9 + $0xc80] sm:$0xff]  ;;  %v9924_v41 = vld [vmem:[#allocation9 + $0xd38] sm:$0xff] }
 0x204   :  { %7078 = vmatpush.bf16.msrb.mxu3 %v9879_v48  ;;  %v9932_v48 = vld [vmem:[#allocation9 + $0xd78] sm:$0xff] }
 0x206   :  { %7040 = vmatpush.bf16.msrb.mxu0 %v9854_v49  ;;  %v9940_v49 = vld [vmem:[#allocation9 + $0xdb8] sm:$0xff] }
 0x207   :  { %7053 = vmatpush.bf16.msrb.mxu1 %v9862_v31  ;;  %7066 = vmatpush.bf16.msrb.mxu2 %v9870_v39  ;;  %v9948_v31 = vld [vmem:[#allocation9 + $0xdf8] sm:$0xff]  ;;  %v9923_v39 = vld [vmem:[#allocation9 + $0xd30] sm:$0xff] }
 0x208   :  { %7079 = vmatpush.bf16.msrb.mxu3 %v9878_v14  ;;  %v9931_v14 = vld [vmem:[#allocation9 + $0xd70] sm:$0xff] }
 0x20a   :  { %7041 = vmatpush.bf16.msrb.mxu0 %v9853_v46  ;;  %v6835_v29 = vpop.f32.mrf.mxu0  ;;  %v9922_v46 = vld [vmem:[#allocation9 + $0xd28] sm:$0xff] }
 0x20b   :  { %7054 = vmatpush.bf16.msrb.mxu1 %v9861_v57  ;;  %7067 = vmatpush.bf16.msrb.mxu2 %v9869_v58  ;;  %v6848_v38 = vpop.f32.mrf.mxu1  ;;  %v6836_v4 = vadd.f32 %v6835_v29, %v6823_v47  ;;  %v9909_v47 = vld [vmem:[#allocation9 + $0xcc0] sm:$0xff]  ;;  %v9930_v57 = vld [vmem:[#allocation9 + $0xd68] sm:$0xff] }
 0x20c   :  { %7080 = vmatpush.bf16.msrb.mxu3 %v9877_v2  ;;  %v9938_v58 = vld [vmem:[#allocation9 + $0xda8] sm:$0xff] }
 0x20d   :  { %7042 = vmatmul.bf16.vlgmr.msrb.gmra.mxu0 %v10687_v26  ;;  %v9889_v26 = vld [vmem:[#allocation9 + $0xc20] sm:$0xff]  ;;  %v9946_v2 = vld [vmem:[#allocation9 + $0xde8] sm:$0xff] }
 0x20e   :  { %7086 = vmatpush.bf16.msra.mxu0 %v9892_v50  ;;  %7055 = vmatmul.bf16.vlgmr.msrb.gmra.mxu1 %v10690_v40  ;;  %v9905_v40 = vld [vmem:[#allocation9 + $0xca0] sm:$0xff] }
 0x20f   :  { %7099 = vmatpush.bf16.msra.mxu1 %v9900_v3  ;;  %7112 = vmatpush.bf16.msra.mxu2 %v9908_v52 }
 0x210   :  { %7125 = vmatpush.bf16.msra.mxu3 %v9916_v53  ;;  %7068 = vmatmul.bf16.vlgmr.msrb.gmra.mxu2 %v10692_v32  ;;  %v9913_v32 = vld [vmem:[#allocation9 + $0xce0] sm:$0xff] }
 0x211   :  { %7081 = vmatmul.bf16.vlgmr.msrb.gmra.mxu3 %v10694_v42  ;;  %v6849_v42 = vadd.f32 %v6848_v38, %v6836_v4  ;;  %v9929_v53 = vld [vmem:[#allocation9 + $0xd60] sm:$0xff]  ;;  %v9919_v38 = vld [vmem:[#allocation9 + $0xd10] sm:$0xff] }
 0x212   :  { %7087 = vmatpush.bf16.msra.mxu0 %v9891_v54  ;;  %v6837_v30 = vpop.f32.mrf.mxu0  ;;  %v9920_v54 = vld [vmem:[#allocation9 + $0xd18] sm:$0xff]  ;;  %v9927_v4 = vld [vmem:[#allocation9 + $0xd50] sm:$0xff] }
 0x213   :  { %7100 = vmatpush.bf16.msra.mxu1 %v9899_v20  ;;  %7113 = vmatpush.bf16.msra.mxu2 %v9907_v5  ;;  %v6861_v17 = vpop.f32.mrf.mxu2  ;;  %v6850_v63 = vpop.f32.mrf.mxu1  ;;  %v9928_v20 = vld [vmem:[#allocation9 + $0xd58] sm:$0xff]  ;;  %v9941_v30 = vld [vmem:[#allocation9 + $0xdc0] sm:$0xff] }
 0x214   :  { %7126 = vmatpush.bf16.msra.mxu3 %v9915_v24  ;;  %v6874_v22 = vpop.f32.mrf.mxu3  ;;  %v6862_v36 = vadd.f32 %v6861_v17, %v6849_v42  ;;  %v9936_v5 = vld [vmem:[#allocation9 + $0xd98] sm:$0xff]  ;;  %v9926_v42 = vld [vmem:[#allocation9 + $0xd48] sm:$0xff]  ;;  %v9917_v17 = vld [vmem:[#allocation9 + $0xd00] sm:$0xff] }
 0x215   :  { %v9944_v24 = vld [vmem:[#allocation9 + $0xdd8] sm:$0xff] }
 0x216   :  { %7088 = vmatpush.bf16.msra.mxu0 %v9890_v16  ;;  %v6875_v25 = vadd.f32 %v6874_v22, %v6862_v36  ;;  %v9925_v22 = vld [vmem:[#allocation9 + $0xd40] sm:$0xff]  ;;  %v9956_v63 = vld [vmem:[#allocation9 + $0xe38] sm:$0xff] }
 0x217   :  { %7101 = vmatpush.bf16.msra.mxu1 %v9898_v13  ;;  %7114 = vmatpush.bf16.msra.mxu2 %v9906_v28  ;;  %v9933_v36 = vld [vmem:[#allocation9 + $0xd80] sm:$0xff] }
 0x218   :  { %7127 = vmatpush.bf16.msra.mxu3 %v9914_v27 }
 0x21a   :  { %7089 = vmatpush.bf16.msra.mxu0 %v9889_v26 }
 0x21b   :  { %7102 = vmatpush.bf16.msra.mxu1 %v9897_v51  ;;  %7115 = vmatpush.bf16.msra.mxu2 %v9905_v40  ;;  %v6863_v1 = vpop.f32.mrf.mxu2  ;;  %v9935_v51 = vld [vmem:[#allocation9 + $0xd90] sm:$0xff] }
 0x21c   :  { %7128 = vmatpush.bf16.msra.mxu3 %v9913_v32  ;;  %v6876_v0 = vpop.f32.mrf.mxu3  ;;  %v9943_v40 = vld [vmem:[#allocation9 + $0xdd0] sm:$0xff]  ;;  %v9918_v32 = vld [vmem:[#allocation9 + $0xd08] sm:$0xff] }
 0x21d   :  { %v9970_v1 = vld [vmem:[#allocation9 + $0xea8] sm:$0xff] }
 0x21e   :  { %7090 = vmatpush.bf16.msra.mxu0 %v9888_v11  ;;  %v9934_v11 = vld [vmem:[#allocation9 + $0xd88] sm:$0xff] }
 0x21f   :  { %7103 = vmatpush.bf16.msra.mxu1 %v9896_v55  ;;  %7116 = vmatpush.bf16.msra.mxu2 %v9904_v60  ;;  %v9942_v55 = vld [vmem:[#allocation9 + $0xdc8] sm:$0xff] }
 0x220   :  { %7129 = vmatpush.bf16.msra.mxu3 %v9912_v62  ;;  %v9978_v0 = vld [vmem:[#allocation9 + $0xee8] sm:$0xff] }
 0x222   :  { %7091 = vmatpush.bf16.msra.mxu0 %v9887_v34  ;;  %v9964_v34 = vld [vmem:[#allocation9 + $0xe78] sm:$0xff] }
 0x223   :  { %7104 = vmatpush.bf16.msra.mxu1 %v9895_v23  ;;  %7117 = vmatpush.bf16.msra.mxu2 %v9903_v43  ;;  %v9972_v23 = vld [vmem:[#allocation9 + $0xeb8] sm:$0xff]  ;;  %v9955_v43 = vld [vmem:[#allocation9 + $0xe30] sm:$0xff] }
 0x224   :  { %7130 = vmatpush.bf16.msra.mxu3 %v9911_v8  ;;  %v9963_v8 = vld [vmem:[#allocation9 + $0xe70] sm:$0xff] }
 0x226   :  { %7092 = vmatpush.bf16.msra.mxu0 %v9886_v37  ;;  %v9971_v37 = vld [vmem:[#allocation9 + $0xeb0] sm:$0xff] }
 0x227   :  { %7105 = vmatpush.bf16.msra.mxu1 %v9894_v45  ;;  %7118 = vmatpush.bf16.msra.mxu2 %v9902_v35  ;;  %v9979_v45 = vld [vmem:[#allocation9 + $0xef0] sm:$0xff]  ;;  %v9954_v35 = vld [vmem:[#allocation9 + $0xe28] sm:$0xff] }
 0x228   :  { %7131 = vmatpush.bf16.msra.mxu3 %v9910_v59  ;;  %v9962_v59 = vld [vmem:[#allocation9 + $0xe68] sm:$0xff] }
 0x22a   :  { %7093 = vmatpush.bf16.msra.mxu0 %v9885_v9  ;;  %v6887_v50 = vpop.f32.mrf.mxu0 }
 0x22b   :  { %7106 = vmatpush.bf16.msra.mxu1 %v9893_v61  ;;  %7119 = vmatpush.bf16.msra.mxu2 %v9901_v44  ;;  %v6900_v3 = vpop.f32.mrf.mxu1  ;;  %v6888_v52 = vadd.f32 %v6887_v50, %v6875_v25  ;;  %v9980_v25 = vld [vmem:[#allocation9 + $0xef8] sm:$0xff]  ;;  %v9967_v50 = vld [vmem:[#allocation9 + $0xe90] sm:$0xff] }
 0x22c   :  { %7132 = vmatpush.bf16.msra.mxu3 %v9909_v47  ;;  %v9961_v47 = vld [vmem:[#allocation9 + $0xe60] sm:$0xff] }
 0x22d   :  { %7094 = vmatmul.bf16.vlgmr.msra.gmra.mxu0 %v10702_v21  ;;  %v9921_v21 = vld [vmem:[#allocation9 + $0xd20] sm:$0xff] }
 0x22e   :  { %7138 = vmatpush.bf16.msrb.mxu0 %v9924_v41  ;;  %7107 = vmatmul.bf16.vlgmr.msra.gmra.mxu1 %v10704_v12  ;;  %v9937_v12 = vld [vmem:[#allocation9 + $0xda0] sm:$0xff]  ;;  %v9952_v41 = vld [vmem:[#allocation9 + $0xe18] sm:$0xff] }
 0x22f   :  { %7151 = vmatpush.bf16.msrb.mxu1 %v9932_v48  ;;  %7164 = vmatpush.bf16.msrb.mxu2 %v9940_v49  ;;  %v9960_v48 = vld [vmem:[#allocation9 + $0xe58] sm:$0xff] }
 0x230   :  { %7177 = vmatpush.bf16.msrb.mxu3 %v9948_v31  ;;  %7120 = vmatmul.bf16.vlgmr.msra.gmra.mxu2 %v10708_v33  ;;  %v9945_v33 = vld [vmem:[#allocation9 + $0xde0] sm:$0xff]  ;;  %v9968_v49 = vld [vmem:[#allocation9 + $0xe98] sm:$0xff] }
 0x231   :  { %7133 = vmatmul.bf16.vlgmr.msra.gmra.mxu3 %v10710_v10  ;;  %v6901_v10 = vadd.f32 %v6900_v3, %v6888_v52  ;;  %v9976_v31 = vld [vmem:[#allocation9 + $0xed8] sm:$0xff]  ;;  %v9975_v3 = vld [vmem:[#allocation9 + $0xed0] sm:$0xff]  ;;  %v9950_v52 = vld [vmem:[#allocation9 + $0xe08] sm:$0xff] }
 0x232   :  { %7139 = vmatpush.bf16.msrb.mxu0 %v9923_v39  ;;  %v6889_v27 = vpop.f32.mrf.mxu0 }
 0x233   :  { %7152 = vmatpush.bf16.msrb.mxu1 %v9931_v14  ;;  %7165 = vmatpush.bf16.msrb.mxu2 %v9939_v15  ;;  %v6913_v16 = vpop.f32.mrf.mxu2  ;;  %v6902_v29 = vpop.f32.mrf.mxu1  ;;  %v10012_v27 = vld [vmem:[#allocation9 + $0xff8] sm:$0xff] }
 0x234   :  { %7178 = vmatpush.bf16.msrb.mxu3 %v9947_v56  ;;  %v6926_v13 = vpop.f32.mrf.mxu3  ;;  %v6914_v28 = vadd.f32 %v6913_v16, %v6901_v10  ;;  %v9988_v16 = vld [vmem:[#allocation9 + $0xf38] sm:$0xff]  ;;  %v3318_v29 = vld [vmem:[#allocation1] sm:$0xff] }
 0x236   :  { %7140 = vmatpush.bf16.msrb.mxu0 %v9922_v46  ;;  %v6927_v26 = vadd.f32 %v6926_v13, %v6914_v28  ;;  %v9996_v13 = vld [vmem:[#allocation9 + $0xf78] sm:$0xff] }
 0x237   :  { %7153 = vmatpush.bf16.msrb.mxu1 %v9930_v57  ;;  %7166 = vmatpush.bf16.msrb.mxu2 %v9938_v58  ;;  %v9951_v57 = vld [vmem:[#allocation9 + $0xe10] sm:$0xff]  ;;  %v10004_v28 = vld [vmem:[#allocation9 + $0xfb8] sm:$0xff] }
 0x238   :  { %7179 = vmatpush.bf16.msrb.mxu3 %v9946_v2  ;;  %v9959_v58 = vld [vmem:[#allocation9 + $0xe50] sm:$0xff] }
 0x23a   :  { %7141 = vmatpush.bf16.msrb.mxu0 %v9921_v21  ;;  %v9958_v21 = vld [vmem:[#allocation9 + $0xe48] sm:$0xff] }
 0x23b   :  { %7154 = vmatpush.bf16.msrb.mxu1 %v9929_v53  ;;  %7167 = vmatpush.bf16.msrb.mxu2 %v9937_v12  ;;  %v6915_v60 = vpop.f32.mrf.mxu2  ;;  %v9966_v53 = vld [vmem:[#allocation9 + $0xe88] sm:$0xff] }
 0x23c   :  { %7180 = vmatpush.bf16.msrb.mxu3 %v9945_v33  ;;  %v6928_v62 = vpop.f32.mrf.mxu3  ;;  %v9974_v12 = vld [vmem:[#allocation9 + $0xec8] sm:$0xff] }
 0x23d   :  { %v10002_v60 = vld [vmem:[#allocation9 + $0xfa8] sm:$0xff] }
 0x23e   :  { %7142 = vmatpush.bf16.msrb.mxu0 %v9920_v54  ;;  %v9949_v54 = vld [vmem:[#allocation9 + $0xe00] sm:$0xff]  ;;  %v10010_v62 = vld [vmem:[#allocation9 + $0xfe8] sm:$0xff] }
 0x23f   :  { %7155 = vmatpush.bf16.msrb.mxu1 %v9928_v20  ;;  %7168 = vmatpush.bf16.msrb.mxu2 %v9936_v5  ;;  %v9957_v20 = vld [vmem:[#allocation9 + $0xe40] sm:$0xff] }
 0x240   :  { %7181 = vmatpush.bf16.msrb.mxu3 %v9944_v24  ;;  %v9965_v5 = vld [vmem:[#allocation9 + $0xe80] sm:$0xff] }
 0x241   :  { %v9973_v24 = vld [vmem:[#allocation9 + $0xec0] sm:$0xff] }
 0x242   :  { %7143 = vmatpush.bf16.msrb.mxu0 %v9919_v38  ;;  %v9987_v38 = vld [vmem:[#allocation9 + $0xf30] sm:$0xff] }
 0x243   :  { %7156 = vmatpush.bf16.msrb.mxu1 %v9927_v4  ;;  %7169 = vmatpush.bf16.msrb.mxu2 %v9935_v51  ;;  %v9995_v4 = vld [vmem:[#allocation9 + $0xf70] sm:$0xff] }
 0x244   :  { %7182 = vmatpush.bf16.msrb.mxu3 %v9943_v40  ;;  %v10003_v51 = vld [vmem:[#allocation9 + $0xfb0] sm:$0xff] }
 0x245   :  { %v10011_v40 = vld [vmem:[#allocation9 + $0xff0] sm:$0xff] }
 0x246   :  { %7144 = vmatpush.bf16.msrb.mxu0 %v9918_v32  ;;  %v3320_v32 = vld [vmem:[#allocation1 + $0x12] sm:$0xff] }
 0x247   :  { %7157 = vmatpush.bf16.msrb.mxu1 %v9926_v42  ;;  %7170 = vmatpush.bf16.msrb.mxu2 %v9934_v11  ;;  %v3321_v42 = vld [vmem:[#allocation1 + $0x1b] sm:$0xff]  ;;  %v9986_v11 = vld [vmem:[#allocation9 + $0xf28] sm:$0xff] }
 0x248   :  { %7183 = vmatpush.bf16.msrb.mxu3 %v9942_v55  ;;  %v9994_v55 = vld [vmem:[#allocation9 + $0xf68] sm:$0xff] }
 0x24a   :  { %7145 = vmatpush.bf16.msrb.mxu0 %v9917_v17  ;;  %v6939_v9 = vpop.f32.mrf.mxu0 }
 0x24b   :  { %7158 = vmatpush.bf16.msrb.mxu1 %v9925_v22  ;;  %7171 = vmatpush.bf16.msrb.mxu2 %v9933_v36  ;;  %v6952_v61 = vpop.f32.mrf.mxu1  ;;  %v6940_v44 = vadd.f32 %v6939_v9, %v6927_v26  ;;  %v3319_v26 = vld [vmem:[#allocation1 + $0x9] sm:$0xff] }
 0x24c   :  { %7184 = vmatpush.bf16.msrb.mxu3 %v9941_v30  ;;  %v9985_v30 = vld [vmem:[#allocation9 + $0xf20] sm:$0xff] }
 0x24d   :  { %7146 = vmatmul.bf16.vlgmr.msrb.gmra.mxu0 %v10712_v7  ;;  %v9953_v7 = vld [vmem:[#allocation9 + $0xe20] sm:$0xff] }
 0x24e   :  { %7190 = vmatpush.bf16.msra.mxu0 %v9956_v63  ;;  %7159 = vmatmul.bf16.vlgmr.msrb.gmra.mxu1 %v10715_v18  ;;  %v9969_v18 = vld [vmem:[#allocation9 + $0xea0] sm:$0xff] }
 0x24f   :  { %7203 = vmatpush.bf16.msra.mxu1 %v9964_v34  ;;  %7216 = vmatpush.bf16.msra.mxu2 %v9972_v23  ;;  %v9993_v63 = vld [vmem:[#allocation9 + $0xf60] sm:$0xff] }
 0x250   :  { %7229 = vmatpush.bf16.msra.mxu3 %v9980_v25  ;;  %7172 = vmatmul.bf16.vlgmr.msrb.gmra.mxu2 %v10717_v19  ;;  %v9977_v19 = vld [vmem:[#allocation9 + $0xee0] sm:$0xff] }
 0x251   :  { %7185 = vmatmul.bf16.vlgmr.msrb.gmra.mxu3 %v10719_v6  ;;  %v6953_v6 = vadd.f32 %v6952_v61, %v6940_v44  ;;  %v10001_v34 = vld [vmem:[#allocation9 + $0xfa0] sm:$0xff]  ;;  %v9983_v61 = vld [vmem:[#allocation9 + $0xf10] sm:$0xff] }
 0x252   :  { %7191 = vmatpush.bf16.msra.mxu0 %v9955_v43  ;;  %v6941_v56 = vpop.f32.mrf.mxu0  ;;  %v10009_v23 = vld [vmem:[#allocation9 + $0xfe0] sm:$0xff]  ;;  %v9984_v43 = vld [vmem:[#allocation9 + $0xf18] sm:$0xff]  ;;  %v9991_v44 = vld [vmem:[#allocation9 + $0xf50] sm:$0xff] }
 0x253   :  { %7204 = vmatpush.bf16.msra.mxu1 %v9963_v8  ;;  %7217 = vmatpush.bf16.msra.mxu2 %v9971_v37  ;;  %v6965_v39 = vpop.f32.mrf.mxu2  ;;  %v6954_v46 = vpop.f32.mrf.mxu1  ;;  %v9992_v8 = vld [vmem:[#allocation9 + $0xf58] sm:$0xff]  ;;  %v10005_v56 = vld [vmem:[#allocation9 + $0xfc0] sm:$0xff] }
 0x254   :  { %7230 = vmatpush.bf16.msra.mxu3 %v9979_v45  ;;  %v6978_v14 = vpop.f32.mrf.mxu3  ;;  %v6966_v15 = vadd.f32 %v6965_v39, %v6953_v6  ;;  %v10000_v37 = vld [vmem:[#allocation9 + $0xf98] sm:$0xff]  ;;  %v9990_v6 = vld [vmem:[#allocation9 + $0xf48] sm:$0xff]  ;;  %v9981_v39 = vld [vmem:[#allocation9 + $0xf00] sm:$0xff] }
 0x255   :  { %v10008_v45 = vld [vmem:[#allocation9 + $0xfd8] sm:$0xff]  ;;  %v3322_v46 = vld [vmem:[#allocation1 + $0x24] sm:$0xff] }
 0x256   :  { %7192 = vmatpush.bf16.msra.mxu0 %v9954_v35  ;;  %v6979_v2 = vadd.f32 %v6978_v14, %v6966_v15  ;;  %v9989_v14 = vld [vmem:[#allocation9 + $0xf40] sm:$0xff] }
 0x257   :  { %7205 = vmatpush.bf16.msra.mxu1 %v9962_v59  ;;  %7218 = vmatpush.bf16.msra.mxu2 %v9970_v1  ;;  %v9997_v15 = vld [vmem:[#allocation9 + $0xf80] sm:$0xff] }
 0x258   :  { %7231 = vmatpush.bf16.msra.mxu3 %v9978_v0 }
 0x25a   :  { %7193 = vmatpush.bf16.msra.mxu0 %v9953_v7 }
 0x25b   :  { %7206 = vmatpush.bf16.msra.mxu1 %v9961_v47  ;;  %7219 = vmatpush.bf16.msra.mxu2 %v9969_v18  ;;  %v6967_v33 = vpop.f32.mrf.mxu2  ;;  %v9999_v47 = vld [vmem:[#allocation9 + $0xf90] sm:$0xff] }
 0x25c   :  { %7232 = vmatpush.bf16.msra.mxu3 %v9977_v19  ;;  %v6980_v10 = vpop.f32.mrf.mxu3  ;;  %v10007_v18 = vld [vmem:[#allocation9 + $0xfd0] sm:$0xff]  ;;  %v9982_v19 = vld [vmem:[#allocation9 + $0xf08] sm:$0xff] }
 0x25e   :  { %7194 = vmatpush.bf16.msra.mxu0 %v9952_v41  ;;  %v9998_v41 = vld [vmem:[#allocation9 + $0xf88] sm:$0xff] }
 0x25f   :  { %7207 = vmatpush.bf16.msra.mxu1 %v9960_v48  ;;  %7220 = vmatpush.bf16.msra.mxu2 %v9968_v49  ;;  %v10006_v48 = vld [vmem:[#allocation9 + $0xfc8] sm:$0xff] }
 0x260   :  { %7233 = vmatpush.bf16.msra.mxu3 %v9976_v31 }
 0x262   :  { %7195 = vmatpush.bf16.msra.mxu0 %v9951_v57  ;;  %v3323_v57 = vld [vmem:[#allocation1 + $0x2d] sm:$0xff] }
 0x263   :  { %7208 = vmatpush.bf16.msra.mxu1 %v9959_v58  ;;  %7221 = vmatpush.bf16.msra.mxu2 %v9967_v50  ;;  %v3324_v58 = vld [vmem:[#allocation1 + $0x36] sm:$0xff] }
 0x264   :  { %7234 = vmatpush.bf16.msra.mxu3 %v9975_v3 }
 0x266   :  { %7196 = vmatpush.bf16.msra.mxu0 %v9950_v52 }
 0x267   :  { %7209 = vmatpush.bf16.msra.mxu1 %v9958_v21  ;;  %7222 = vmatpush.bf16.msra.mxu2 %v9966_v53 }
 0x268   :  { %7235 = vmatpush.bf16.msra.mxu3 %v9974_v12 }
 0x26a   :  { %7197 = vmatpush.bf16.msra.mxu0 %v9949_v54  ;;  %v6991_v17 = vpop.f32.mrf.mxu0 }
 0x26b   :  { %7210 = vmatpush.bf16.msra.mxu1 %v9957_v20  ;;  %7223 = vmatpush.bf16.msra.mxu2 %v9965_v5  ;;  %v7004_v22 = vpop.f32.mrf.mxu1  ;;  %v6992_v36 = vadd.f32 %v6991_v17, %v6979_v2  ;;  %v3325_v2 = vld [vmem:[#allocation1 + $0x3f] sm:$0xff] }
 0x26c   :  { %7236 = vmatpush.bf16.msra.mxu3 %v9973_v24 }
 0x26d   :  { %7198 = vmatmul.bf16.vlgmr.msra.gmra.mxu0 %v3318_v29  ;;  %v7005_v25 = vadd.f32 %v7004_v22, %v6992_v36 }
 0x26e   :  { %7242 = vmatpush.bf16.msrb.mxu0 %v9988_v16  ;;  %7211 = vmatmul.bf16.vlgmr.msra.gmra.mxu1 %v3319_v26 }
 0x26f   :  { %7255 = vmatpush.bf16.msrb.mxu1 %v9996_v13  ;;  %7268 = vmatpush.bf16.msrb.mxu2 %v10004_v28 }
 0x270   :  { %7281 = vmatpush.bf16.msrb.mxu3 %v10012_v27  ;;  %7224 = vmatmul.bf16.vlgmr.msra.gmra.mxu2 %v3320_v32 }
 0x271   :  { %7237 = vmatmul.bf16.vlgmr.msra.gmra.mxu3 %v3321_v42 }
 0x272   :  { %7243 = vmatpush.bf16.msrb.mxu0 %v9987_v38  ;;  %v6993_v0 = vpop.f32.mrf.mxu0 }
 0x273   :  { %7256 = vmatpush.bf16.msrb.mxu1 %v9995_v4  ;;  %7269 = vmatpush.bf16.msrb.mxu2 %v10003_v51  ;;  %v7017_v35 = vpop.f32.mrf.mxu2  ;;  %v7006_v9 = vpop.f32.mrf.mxu1 }
 0x274   :  { %7282 = vmatpush.bf16.msrb.mxu3 %v10011_v40  ;;  %v7030_v59 = vpop.f32.mrf.mxu3  ;;  %v7018_v1 = vadd.f32 %v7017_v35, %v7005_v25 }
 0x276   :  { %7244 = vmatpush.bf16.msrb.mxu0 %v9986_v11  ;;  %v7031_v7 = vadd.f32 %v7030_v59, %v7018_v1 }
 0x277   :  { %7257 = vmatpush.bf16.msrb.mxu1 %v9994_v55  ;;  %7270 = vmatpush.bf16.msrb.mxu2 %v10002_v60 }
 0x278   :  { %7283 = vmatpush.bf16.msrb.mxu3 %v10010_v62 }
 0x27a   :  { %7245 = vmatpush.bf16.msrb.mxu0 %v9985_v30 }
 0x27b   :  { %7258 = vmatpush.bf16.msrb.mxu1 %v9993_v63  ;;  %7271 = vmatpush.bf16.msrb.mxu2 %v10001_v34  ;;  %v7019_v49 = vpop.f32.mrf.mxu2 }
 0x27c   :  { %7284 = vmatpush.bf16.msrb.mxu3 %v10009_v23  ;;  %v7032_v31 = vpop.f32.mrf.mxu3  ;;  %v10188_v23 = vmov 0.0  }
 0x27d   :  { %99 = vst [vmem:[#allocation12] sm:$0x3] %v10188_v23 }
 0x27e   :  { %7246 = vmatpush.bf16.msrb.mxu0 %v9984_v43 }
 0x27f   :  { %7259 = vmatpush.bf16.msrb.mxu1 %v9992_v8  ;;  %7272 = vmatpush.bf16.msrb.mxu2 %v10000_v37 }
 0x280   :  { %7285 = vmatpush.bf16.msrb.mxu3 %v10008_v45 }
 0x282   :  { %7247 = vmatpush.bf16.msrb.mxu0 %v9983_v61 }
 0x283   :  { %7260 = vmatpush.bf16.msrb.mxu1 %v9991_v44  ;;  %7273 = vmatpush.bf16.msrb.mxu2 %v9999_v47 }
 0x284   :  { %7286 = vmatpush.bf16.msrb.mxu3 %v10007_v18 }
 0x286   :  { %7248 = vmatpush.bf16.msrb.mxu0 %v9982_v19 }
 0x287   :  { %7261 = vmatpush.bf16.msrb.mxu1 %v9990_v6  ;;  %7274 = vmatpush.bf16.msrb.mxu2 %v9998_v41 }
 0x288   :  { %7287 = vmatpush.bf16.msrb.mxu3 %v10006_v48 }
 0x28a   :  { %7249 = vmatpush.bf16.msrb.mxu0 %v9981_v39  ;;  %v7043_v50 = vpop.f32.mrf.mxu0 }
 0x28b   :  { %7262 = vmatpush.bf16.msrb.mxu1 %v9989_v14  ;;  %7275 = vmatpush.bf16.msrb.mxu2 %v9997_v15  ;;  %v7056_v3 = vpop.f32.mrf.mxu1  ;;  %v7044_v52 = vadd.f32 %v7043_v50, %v7031_v7  ;;  %v2211_v15 = vld [vmem:[#allocation12] sm:$0x3] }
 0x28c   :  { %7288 = vmatpush.bf16.msrb.mxu3 %v10005_v56 }
 0x28d   :  { %7250 = vmatmul.bf16.vlgmr.msrb.gmra.mxu0 %v3322_v46  ;;  %v7057_v21 = vadd.f32 %v7056_v3, %v7044_v52 }
 0x28e   :  { %7263 = vmatmul.bf16.vlgmr.msrb.gmra.mxu1 %v3323_v57  ;;  %7276 = vmatmul.bf16.vlgmr.msrb.gmra.mxu2 %v3324_v58 }
 0x28f   :  { %7289 = vmatmul.bf16.vlgmr.msrb.gmra.mxu3 %v3325_v2  ;;  %v10025_v2 = vld [vmem:[#allocation11] ss:$0 sm:$0xff] }
 0x292   :  { %v7045_v10 = vpop.f32.mrf.mxu0 }
 0x293   :  { %v7069_v53 = vpop.f32.mrf.mxu2  ;;  %v7058_v54 = vpop.f32.mrf.mxu1 }
 0x294   :  { %v7082_v12 = vpop.f32.mrf.mxu3  ;;  %v7070_v33 = vadd.f32 %v7069_v53, %v7057_v21 }
 0x296   :  { %v7083_v20 = vadd.f32 %v7082_v12, %v7070_v33 }
 0x29b   :  { %v7071_v5 = vpop.f32.mrf.mxu2 }
 0x29c   :  { %v7084_v24 = vpop.f32.mrf.mxu3 }
 0x2aa   :  { %v7095_v16 = vpop.f32.mrf.mxu0 }
 0x2ab   :  { %v7108_v13 = vpop.f32.mrf.mxu1  ;;  %v7096_v28 = vadd.f32 %v7095_v16, %v7083_v20 }
 0x2ad   :  { %v7109_v27 = vadd.f32 %v7108_v13, %v7096_v28 }
 0x2b2   :  { %v7097_v26 = vpop.f32.mrf.mxu0 }
 0x2b3   :  { %v7121_v29 = vpop.f32.mrf.mxu2  ;;  %v7110_v51 = vpop.f32.mrf.mxu1 }
 0x2b4   :  { %v7134_v38 = vpop.f32.mrf.mxu3  ;;  %v7122_v4 = vadd.f32 %v7121_v29, %v7109_v27 }
 0x2b6   :  { %v7135_v40 = vadd.f32 %v7134_v38, %v7122_v4 }
 0x2bb   :  { %v7123_v32 = vpop.f32.mrf.mxu2 }
 0x2bc   :  { %v7136_v42 = vpop.f32.mrf.mxu3 }
 0x2ca   :  { %v7147_v11 = vpop.f32.mrf.mxu0 }
 0x2cb   :  { %v7160_v55 = vpop.f32.mrf.mxu1  ;;  %v7148_v25 = vadd.f32 %v7147_v11, %v7135_v40 }
 0x2cd   :  { %v7161_v35 = vadd.f32 %v7160_v55, %v7148_v25 }
 0x2d2   :  { %v7149_v17 = vpop.f32.mrf.mxu0 }
 0x2d3   :  { %v7173_v60 = vpop.f32.mrf.mxu2  ;;  %v7162_v22 = vpop.f32.mrf.mxu1 }
 0x2d4   :  { %v7186_v62 = vpop.f32.mrf.mxu3  ;;  %v7174_v59 = vadd.f32 %v7173_v60, %v7161_v35 }
 0x2d6   :  { %v7187_v9 = vadd.f32 %v7186_v62, %v7174_v59 }
 0x2db   :  { %v7175_v36 = vpop.f32.mrf.mxu2 }
 0x2dc   :  { %v7188_v30 = vpop.f32.mrf.mxu3 }
 0x2ea   :  { %v7199_v63 = vpop.f32.mrf.mxu0 }
 0x2eb   :  { %v7212_v34 = vpop.f32.mrf.mxu1  ;;  %v7200_v61 = vadd.f32 %v7199_v63, %v7187_v9 }
 0x2ed   :  { %v7213_v44 = vadd.f32 %v7212_v34, %v7200_v61 }
 0x2f2   :  { %v7201_v37 = vpop.f32.mrf.mxu0 }
 0x2f3   :  { %v7225_v43 = vpop.f32.mrf.mxu2  ;;  %v7214_v45 = vpop.f32.mrf.mxu1 }
 0x2f4   :  { %v7238_v8 = vpop.f32.mrf.mxu3  ;;  %v7226_v7 = vadd.f32 %v7225_v43, %v7213_v44 }
 0x2f6   :  { %v7239_v47 = vadd.f32 %v7238_v8, %v7226_v7 }
 0x2fb   :  { %v7227_v1 = vpop.f32.mrf.mxu2 }
 0x2fc   :  { %v7240_v0 = vpop.f32.mrf.mxu3 }
 0x30a   :  { %v7251_v18 = vpop.f32.mrf.mxu0 }
 0x30b   :  { %v7264_v19 = vpop.f32.mrf.mxu1  ;;  %v7252_v6 = vadd.f32 %v7251_v18, %v7239_v47 }
 0x30d   :  { %v7265_v41 = vadd.f32 %v7264_v19, %v7252_v6 }
 0x311   :  { %v7277_v48 = vpop.f32.mrf.mxu2 }
 0x312   :  { %v7290_v49 = vpop.f32.mrf.mxu3  ;;  %v7278_v31 = vadd.f32 %v7277_v48, %v7265_v41  ;;  %v7253_v39 = vpop.f32.mrf.mxu0 }
 0x313   :  { %v7266_v14 = vpop.f32.mrf.mxu1 }
 0x314   :  { %v7291_v56 = vadd.f32 %v7290_v49, %v7278_v31 }
 0x316   :  { %v7294_v46 = vadd.f32 %v7291_v56, %v2211_v15 }
 0x318   :  { %7295 = vst [vmem:[#allocation12] sm:$0x3] %v7294_v46 }
 0x319   :  { %v7279_v57 = vpop.f32.mrf.mxu2 }
 0x31a   :  { %v7292_v58 = vpop.f32.mrf.mxu3 }
 0x31f   :  { %v7299_v50 = vld [vmem:[#allocation12] sm:$0x3] }
 0x320   :  { %v7304_v3 = vadd.f32 %v10025_v2, %v7299_v50 }
 0x322   :  { %7305 = vst [vmem:[#allocation12] sm:$0x3] %v7304_v3 }
 0x323   :  { %7316 = dma.vmem_to_hbm [thread:$0]  %s7312_s4, 32, %s7314_s22, [#allocation5]  }
 0x324   :  { %10176 = dma.done.wait [#allocation5], 32  }
 0x325   :  { %10177 = vsyncadd [#allocation5], 4294967264 }
 0x326   :  { %7321 = vsyncpa [#allocation4], 1 }
 0x327   :  { %7322 = vsyncpa [#allocation7], 1 }
 0x328   :  { %7323 = vsyncpa [#allocation10], 1 }
 0x329   :  { %7324 = vsyncpa [#allocation5], 1 }

</bundles_post_ra>
